<compile_context>
chip_gen: v6e
topology: v6e:2x2x1
jax: 0.10.0
libtpu: 0.0.40
codegen_flags: <defaults>
</compile_context>

<pallas_src>
import functools

import jax
import jax.numpy as jnp
import numpy as np
from jax.experimental import pallas as pl
from jax.experimental.pallas import tpu as pltpu


# ----------------------------------------------------------------------------
# Pallas kernels
# ----------------------------------------------------------------------------
def _silu(y):
    return y * jax.nn.sigmoid(y)


def _one_1x1_kernel(x_ref, w_ref, b_ref, o_ref):
    # o = SiLU(x @ w + b)
    y = jnp.dot(x_ref[...], w_ref[...], preferred_element_type=jnp.float32)
    y = y + b_ref[...]
    o_ref[...] = _silu(y).astype(o_ref.dtype)


def _dual_1x1_kernel(x_ref, w1_ref, b1_ref, w2_ref, b2_ref, o1_ref, o2_ref):
    # cv1 and cv2 share the same input x -> read x once, write both outputs.
    x = x_ref[...]
    y1 = jnp.dot(x, w1_ref[...], preferred_element_type=jnp.float32) + b1_ref[...]
    y2 = jnp.dot(x, w2_ref[...], preferred_element_type=jnp.float32) + b2_ref[...]
    o1_ref[...] = _silu(y1).astype(o1_ref.dtype)
    o2_ref[...] = _silu(y2).astype(o2_ref.dtype)


def _concat_1x1_kernel(a_ref, c_ref, wa_ref, wc_ref, b_ref, o_ref):
    # o = SiLU(a @ wa + c @ wc + b)   (replaces concat([a, c]) @ W)
    y = jnp.dot(a_ref[...], wa_ref[...], preferred_element_type=jnp.float32)
    y = y + jnp.dot(c_ref[...], wc_ref[...], preferred_element_type=jnp.float32)
    y = y + b_ref[...]
    o_ref[...] = _silu(y).astype(o_ref.dtype)


def _conv3x3_kernel(x_ref, w_ref, b_ref, o_ref, *, taps, cin, m2):
    # x_ref: (1, P, Cin) flattened zero-padded image (row-major, width W+2).
    # w_ref: (9*Cin, Cout) tap-major (ky, kx) BN-folded weights.
    # o_ref: (1, M2, Cout) outputs for all positions q = r*(W+2)+c (the two
    #        rightmost columns per row are garbage and are discarded by the
    #        caller).  9 shifted-tap matmuls accumulate in f32 in VMEM; no
    #        im2col tensor ever touches HBM.
    cout = w_ref.shape[-1]
    acc = jnp.zeros((m2, cout), jnp.float32)
    for t, d in enumerate(taps):
        xt = x_ref[0, d:d + m2, :]                       # static contiguous slice
        wt = w_ref[t * cin:(t + 1) * cin, :]
        acc = acc + jnp.dot(xt, wt, preferred_element_type=jnp.float32)
    y = acc + b_ref[...]
    o_ref[0] = _silu(y).astype(o_ref.dtype)


# ----------------------------------------------------------------------------
# Tiling helper
# ----------------------------------------------------------------------------
def _pick_tile_m(m, row_bytes, vmem_budget=8 * 1024 * 1024):
    """Largest tile (multiple of 8, divisor of m) within a rough VMEM budget,
    preferring >= 2 grid blocks so both v7x TensorCores get work."""
    candidates = [1024, 512, 256, 128, 64, 32, 16, 8]
    ok = [c for c in candidates
          if c <= m and m % c == 0 and 2 * c * row_bytes <= vmem_budget]
    for c in ok:
        if m // c >= 2:
            return c
    if ok:
        return ok[0]
    return m  # M not a multiple of 8: fall back to a single block.


_PARALLEL_1D = pltpu.CompilerParams(dimension_semantics=("parallel",))


# ----------------------------------------------------------------------------
# Conv wrappers (NHWC, bf16 activations)
# ----------------------------------------------------------------------------
def conv1x1_bn_silu(x, w, b, out_dtype=jnp.bfloat16):
    """x: (N,H,W,Cin) bf16; w: (Cin,Cout) bf16 (BN-folded); b: (1,Cout) f32."""
    N, H, W, Cin = x.shape
    Cout = w.shape[-1]
    M = N * H * W
    tm = _pick_tile_m(M, 2 * (Cin + Cout))
    out = pl.pallas_call(
        _one_1x1_kernel,
        out_shape=jax.ShapeDtypeStruct((M, Cout), out_dtype),
        grid=(M // tm,),
        in_specs=[pl.BlockSpec((tm, Cin), lambda i: (i, 0)),
                  pl.BlockSpec((Cin, Cout), lambda i: (0, 0)),
                  pl.BlockSpec((1, Cout), lambda i: (0, 0))],
        out_specs=pl.BlockSpec((tm, Cout), lambda i: (i, 0)),
        compiler_params=_PARALLEL_1D,
    )(x.reshape(M, Cin), w, b)
    return out.reshape(N, H, W, Cout)


def conv1x1_dual_bn_silu(x, w1, b1, w2, b2):
    """Fused cv1/cv2: one read of x, two SiLU(conv+BN) outputs."""
    N, H, W, Cin = x.shape
    c1o, c2o = w1.shape[-1], w2.shape[-1]
    M = N * H * W
    tm = _pick_tile_m(M, 2 * (Cin + c1o + c2o))
    y1, y2 = pl.pallas_call(
        _dual_1x1_kernel,
        out_shape=(jax.ShapeDtypeStruct((M, c1o), jnp.bfloat16),
                   jax.ShapeDtypeStruct((M, c2o), jnp.bfloat16)),
        grid=(M // tm,),
        in_specs=[pl.BlockSpec((tm, Cin), lambda i: (i, 0)),
                  pl.BlockSpec((Cin, c1o), lambda i: (0, 0)),
                  pl.BlockSpec((1, c1o), lambda i: (0, 0)),
                  pl.BlockSpec((Cin, c2o), lambda i: (0, 0)),
                  pl.BlockSpec((1, c2o), lambda i: (0, 0))],
        out_specs=(pl.BlockSpec((tm, c1o), lambda i: (i, 0)),
                   pl.BlockSpec((tm, c2o), lambda i: (i, 0))),
        compiler_params=_PARALLEL_1D,
    )(x.reshape(M, Cin), w1, b1, w2, b2)
    return y1.reshape(N, H, W, c1o), y2.reshape(N, H, W, c2o)


def conv1x1_concat_bn_silu(a, c, wa, wc, bias, out_dtype=jnp.float32):
    """cv3 without materializing concat([a, c]): SiLU(a@wa + c@wc + bias)."""
    N, H, W, Ca = a.shape
    Cc = c.shape[-1]
    Cout = wa.shape[-1]
    M = N * H * W
    tm = _pick_tile_m(M, 2 * (Ca + Cc) + 4 * Cout)
    out = pl.pallas_call(
        _concat_1x1_kernel,
        out_shape=jax.ShapeDtypeStruct((M, Cout), out_dtype),
        grid=(M // tm,),
        in_specs=[pl.BlockSpec((tm, Ca), lambda i: (i, 0)),
                  pl.BlockSpec((tm, Cc), lambda i: (i, 0)),
                  pl.BlockSpec((Ca, Cout), lambda i: (0, 0)),
                  pl.BlockSpec((Cc, Cout), lambda i: (0, 0)),
                  pl.BlockSpec((1, Cout), lambda i: (0, 0))],
        out_specs=pl.BlockSpec((tm, Cout), lambda i: (i, 0)),
        compiler_params=_PARALLEL_1D,
    )(a.reshape(M, Ca), c.reshape(M, Cc), wa, wc, bias)
    return out.reshape(N, H, W, Cout)


def conv3x3_bn_silu(x, w9, b):
    """3x3 stride-1 'same' conv + BN + SiLU.

    x:  (N,H,W,Cin) bf16;  w9: (9*Cin, Cout) bf16 tap-major;  b: (1,Cout) f32.
    Returns (N, H, W+2, Cout) bf16 in padded-width layout; the caller slices
    [:, :, :W, :] (fused by XLA with the residual add).
    """
    N, H, W, Cin = x.shape
    Cout = w9.shape[-1]
    Wp = W + 2
    M2 = H * Wp                       # output positions per image (2 junk cols/row)
    # Pad one extra bottom row so every shifted tap slice stays in-bounds.
    xp = jnp.pad(x, ((0, 0), (1, 2), (1, 1), (0, 0)))
    P = (H + 3) * Wp
    xflat = xp.reshape(N, P, Cin)
    taps = tuple(ky * Wp + kx for ky in range(3) for kx in range(3))
    kern = functools.partial(_conv3x3_kernel, taps=taps, cin=Cin, m2=M2)
    out = pl.pallas_call(
        kern,
        out_shape=jax.ShapeDtypeStruct((N, M2, Cout), jnp.bfloat16),
        grid=(N,),
        in_specs=[pl.BlockSpec((1, P, Cin), lambda n: (n, 0, 0)),
                  pl.BlockSpec((9 * Cin, Cout), lambda n: (0, 0)),
                  pl.BlockSpec((1, Cout), lambda n: (0, 0))],
        out_specs=pl.BlockSpec((1, M2, Cout), lambda n: (n, 0, 0)),
        compiler_params=_PARALLEL_1D,
    )(xflat, w9, b)
    # TODO(synk): for very large H*W, add spatial (row-halo) tiling instead of
    # one padded image per grid step to bound VMEM on v7x.
    return out.reshape(N, H, Wp, Cout)


# ----------------------------------------------------------------------------
# Parameters: conv weight (HWIO) + BatchNorm folded (eval-mode semantics)
# ----------------------------------------------------------------------------
def make_conv_params(key, cin, cout, k):
    kw, kg, kb, km, kv = jax.random.split(key, 5)
    fan_in = k * k * cin
    w = jax.random.normal(kw, (k, k, cin, cout), jnp.float32) / jnp.sqrt(fan_in)
    gamma = 1.0 + 0.1 * jax.random.normal(kg, (cout,), jnp.float32)
    beta = 0.1 * jax.random.normal(kb, (cout,), jnp.float32)
    mean = 0.1 * jax.random.normal(km, (cout,), jnp.float32)
    var = 0.5 + jax.random.uniform(kv, (cout,), jnp.float32)
    eps = 0.001
    scale = gamma / jnp.sqrt(var + eps)
    # Fold BN, then round weights to bf16 once so kernel and reference share
    # identical weight values (kernel stores them as bf16).
    w_folded = (w * scale).astype(jnp.bfloat16).astype(jnp.float32)
    b_folded = beta - mean * scale
    return w_folded, b_folded


def make_c3_params(key, c1, c2, n=1, e=0.5):
    c_ = int(c2 * e)
    keys = jax.random.split(key, 3 + 2 * n)
    return {
        "cv1": make_conv_params(keys[0], c1, c_, 1),
        "cv2": make_conv_params(keys[1], c1, c_, 1),
        "cv3": make_conv_params(keys[2], 2 * c_, c2, 1),
        # Bottleneck(c_, c_, e=1.0): cv1 is 1x1 c_->c_, cv2 is 3x3 c_->c_
        "m": [(make_conv_params(keys[3 + 2 * i], c_, c_, 1),
               make_conv_params(keys[4 + 2 * i], c_, c_, 3)) for i in range(n)],
    }


def prep_kernel_params(raw):
    """Reshape/cast folded params for the Pallas kernels (bf16 W, f32 bias)."""
    def p1x1(p):
        w, b = p
        cin, cout = w.shape[2], w.shape[3]
        return (w.reshape(cin, cout).astype(jnp.bfloat16),
                b.reshape(1, cout).astype(jnp.float32))

    def p3x3(p):
        w, b = p
        cin, cout = w.shape[2], w.shape[3]
        return (w.reshape(9 * cin, cout).astype(jnp.bfloat16),
                b.reshape(1, cout).astype(jnp.float32))

    w3, b3 = raw["cv3"]
    c_ = w3.shape[2] // 2
    c2 = w3.shape[3]
    return {
        "cv1": p1x1(raw["cv1"]),
        "cv2": p1x1(raw["cv2"]),
        # Split cv3's input channels: first half multiplies the m-path, second
        # half multiplies the cv2 path (matches torch.cat((m(cv1), cv2), 1)).
        "cv3": (w3[0, 0, :c_, :].astype(jnp.bfloat16),
                w3[0, 0, c_:, :].astype(jnp.bfloat16),
                b3.reshape(1, c2).astype(jnp.float32)),
        "m": [(p1x1(a), p3x3(b)) for (a, b) in raw["m"]],
    }


# ----------------------------------------------------------------------------
# C3 forward (NCHW in/out, NHWC + bf16 internally)
# ----------------------------------------------------------------------------
@functools.partial(jax.jit, static_argnames=("shortcut",))
def c3_forward(x_nchw, params, shortcut=True):
    x = jnp.transpose(x_nchw, (0, 2, 3, 1)).astype(jnp.bfloat16)   # NCHW -> NHWC
    N, H, W, _ = x.shape

    w1, b1 = params["cv1"]
    w2, b2 = params["cv2"]
    y1, y2 = conv1x1_dual_bn_silu(x, w1, b1, w2, b2)

    h = y1
    for (bcv1, bcv2) in params["m"]:
        t = conv1x1_bn_silu(h, *bcv1)
        u = conv3x3_bn_silu(t, *bcv2)[:, :, :W, :]       # drop padded-W cols
        h = (h + u) if shortcut else u                   # fused slice+add in XLA

    wa, wc, b3 = params["cv3"]
    out = conv1x1_concat_bn_silu(h, y2, wa, wc, b3, out_dtype=jnp.float32)
    return jnp.transpose(out, (0, 3, 1, 2))              # NHWC -> NCHW


# ----------------------------------------------------------------------------
# Pure-JAX reference (for correctness check); mirrors the bf16 rounding points
# of the kernel pipeline so the comparison isolates kernel correctness.
# ----------------------------------------------------------------------------
def _ref_conv(x, w, b):
    y = jax.lax.conv_general_dilated(
        x, w, window_strides=(1, 1), padding="SAME",
        dimension_numbers=("NHWC", "HWIO", "NHWC"))
    y = y + b
    return y * jax.nn.sigmoid(y)


def _q(v):
    return v.astype(jnp.bfloat16).astype(jnp.float32)


def c3_reference(x_nchw, raw, shortcut=True):
    x = _q(jnp.transpose(x_nchw, (0, 2, 3, 1)))
    y1 = _q(_ref_conv(x, *raw["cv1"]))
    y2 = _q(_ref_conv(x, *raw["cv2"]))
    h = y1
    for (a, b) in raw["m"]:
        t = _q(_ref_conv(h, *a))
        u = _q(_ref_conv(t, *b))
        h = _q(h + u) if shortcut else u
    out = _ref_conv(jnp.concatenate([h, y2], axis=-1), *raw["cv3"])
    return jnp.transpose(out, (0, 3, 1, 2))


# ----------------------------------------------------------------------------
if __name__ == "__main__":
    key = jax.random.PRNGKey(0)
    k_x, k_p = jax.random.split(key)

    N, C1, H, W = 2, 4, 16, 16
    C2, n_blocks = 4, 1

    x = jax.random.normal(k_x, (N, C1, H, W), jnp.float32)
    raw = make_c3_params(k_p, C1, C2, n=n_blocks, e=0.5)
    params = prep_kernel_params(raw)

    out = jax.block_until_ready(c3_forward(x, params, shortcut=True))
    ref = jax.block_until_ready(c3_reference(x, raw, shortcut=True))

    np.testing.assert_allclose(np.asarray(out), np.asarray(ref),
                               rtol=2e-2, atol=2e-2)
    assert out.shape == (N, C2, H, W)

    print("KERNEL_OK")
</pallas_src>

<mosaic_0001>
module attributes {stable_mosaic.version = 11 : i64} {
  func.func @_one_1x1_kernel(%arg0: i32, %arg1: memref<256x2xbf16, #tpu.memory_space<vmem>>, %arg2: memref<2x2xbf16, #tpu.memory_space<vmem>>, %arg3: memref<1x2xf32, #tpu.memory_space<vmem>>, %arg4: memref<256x2xbf16, #tpu.memory_space<vmem>>) attributes {dimension_semantics = [#tpu.dimension_semantics<parallel>], iteration_bounds = array<i64: 2>, scalar_prefetch = 0 : i64, scratch_operands = 0 : i64, tpu.core_type = #tpu.core_type<tc>, window_params = [{transform_indices = @transform_0, window_bounds = array<i64: 256, 2>}, {pipeline_mode = #tpu.pipeline_mode<synchronous>, transform_indices = @transform_1, window_bounds = array<i64: 2, 2>}, {pipeline_mode = #tpu.pipeline_mode<synchronous>, transform_indices = @transform_2, window_bounds = array<i64: 1, 2>}, {transform_indices = @transform_3, window_bounds = array<i64: 256, 2>}]} {
    %c0 = arith.constant 0 : index
    %c0_0 = arith.constant 0 : index
    %0 = vector.load %arg1[%c0, %c0_0] : memref<256x2xbf16, #tpu.memory_space<vmem>>, vector<256x2xbf16>
    %c0_1 = arith.constant 0 : index
    %c0_2 = arith.constant 0 : index
    %1 = vector.load %arg2[%c0_1, %c0_2] : memref<2x2xbf16, #tpu.memory_space<vmem>>, vector<2x2xbf16>
    %cst = arith.constant dense<0.000000e+00> : vector<256x2xf32>
    %2 = tpu.matmul %0, %1, %cst {dimension_numbers = #tpu.dot_dimension_numbers<[1], [0], [0], [1], [0, 0, 1, 1], [], []>} : vector<256x2xbf16>, vector<2x2xbf16>, vector<256x2xf32> -> vector<256x2xf32>
    %c0_3 = arith.constant 0 : index
    %c0_4 = arith.constant 0 : index
    %3 = vector.load %arg3[%c0_3, %c0_4] : memref<1x2xf32, #tpu.memory_space<vmem>>, vector<1x2xf32>
    %4 = vector.broadcast %3 : vector<1x2xf32> to vector<256x2xf32>
    %5 = arith.addf %2, %4 : vector<256x2xf32>
    %6 = arith.negf %5 : vector<256x2xf32>
    %7 = math.exp %6 : vector<256x2xf32>
    %cst_5 = arith.constant 1.000000e+00 : f32
    %8 = vector.broadcast %cst_5 : f32 to vector<256x2xf32>
    %9 = arith.addf %8, %7 : vector<256x2xf32>
    %10 = arith.divf %8, %9 : vector<256x2xf32>
    %11 = arith.mulf %5, %10 : vector<256x2xf32>
    %12 = arith.truncf %11 : vector<256x2xf32> to vector<256x2xbf16>
    %c0_6 = arith.constant 0 : index
    %c0_7 = arith.constant 0 : index
    %13 = vector.load %arg4[%c0_6, %c0_7] : memref<256x2xbf16, #tpu.memory_space<vmem>>, vector<256x2xbf16>
    tpu.vector_store %arg4[%c0_6, %c0_7], %12 {strides = array<i32>} : memref<256x2xbf16, #tpu.memory_space<vmem>>, vector<256x2xbf16>,
    return
  }
  func.func @transform_0(%arg0: i32) -> (i32, i32) {
    %c0_i32 = arith.constant 0 : i32
    %c0_i32_0 = arith.constant 0 : i32
    return %arg0, %c0_i32 : i32, i32
  }
  func.func @transform_1(%arg0: i32) -> (i32, i32) {
    %c0_i32 = arith.constant 0 : i32
    %c0_i32_0 = arith.constant 0 : i32
    %c0_i32_1 = arith.constant 0 : i32
    return %c0_i32, %c0_i32_0 : i32, i32
  }
  func.func @transform_2(%arg0: i32) -> (i32, i32) {
    %c0_i32 = arith.constant 0 : i32
    %c0_i32_0 = arith.constant 0 : i32
    %c0_i32_1 = arith.constant 0 : i32
    return %c0_i32, %c0_i32_0 : i32, i32
  }
  func.func @transform_3(%arg0: i32) -> (i32, i32) {
    %c0_i32 = arith.constant 0 : i32
    %c0_i32_0 = arith.constant 0 : i32
    return %arg0, %c0_i32 : i32, i32
  }
}

module attributes {stable_mosaic.version = 11 : i64} {
  func.func @_dual_1x1_kernel(%arg0: i32, %arg1: memref<256x4xbf16, #tpu.memory_space<vmem>>, %arg2: memref<4x2xbf16, #tpu.memory_space<vmem>>, %arg3: memref<1x2xf32, #tpu.memory_space<vmem>>, %arg4: memref<4x2xbf16, #tpu.memory_space<vmem>>, %arg5: memref<1x2xf32, #tpu.memory_space<vmem>>, %arg6: memref<256x2xbf16, #tpu.memory_space<vmem>>, %arg7: memref<256x2xbf16, #tpu.memory_space<vmem>>) attributes {dimension_semantics = [#tpu.dimension_semantics<parallel>], iteration_bounds = array<i64: 2>, scalar_prefetch = 0 : i64, scratch_operands = 0 : i64, tpu.core_type = #tpu.core_type<tc>, window_params = [{transform_indices = @transform_0, window_bounds = array<i64: 256, 4>}, {pipeline_mode = #tpu.pipeline_mode<synchronous>, transform_indices = @transform_1, window_bounds = array<i64: 4, 2>}, {pipeline_mode = #tpu.pipeline_mode<synchronous>, transform_indices = @transform_2, window_bounds = array<i64: 1, 2>}, {pipeline_mode = #tpu.pipeline_mode<synchronous>, transform_indices = @transform_3, window_bounds = array<i64: 4, 2>}, {pipeline_mode = #tpu.pipeline_mode<synchronous>, transform_indices = @transform_4, window_bounds = array<i64: 1, 2>}, {transform_indices = @transform_5, window_bounds = array<i64: 256, 2>}, {transform_indices = @transform_6, window_bounds = array<i64: 256, 2>}]} {
    %c0 = arith.constant 0 : index
    %c0_0 = arith.constant 0 : index
    %0 = vector.load %arg1[%c0, %c0_0] : memref<256x4xbf16, #tpu.memory_space<vmem>>, vector<256x4xbf16>
    %c0_1 = arith.constant 0 : index
    %c0_2 = arith.constant 0 : index
    %1 = vector.load %arg2[%c0_1, %c0_2] : memref<4x2xbf16, #tpu.memory_space<vmem>>, vector<4x2xbf16>
    %cst = arith.constant dense<0.000000e+00> : vector<256x2xf32>
    %2 = tpu.matmul %0, %1, %cst {dimension_numbers = #tpu.dot_dimension_numbers<[1], [0], [0], [1], [0, 0, 1, 1], [], []>} : vector<256x4xbf16>, vector<4x2xbf16>, vector<256x2xf32> -> vector<256x2xf32>
    %c0_3 = arith.constant 0 : index
    %c0_4 = arith.constant 0 : index
    %3 = vector.load %arg3[%c0_3, %c0_4] : memref<1x2xf32, #tpu.memory_space<vmem>>, vector<1x2xf32>
    %4 = vector.broadcast %3 : vector<1x2xf32> to vector<256x2xf32>
    %5 = arith.addf %2, %4 : vector<256x2xf32>
    %c0_5 = arith.constant 0 : index
    %c0_6 = arith.constant 0 : index
    %6 = vector.load %arg4[%c0_5, %c0_6] : memref<4x2xbf16, #tpu.memory_space<vmem>>, vector<4x2xbf16>
    %cst_7 = arith.constant dense<0.000000e+00> : vector<256x2xf32>
    %7 = tpu.matmul %0, %6, %cst_7 {dimension_numbers = #tpu.dot_dimension_numbers<[1], [0], [0], [1], [0, 0, 1, 1], [], []>} : vector<256x4xbf16>, vector<4x2xbf16>, vector<256x2xf32> -> vector<256x2xf32>
    %c0_8 = arith.constant 0 : index
    %c0_9 = arith.constant 0 : index
    %8 = vector.load %arg5[%c0_8, %c0_9] : memref<1x2xf32, #tpu.memory_space<vmem>>, vector<1x2xf32>
    %9 = vector.broadcast %8 : vector<1x2xf32> to vector<256x2xf32>
    %10 = arith.addf %7, %9 : vector<256x2xf32>
    %11 = arith.negf %5 : vector<256x2xf32>
    %12 = math.exp %11 : vector<256x2xf32>
    %cst_10 = arith.constant 1.000000e+00 : f32
    %13 = vector.broadcast %cst_10 : f32 to vector<256x2xf32>
    %14 = arith.addf %13, %12 : vector<256x2xf32>
    %15 = arith.divf %13, %14 : vector<256x2xf32>
    %16 = arith.mulf %5, %15 : vector<256x2xf32>
    %17 = arith.truncf %16 : vector<256x2xf32> to vector<256x2xbf16>
    %c0_11 = arith.constant 0 : index
    %c0_12 = arith.constant 0 : index
    %18 = vector.load %arg6[%c0_11, %c0_12] : memref<256x2xbf16, #tpu.memory_space<vmem>>, vector<256x2xbf16>
    tpu.vector_store %arg6[%c0_11, %c0_12], %17 {strides = array<i32>} : memref<256x2xbf16, #tpu.memory_space<vmem>>, vector<256x2xbf16>,
    %19 = arith.negf %10 : vector<256x2xf32>
    %20 = math.exp %19 : vector<256x2xf32>
    %cst_13 = arith.constant 1.000000e+00 : f32
    %21 = vector.broadcast %cst_13 : f32 to vector<256x2xf32>
    %22 = arith.addf %21, %20 : vector<256x2xf32>
    %23 = arith.divf %21, %22 : vector<256x2xf32>
    %24 = arith.mulf %10, %23 : vector<256x2xf32>
    %25 = arith.truncf %24 : vector<256x2xf32> to vector<256x2xbf16>
    %c0_14 = arith.constant 0 : index
    %c0_15 = arith.constant 0 : index
    %26 = vector.load %arg7[%c0_14, %c0_15] : memref<256x2xbf16, #tpu.memory_space<vmem>>, vector<256x2xbf16>
    tpu.vector_store %arg7[%c0_14, %c0_15], %25 {strides = array<i32>} : memref<256x2xbf16, #tpu.memory_space<vmem>>, vector<256x2xbf16>,
    return
  }
  func.func @transform_0(%arg0: i32) -> (i32, i32) {
    %c0_i32 = arith.constant 0 : i32
    %c0_i32_0 = arith.constant 0 : i32
    return %arg0, %c0_i32 : i32, i32
  }
  func.func @transform_1(%arg0: i32) -> (i32, i32) {
    %c0_i32 = arith.constant 0 : i32
    %c0_i32_0 = arith.constant 0 : i32
    %c0_i32_1 = arith.constant 0 : i32
    return %c0_i32, %c0_i32_0 : i32, i32
  }
  func.func @transform_2(%arg0: i32) -> (i32, i32) {
    %c0_i32 = arith.constant 0 : i32
    %c0_i32_0 = arith.constant 0 : i32
    %c0_i32_1 = arith.constant 0 : i32
    return %c0_i32, %c0_i32_0 : i32, i32
  }
  func.func @transform_3(%arg0: i32) -> (i32, i32) {
    %c0_i32 = arith.constant 0 : i32
    %c0_i32_0 = arith.constant 0 : i32
    %c0_i32_1 = arith.constant 0 : i32
    return %c0_i32, %c0_i32_0 : i32, i32
  }
  func.func @transform_4(%arg0: i32) -> (i32, i32) {
    %c0_i32 = arith.constant 0 : i32
    %c0_i32_0 = arith.constant 0 : i32
    %c0_i32_1 = arith.constant 0 : i32
    return %c0_i32, %c0_i32_0 : i32, i32
  }
  func.func @transform_5(%arg0: i32) -> (i32, i32) {
    %c0_i32 = arith.constant 0 : i32
    %c0_i32_0 = arith.constant 0 : i32
    return %arg0, %c0_i32 : i32, i32
  }
  func.func @transform_6(%arg0: i32) -> (i32, i32) {
    %c0_i32 = arith.constant 0 : i32
    %c0_i32_0 = arith.constant 0 : i32
    return %arg0, %c0_i32 : i32, i32
  }
}

module attributes {stable_mosaic.version = 11 : i64} {
  func.func @_conv3x3_kernel(%arg0: i32, %arg1: memref<1x342x2xbf16, #tpu.memory_space<vmem>>, %arg2: memref<18x2xbf16, #tpu.memory_space<vmem>>, %arg3: memref<1x2xf32, #tpu.memory_space<vmem>>, %arg4: memref<1x288x2xbf16, #tpu.memory_space<vmem>>) attributes {dimension_semantics = [#tpu.dimension_semantics<parallel>], iteration_bounds = array<i64: 2>, scalar_prefetch = 0 : i64, scratch_operands = 0 : i64, tpu.core_type = #tpu.core_type<tc>, window_params = [{transform_indices = @transform_0, window_bounds = array<i64: 1, 342, 2>}, {pipeline_mode = #tpu.pipeline_mode<synchronous>, transform_indices = @transform_1, window_bounds = array<i64: 18, 2>}, {pipeline_mode = #tpu.pipeline_mode<synchronous>, transform_indices = @transform_2, window_bounds = array<i64: 1, 2>}, {transform_indices = @transform_3, window_bounds = array<i64: 1, 288, 2>}]} {
    %cst = arith.constant 0.000000e+00 : f32
    %0 = vector.broadcast %cst : f32 to vector<288x2xf32>
    %c0 = arith.constant 0 : index
    %c0_0 = arith.constant 0 : index
    %c0_1 = arith.constant 0 : index
    %1 = vector.load %arg1[%c0, %c0_0, %c0_1] : memref<1x342x2xbf16, #tpu.memory_space<vmem>>, vector<1x288x2xbf16>
    %2 = vector.shape_cast %1 : vector<1x288x2xbf16> to vector<288x2xbf16>
    %c0_2 = arith.constant 0 : index
    %c0_3 = arith.constant 0 : index
    %3 = vector.load %arg2[%c0_2, %c0_3] : memref<18x2xbf16, #tpu.memory_space<vmem>>, vector<2x2xbf16>
    %cst_4 = arith.constant dense<0.000000e+00> : vector<288x2xf32>
    %4 = tpu.matmul %2, %3, %cst_4 {dimension_numbers = #tpu.dot_dimension_numbers<[1], [0], [0], [1], [0, 0, 1, 1], [], []>} : vector<288x2xbf16>, vector<2x2xbf16>, vector<288x2xf32> -> vector<288x2xf32>
    %5 = arith.addf %0, %4 : vector<288x2xf32>
    %c0_5 = arith.constant 0 : index
    %c1 = arith.constant 1 : index
    %c0_6 = arith.constant 0 : index
    %6 = vector.load %arg1[%c0_5, %c1, %c0_6] : memref<1x342x2xbf16, #tpu.memory_space<vmem>>, vector<1x288x2xbf16>
    %7 = vector.shape_cast %6 : vector<1x288x2xbf16> to vector<288x2xbf16>
    %c2 = arith.constant 2 : index
    %c0_7 = arith.constant 0 : index
    %8 = vector.load %arg2[%c2, %c0_7] : memref<18x2xbf16, #tpu.memory_space<vmem>>, vector<2x2xbf16>
    %cst_8 = arith.constant dense<0.000000e+00> : vector<288x2xf32>
    %9 = tpu.matmul %7, %8, %cst_8 {dimension_numbers = #tpu.dot_dimension_numbers<[1], [0], [0], [1], [0, 0, 1, 1], [], []>} : vector<288x2xbf16>, vector<2x2xbf16>, vector<288x2xf32> -> vector<288x2xf32>
    %10 = arith.addf %5, %9 : vector<288x2xf32>
    %c0_9 = arith.constant 0 : index
    %c2_10 = arith.constant 2 : index
    %c0_11 = arith.constant 0 : index
    %11 = vector.load %arg1[%c0_9, %c2_10, %c0_11] : memref<1x342x2xbf16, #tpu.memory_space<vmem>>, vector<1x288x2xbf16>
    %12 = vector.shape_cast %11 : vector<1x288x2xbf16> to vector<288x2xbf16>
    %c4 = arith.constant 4 : index
    %c0_12 = arith.constant 0 : index
    %13 = vector.load %arg2[%c4, %c0_12] : memref<18x2xbf16, #tpu.memory_space<vmem>>, vector<2x2xbf16>
    %cst_13 = arith.constant dense<0.000000e+00> : vector<288x2xf32>
    %14 = tpu.matmul %12, %13, %cst_13 {dimension_numbers = #tpu.dot_dimension_numbers<[1], [0], [0], [1], [0, 0, 1, 1], [], []>} : vector<288x2xbf16>, vector<2x2xbf16>, vector<288x2xf32> -> vector<288x2xf32>
    %15 = arith.addf %10, %14 : vector<288x2xf32>
    %c0_14 = arith.constant 0 : index
    %c18 = arith.constant 18 : index
    %c0_15 = arith.constant 0 : index
    %16 = vector.load %arg1[%c0_14, %c18, %c0_15] : memref<1x342x2xbf16, #tpu.memory_space<vmem>>, vector<1x288x2xbf16>
    %17 = vector.shape_cast %16 : vector<1x288x2xbf16> to vector<288x2xbf16>
    %c6 = arith.constant 6 : index
    %c0_16 = arith.constant 0 : index
    %18 = vector.load %arg2[%c6, %c0_16] : memref<18x2xbf16, #tpu.memory_space<vmem>>, vector<2x2xbf16>
    %cst_17 = arith.constant dense<0.000000e+00> : vector<288x2xf32>
    %19 = tpu.matmul %17, %18, %cst_17 {dimension_numbers = #tpu.dot_dimension_numbers<[1], [0], [0], [1], [0, 0, 1, 1], [], []>} : vector<288x2xbf16>, vector<2x2xbf16>, vector<288x2xf32> -> vector<288x2xf32>
    %20 = arith.addf %15, %19 : vector<288x2xf32>
    %c0_18 = arith.constant 0 : index
    %c19 = arith.constant 19 : index
    %c0_19 = arith.constant 0 : index
    %21 = vector.load %arg1[%c0_18, %c19, %c0_19] : memref<1x342x2xbf16, #tpu.memory_space<vmem>>, vector<1x288x2xbf16>
    %22 = vector.shape_cast %21 : vector<1x288x2xbf16> to vector<288x2xbf16>
    %c8 = arith.constant 8 : index
    %c0_20 = arith.constant 0 : index
    %23 = vector.load %arg2[%c8, %c0_20] : memref<18x2xbf16, #tpu.memory_space<vmem>>, vector<2x2xbf16>
    %cst_21 = arith.constant dense<0.000000e+00> : vector<288x2xf32>
    %24 = tpu.matmul %22, %23, %cst_21 {dimension_numbers = #tpu.dot_dimension_numbers<[1], [0], [0], [1], [0, 0, 1, 1], [], []>} : vector<288x2xbf16>, vector<2x2xbf16>, vector<288x2xf32> -> vector<288x2xf32>
    %25 = arith.addf %20, %24 : vector<288x2xf32>
    %c0_22 = arith.constant 0 : index
    %c20 = arith.constant 20 : index
    %c0_23 = arith.constant 0 : index
    %26 = vector.load %arg1[%c0_22, %c20, %c0_23] : memref<1x342x2xbf16, #tpu.memory_space<vmem>>, vector<1x288x2xbf16>
    %27 = vector.shape_cast %26 : vector<1x288x2xbf16> to vector<288x2xbf16>
    %c10 = arith.constant 10 : index
    %c0_24 = arith.constant 0 : index
    %28 = vector.load %arg2[%c10, %c0_24] : memref<18x2xbf16, #tpu.memory_space<vmem>>, vector<2x2xbf16>
    %cst_25 = arith.constant dense<0.000000e+00> : vector<288x2xf32>
    %29 = tpu.matmul %27, %28, %cst_25 {dimension_numbers = #tpu.dot_dimension_numbers<[1], [0], [0], [1], [0, 0, 1, 1], [], []>} : vector<288x2xbf16>, vector<2x2xbf16>, vector<288x2xf32> -> vector<288x2xf32>
    %30 = arith.addf %25, %29 : vector<288x2xf32>
    %c0_26 = arith.constant 0 : index
    %c36 = arith.constant 36 : index
    %c0_27 = arith.constant 0 : index
    %31 = vector.load %arg1[%c0_26, %c36, %c0_27] : memref<1x342x2xbf16, #tpu.memory_space<vmem>>, vector<1x288x2xbf16>
    %32 = vector.shape_cast %31 : vector<1x288x2xbf16> to vector<288x2xbf16>
    %c12 = arith.constant 12 : index
    %c0_28 = arith.constant 0 : index
    %33 = vector.load %arg2[%c12, %c0_28] : memref<18x2xbf16, #tpu.memory_space<vmem>>, vector<2x2xbf16>
    %cst_29 = arith.constant dense<0.000000e+00> : vector<288x2xf32>
    %34 = tpu.matmul %32, %33, %cst_29 {dimension_numbers = #tpu.dot_dimension_numbers<[1], [0], [0], [1], [0, 0, 1, 1], [], []>} : vector<288x2xbf16>, vector<2x2xbf16>, vector<288x2xf32> -> vector<288x2xf32>
    %35 = arith.addf %30, %34 : vector<288x2xf32>
    %c0_30 = arith.constant 0 : index
    %c37 = arith.constant 37 : index
    %c0_31 = arith.constant 0 : index
    %36 = vector.load %arg1[%c0_30, %c37, %c0_31] : memref<1x342x2xbf16, #tpu.memory_space<vmem>>, vector<1x288x2xbf16>
    %37 = vector.shape_cast %36 : vector<1x288x2xbf16> to vector<288x2xbf16>
    %c14 = arith.constant 14 : index
    %c0_32 = arith.constant 0 : index
    %38 = vector.load %arg2[%c14, %c0_32] : memref<18x2xbf16, #tpu.memory_space<vmem>>, vector<2x2xbf16>
    %cst_33 = arith.constant dense<0.000000e+00> : vector<288x2xf32>
    %39 = tpu.matmul %37, %38, %cst_33 {dimension_numbers = #tpu.dot_dimension_numbers<[1], [0], [0], [1], [0, 0, 1, 1], [], []>} : vector<288x2xbf16>, vector<2x2xbf16>, vector<288x2xf32> -> vector<288x2xf32>
    %40 = arith.addf %35, %39 : vector<288x2xf32>
    %c0_34 = arith.constant 0 : index
    %c38 = arith.constant 38 : index
    %c0_35 = arith.constant 0 : index
    %41 = vector.load %arg1[%c0_34, %c38, %c0_35] : memref<1x342x2xbf16, #tpu.memory_space<vmem>>, vector<1x288x2xbf16>
    %42 = vector.shape_cast %41 : vector<1x288x2xbf16> to vector<288x2xbf16>
    %c16 = arith.constant 16 : index
    %c0_36 = arith.constant 0 : index
    %43 = vector.load %arg2[%c16, %c0_36] : memref<18x2xbf16, #tpu.memory_space<vmem>>, vector<2x2xbf16>
    %cst_37 = arith.constant dense<0.000000e+00> : vector<288x2xf32>
    %44 = tpu.matmul %42, %43, %cst_37 {dimension_numbers = #tpu.dot_dimension_numbers<[1], [0], [0], [1], [0, 0, 1, 1], [], []>} : vector<288x2xbf16>, vector<2x2xbf16>, vector<288x2xf32> -> vector<288x2xf32>
    %45 = arith.addf %40, %44 : vector<288x2xf32>
    %c0_38 = arith.constant 0 : index
    %c0_39 = arith.constant 0 : index
    %46 = vector.load %arg3[%c0_38, %c0_39] : memref<1x2xf32, #tpu.memory_space<vmem>>, vector<1x2xf32>
    %47 = vector.broadcast %46 : vector<1x2xf32> to vector<288x2xf32>
    %48 = arith.addf %45, %47 : vector<288x2xf32>
    %49 = arith.negf %48 : vector<288x2xf32>
    %50 = math.exp %49 : vector<288x2xf32>
    %cst_40 = arith.constant 1.000000e+00 : f32
    %51 = vector.broadcast %cst_40 : f32 to vector<288x2xf32>
    %52 = arith.addf %51, %50 : vector<288x2xf32>
    %53 = arith.divf %51, %52 : vector<288x2xf32>
    %54 = arith.mulf %48, %53 : vector<288x2xf32>
    %55 = arith.truncf %54 : vector<288x2xf32> to vector<288x2xbf16>
    %c0_41 = arith.constant 0 : index
    %c0_42 = arith.constant 0 : index
    %c0_43 = arith.constant 0 : index
    %56 = vector.load %arg4[%c0_41, %c0_42, %c0_43] : memref<1x288x2xbf16, #tpu.memory_space<vmem>>, vector<1x288x2xbf16>
    %57 = vector.shape_cast %56 : vector<1x288x2xbf16> to vector<288x2xbf16>
    %58 = vector.shape_cast %55 : vector<288x2xbf16> to vector<1x288x2xbf16>
    tpu.vector_store %arg4[%c0_41, %c0_42, %c0_43], %58 {strides = array<i32>} : memref<1x288x2xbf16, #tpu.memory_space<vmem>>, vector<1x288x2xbf16>,
    return
  }
  func.func @transform_0(%arg0: i32) -> (i32, i32, i32) {
    %c0_i32 = arith.constant 0 : i32
    %c0_i32_0 = arith.constant 0 : i32
    %c0_i32_1 = arith.constant 0 : i32
    return %arg0, %c0_i32, %c0_i32_0 : i32, i32, i32
  }
  func.func @transform_1(%arg0: i32) -> (i32, i32) {
    %c0_i32 = arith.constant 0 : i32
    %c0_i32_0 = arith.constant 0 : i32
    %c0_i32_1 = arith.constant 0 : i32
    return %c0_i32, %c0_i32_0 : i32, i32
  }
  func.func @transform_2(%arg0: i32) -> (i32, i32) {
    %c0_i32 = arith.constant 0 : i32
    %c0_i32_0 = arith.constant 0 : i32
    %c0_i32_1 = arith.constant 0 : i32
    return %c0_i32, %c0_i32_0 : i32, i32
  }
  func.func @transform_3(%arg0: i32) -> (i32, i32, i32) {
    %c0_i32 = arith.constant 0 : i32
    %c0_i32_0 = arith.constant 0 : i32
    %c0_i32_1 = arith.constant 0 : i32
    return %arg0, %c0_i32, %c0_i32_0 : i32, i32, i32
  }
}

module attributes {stable_mosaic.version = 11 : i64} {
  func.func @_concat_1x1_kernel(%arg0: i32, %arg1: memref<256x2xbf16, #tpu.memory_space<vmem>>, %arg2: memref<256x2xbf16, #tpu.memory_space<vmem>>, %arg3: memref<2x4xbf16, #tpu.memory_space<vmem>>, %arg4: memref<2x4xbf16, #tpu.memory_space<vmem>>, %arg5: memref<1x4xf32, #tpu.memory_space<vmem>>, %arg6: memref<256x4xf32, #tpu.memory_space<vmem>>) attributes {dimension_semantics = [#tpu.dimension_semantics<parallel>], iteration_bounds = array<i64: 2>, scalar_prefetch = 0 : i64, scratch_operands = 0 : i64, tpu.core_type = #tpu.core_type<tc>, window_params = [{transform_indices = @transform_0, window_bounds = array<i64: 256, 2>}, {transform_indices = @transform_1, window_bounds = array<i64: 256, 2>}, {pipeline_mode = #tpu.pipeline_mode<synchronous>, transform_indices = @transform_2, window_bounds = array<i64: 2, 4>}, {pipeline_mode = #tpu.pipeline_mode<synchronous>, transform_indices = @transform_3, window_bounds = array<i64: 2, 4>}, {pipeline_mode = #tpu.pipeline_mode<synchronous>, transform_indices = @transform_4, window_bounds = array<i64: 1, 4>}, {transform_indices = @transform_5, window_bounds = array<i64: 256, 4>}]} {
    %c0 = arith.constant 0 : index
    %c0_0 = arith.constant 0 : index
    %0 = vector.load %arg1[%c0, %c0_0] : memref<256x2xbf16, #tpu.memory_space<vmem>>, vector<256x2xbf16>
    %c0_1 = arith.constant 0 : index
    %c0_2 = arith.constant 0 : index
    %1 = vector.load %arg3[%c0_1, %c0_2] : memref<2x4xbf16, #tpu.memory_space<vmem>>, vector<2x4xbf16>
    %cst = arith.constant dense<0.000000e+00> : vector<256x4xf32>
    %2 = tpu.matmul %0, %1, %cst {dimension_numbers = #tpu.dot_dimension_numbers<[1], [0], [0], [1], [0, 0, 1, 1], [], []>} : vector<256x2xbf16>, vector<2x4xbf16>, vector<256x4xf32> -> vector<256x4xf32>
    %c0_3 = arith.constant 0 : index
    %c0_4 = arith.constant 0 : index
    %3 = vector.load %arg2[%c0_3, %c0_4] : memref<256x2xbf16, #tpu.memory_space<vmem>>, vector<256x2xbf16>
    %c0_5 = arith.constant 0 : index
    %c0_6 = arith.constant 0 : index
    %4 = vector.load %arg4[%c0_5, %c0_6] : memref<2x4xbf16, #tpu.memory_space<vmem>>, vector<2x4xbf16>
    %cst_7 = arith.constant dense<0.000000e+00> : vector<256x4xf32>
    %5 = tpu.matmul %3, %4, %cst_7 {dimension_numbers = #tpu.dot_dimension_numbers<[1], [0], [0], [1], [0, 0, 1, 1], [], []>} : vector<256x2xbf16>, vector<2x4xbf16>, vector<256x4xf32> -> vector<256x4xf32>
    %6 = arith.addf %2, %5 : vector<256x4xf32>
    %c0_8 = arith.constant 0 : index
    %c0_9 = arith.constant 0 : index
    %7 = vector.load %arg5[%c0_8, %c0_9] : memref<1x4xf32, #tpu.memory_space<vmem>>, vector<1x4xf32>
    %8 = vector.broadcast %7 : vector<1x4xf32> to vector<256x4xf32>
    %9 = arith.addf %6, %8 : vector<256x4xf32>
    %10 = arith.negf %9 : vector<256x4xf32>
    %11 = math.exp %10 : vector<256x4xf32>
    %cst_10 = arith.constant 1.000000e+00 : f32
    %12 = vector.broadcast %cst_10 : f32 to vector<256x4xf32>
    %13 = arith.addf %12, %11 : vector<256x4xf32>
    %14 = arith.divf %12, %13 : vector<256x4xf32>
    %15 = arith.mulf %9, %14 : vector<256x4xf32>
    %c0_11 = arith.constant 0 : index
    %c0_12 = arith.constant 0 : index
    %16 = vector.load %arg6[%c0_11, %c0_12] : memref<256x4xf32, #tpu.memory_space<vmem>>, vector<256x4xf32>
    tpu.vector_store %arg6[%c0_11, %c0_12], %15 {strides = array<i32>} : memref<256x4xf32, #tpu.memory_space<vmem>>, vector<256x4xf32>,
    return
  }
  func.func @transform_0(%arg0: i32) -> (i32, i32) {
    %c0_i32 = arith.constant 0 : i32
    %c0_i32_0 = arith.constant 0 : i32
    return %arg0, %c0_i32 : i32, i32
  }
  func.func @transform_1(%arg0: i32) -> (i32, i32) {
    %c0_i32 = arith.constant 0 : i32
    %c0_i32_0 = arith.constant 0 : i32
    return %arg0, %c0_i32 : i32, i32
  }
  func.func @transform_2(%arg0: i32) -> (i32, i32) {
    %c0_i32 = arith.constant 0 : i32
    %c0_i32_0 = arith.constant 0 : i32
    %c0_i32_1 = arith.constant 0 : i32
    return %c0_i32, %c0_i32_0 : i32, i32
  }
  func.func @transform_3(%arg0: i32) -> (i32, i32) {
    %c0_i32 = arith.constant 0 : i32
    %c0_i32_0 = arith.constant 0 : i32
    %c0_i32_1 = arith.constant 0 : i32
    return %c0_i32, %c0_i32_0 : i32, i32
  }
  func.func @transform_4(%arg0: i32) -> (i32, i32) {
    %c0_i32 = arith.constant 0 : i32
    %c0_i32_0 = arith.constant 0 : i32
    %c0_i32_1 = arith.constant 0 : i32
    return %c0_i32, %c0_i32_0 : i32, i32
  }
  func.func @transform_5(%arg0: i32) -> (i32, i32) {
    %c0_i32 = arith.constant 0 : i32
    %c0_i32_0 = arith.constant 0 : i32
    return %arg0, %c0_i32 : i32, i32
  }
}

</mosaic_0001>

<bundles_post_ra>
// kernel: c3_forward.5
= control target key start
LH: loop header
LB: loop body
LE: loop exit
PB: predicated region body
PF: predicated region fallthrough
CT: control target
= control target key end

     0   :  { %s1325_s12 = smov 0   ;;  %s1617_s0 = inlined_call_operand.vmem [shape: bf16[512,2], index: 0, kind: input, shape index: {}]   ;;  %s1618_s1 = inlined_call_operand.vmem [shape: bf16[2,2], index: 1, kind: input, shape index: {}]   ;;  %s1619_s2 = inlined_call_operand.vmem [shape: f32[1,2], index: 2, kind: input, shape index: {}]   ;;  %s1620_s3 = inlined_call_operand.vmem [shape: bf16[512,2], index: 3, kind: output, shape index: {}]  }
   0x1 LB: > { %s950_s13 = sadd.s32 4294967295, %s1303_s12   ;;  %p954_p0 = scmp.ge.s32.totalorder %s1303_s12, 1  ;;  %s1303_s12 = sphi %s1325_s12, %s13_s12  }
   0x2   : > { %p138_p1 = scmp.lt.s32.totalorder %s1303_s12, 3 }
   0x4   : > { %p139_p2 = pnand %p954_p0, %p138_p1 }
   0x5   : > { %s955_s16 = sshll.u32 (!%p139_p2), %s950_s13, 5 }
   0x6   : > { %142 = sbr.rel (%p139_p2) target bundleno = 295 (0x127), region = 32  ;;  %p163_p3 = scmp.lt.s32.totalorder (!%p139_p2), %s955_s16, 63 }
   0xb   : > { %v207_v0 = vld [vmem:[%s1618_s1] sm:$0x1]  ;;  %vm344_vm0 = vcmask 1040384   ;;  %s1622_s16 = smov (!%p163_p3, %s955_s16), 63  ;;  %vm295_vm1 = vcmask 15360   ;;  %vm861_vm2 = vcmask 11264  }
   0xc   : > { %1143 = vmatprep.subr.msk.bf16.mxu0 %vm344_vm0, %v207_v0  ;;  %1144 = vmatprep.subr.msk.bf16.mxu1 %vm344_vm0, %v207_v0  ;;  %v346_v1 = vsel %vm344_vm0, %v207_v0, 0  ;;  %s956_s17 = sshll.u32 %s1622_s16, 2  ;;  %v1381_v18 = vld [vmem:[%s1619_s2] ss:$0 sm:$0xff] }
   0xd   : > { %1108 = vmatpush3.bf16.msra.mxu0 %v346_v1  ;;  %1142 = vmatpush3.bf16.msra.mxu1 %v346_v1  ;;  %s1344_s20 = scalar_lea.vmem %s1617_s0, %s956_s17  ;;  %s1493_s25 = scalar_lea.vmem %s1620_s3, %s956_s17 }
   0xe   : > { %v1153_v2 = vld [vmem:[%s1344_s20] sm:$0xff]   ;;  %v1155_v4 = vld [vmem:[%s1344_s20 + $0x8] sm:$0xff]   ;;  %v1157_v6 = vld [vmem:[%s1344_s20 + $0x10] sm:$0xff]  }
   0xf   : > { %v1154_v3 = vld [vmem:[%s1344_s20 + $0x40] sm:$0xff]   ;;  %1109 = vmatprep.mubr.msk.bf16.mxu0 %vm295_vm1, %v1153_v2  ;;  %v1156_v5 = vld [vmem:[%s1344_s20 + $0x48] sm:$0xff]   ;;  %v1158_v7 = vld [vmem:[%s1344_s20 + $0x50] sm:$0xff]  }
  0x10   : > { %1125 = vmatprep.mubr.msk.bf16.mxu1 %vm295_vm1, %v1154_v3  ;;  %1110 = vmatmul.mubr.msk.bf16.vlgmr.msra.gmra.mxu0 %vm295_vm1, %v1155_v4  ;;  %v1159_v8 = vld [vmem:[%s1344_s20 + $0x18] sm:$0xff]   ;;  %v1161_v10 = vld [vmem:[%s1344_s20 + $0x20] sm:$0xff]   ;;  %v1163_v12 = vld [vmem:[%s1344_s20 + $0x28] sm:$0xff]  }
  0x11   : > { %1126 = vmatmul.mubr.msk.bf16.vlgmr.msra.gmra.mxu1 %vm295_vm1, %v1156_v5  ;;  %1113 = vmatprep.mubr.msk.bf16.mxu0 %vm295_vm1, %v1157_v6  ;;  %v1160_v9 = vld [vmem:[%s1344_s20 + $0x58] sm:$0xff]   ;;  %v1162_v11 = vld [vmem:[%s1344_s20 + $0x60] sm:$0xff]   ;;  %v1164_v13 = vld [vmem:[%s1344_s20 + $0x68] sm:$0xff]  }
  0x12   : > { %1129 = vmatprep.mubr.msk.bf16.mxu1 %vm295_vm1, %v1158_v7  ;;  %v1165_v14 = vld [vmem:[%s1344_s20 + $0x30] sm:$0xff]   ;;  %v1167_v16 = vld [vmem:[%s1344_s20 + $0x38] sm:$0xff]  }
  0x13   : > { %v1166_v15 = vld [vmem:[%s1344_s20 + $0x70] sm:$0xff]   ;;  %v1168_v17 = vld [vmem:[%s1344_s20 + $0x78] sm:$0xff]  }
  0x18   : > { %1114 = vmatmul.mubr.msk.bf16.gmra.mxu0 %vm295_vm1, %v1159_v8 }
  0x19   : > { %1130 = vmatmul.mubr.msk.bf16.gmra.mxu1 %vm295_vm1, %v1160_v9  ;;  %1117 = vmatprep.mubr.msk.bf16.mxu0 %vm295_vm1, %v1161_v10 }
  0x1a   : > { %1133 = vmatprep.mubr.msk.bf16.mxu1 %vm295_vm1, %v1162_v11 }
  0x20   : > { %1118 = vmatmul.mubr.msk.bf16.gmra.mxu0 %vm295_vm1, %v1163_v12 }
  0x21   : > { %1134 = vmatmul.mubr.msk.bf16.gmra.mxu1 %vm295_vm1, %v1164_v13  ;;  %1121 = vmatprep.mubr.msk.bf16.mxu0 %vm295_vm1, %v1165_v14 }
  0x22   : > { %1137 = vmatprep.mubr.msk.bf16.mxu1 %vm295_vm1, %v1166_v15 }
  0x28   : > { %1122 = vmatmul.mubr.msk.bf16.gmra.mxu0 %vm295_vm1, %v1167_v16 }
  0x29   : > { %1138 = vmatmul.mubr.msk.bf16.gmra.mxu1 %vm295_vm1, %v1168_v17 }
  0xd0   : > { %v1111_v19 = vpop.f32.mrf.mxu0 }
  0xd1   : > { %v1384_v20 = vadd.f32 %v1111_v19, %v1381_v18  ;;  %v1127_v21 = vpop.f32.mrf.mxu1 }
  0xd2   : > { %v1387_v22 = vadd.f32 %v1127_v21, %v1381_v18  ;;  %v382_v23 = vpop.f32.mrf.mxu0 }
  0xd3   : > { %v994_v24 = vmul.f32 -1.442695, %v1384_v20  ;;  %v1391_v25 = vadd.f32 %v1381_v18, %v382_v23  ;;  %v446_v26 = vpop.f32.mrf.mxu1 }
  0xd4   : > { %v1010_v27 = vmul.f32 -1.442695, %v1387_v22  ;;  %v1395_v28 = vadd.f32 %v1381_v18, %v446_v26  ;;  %v1112_v29 = vpop.f32.mrf.mxu0 }
  0xd5   : > { %1169 = vpow2.f32 %v994_v24  ;;  %v992_v30 = vmul.f32 -1.442695, %v1391_v25  ;;  %v1399_v31 = vadd.f32 %v1112_v29, %v1381_v18  ;;  %v1128_v32 = vpop.f32.mrf.mxu1 }
  0xd6   : > { %1171 = vpow2.f32 %v1010_v27  ;;  %v1008_v33 = vmul.f32 -1.442695, %v1395_v28  ;;  %v1403_v34 = vadd.f32 %v1128_v32, %v1381_v18  ;;  %v385_v35 = vpop.f32.mrf.mxu0 }
  0xd7   : > { %1173 = vpow2.f32 %v992_v30  ;;  %v995_v36 = vmul.f32 -1.442695, %v1399_v31  ;;  %v1407_v37 = vadd.f32 %v1381_v18, %v385_v35  ;;  %v449_v38 = vpop.f32.mrf.mxu1 }
  0xd8   : > { %1175 = vpow2.f32 %v1008_v33  ;;  %v1011_v39 = vmul.f32 -1.442695, %v1403_v34  ;;  %v1411_v40 = vadd.f32 %v1381_v18, %v449_v38  ;;  %v1115_v41 = vpop.f32.mrf.mxu0 }
  0xd9   : > { %1177 = vpow2.f32 %v995_v36  ;;  %v993_v42 = vmul.f32 -1.442695, %v1407_v37  ;;  %v1415_v43 = vadd.f32 %v1115_v41, %v1381_v18  ;;  %v1131_v44 = vpop.f32.mrf.mxu1 }
  0xda   : > { %1179 = vpow2.f32 %v1011_v39  ;;  %v1009_v45 = vmul.f32 -1.442695, %v1411_v40  ;;  %v1419_v46 = vadd.f32 %v1131_v44, %v1381_v18  ;;  %v398_v47 = vpop.f32.mrf.mxu0 }
  0xdb   : > { %1181 = vpow2.f32 %v993_v42  ;;  %v998_v48 = vmul.f32 -1.442695, %v1415_v43  ;;  %v1423_v49 = vadd.f32 %v1381_v18, %v398_v47  ;;  %v462_v50 = vpop.f32.mrf.mxu1 }
  0xdc   : > { %1183 = vpow2.f32 %v1009_v45  ;;  %v1014_v51 = vmul.f32 -1.442695, %v1419_v46  ;;  %v1427_v52 = vadd.f32 %v1381_v18, %v462_v50  ;;  %v1116_v53 = vpop.f32.mrf.mxu0 }
  0xdd   : > { %1185 = vpow2.f32 %v998_v48  ;;  %v996_v54 = vmul.f32 -1.442695, %v1423_v49  ;;  %v1431_v55 = vadd.f32 %v1116_v53, %v1381_v18  ;;  %v1132_v56 = vpop.f32.mrf.mxu1 }
  0xde   : > { %1187 = vpow2.f32 %v1014_v51  ;;  %v1012_v57 = vmul.f32 -1.442695, %v1427_v52  ;;  %v1435_v58 = vadd.f32 %v1132_v56, %v1381_v18  ;;  %v401_v59 = vpop.f32.mrf.mxu0 }
  0xdf   : > { %1189 = vpow2.f32 %v996_v54  ;;  %v999_v60 = vmul.f32 -1.442695, %v1431_v55  ;;  %v1439_v61 = vadd.f32 %v1381_v18, %v401_v59  ;;  %v465_v62 = vpop.f32.mrf.mxu1 }
  0xe0   : > { %1191 = vpow2.f32 %v1012_v57  ;;  %v1015_v63 = vmul.f32 -1.442695, %v1435_v58  ;;  %v1443_v0 = vadd.f32 %v1381_v18, %v465_v62  ;;  %v1119_v1 = vpop.f32.mrf.mxu0 }
  0xe1   : > { %1193 = vpow2.f32 %v999_v60  ;;  %v997_v2 = vmul.f32 -1.442695, %v1439_v61  ;;  %v1135_v3 = vpop.f32.mrf.mxu1  ;;  %v1448_v26 = vadd.f32 %v1119_v1, %v1381_v18 }
  0xe2   : > { %v1170_v4 = vpop.eup %1169  ;;  %1195 = vpow2.f32 %v1015_v63  ;;  %v1013_v5 = vmul.f32 -1.442695, %v1443_v0  ;;  %v414_v6 = vpop.f32.mrf.mxu0  ;;  %v1451_v36 = vadd.f32 %v1135_v3, %v1381_v18 }
  0xe3   : > { %v1172_v7 = vpop.eup %1171  ;;  %v607_v8 = vadd.f32 1.0, %v1170_v4  ;;  %1197 = vpow2.f32 %v997_v2  ;;  %v478_v9 = vpop.f32.mrf.mxu1  ;;  %v1454_v41 = vadd.f32 %v1381_v18, %v414_v6  ;;  %v1002_v45 = vmul.f32 -1.442695, %v1448_v26 }
  0xe4   : > { %v1174_v10 = vpop.eup %1173  ;;  %v623_v11 = vadd.f32 1.0, %v1172_v7  ;;  %1199 = vpow2.f32 %v1013_v5  ;;  %v1120_v12 = vpop.f32.mrf.mxu0  ;;  %v1458_v51 = vadd.f32 %v1381_v18, %v478_v9  ;;  %v1018_v59 = vmul.f32 -1.442695, %v1451_v36 }
  0xe5   : > { %v1176_v13 = vpop.eup %1175  ;;  %1201 = vrcp.f32 %v607_v8  ;;  %v605_v14 = vadd.f32 1.0, %v1174_v10  ;;  %v1136_v15 = vpop.f32.mrf.mxu1  ;;  %v1461_v53 = vadd.f32 %v1120_v12, %v1381_v18  ;;  %v1000_v1 = vmul.f32 -1.442695, %v1454_v41 }
  0xe6   : > { %v1178_v16 = vpop.eup %1177  ;;  %1203 = vrcp.f32 %v623_v11  ;;  %v621_v17 = vadd.f32 1.0, %v1176_v13  ;;  %v417_v27 = vpop.f32.mrf.mxu0  ;;  %v1465_v60 = vadd.f32 %v1136_v15, %v1381_v18  ;;  %v1016_v10 = vmul.f32 -1.442695, %v1458_v51 }
  0xe7   : > { %v1180_v19 = vpop.eup %1179  ;;  %1205 = vrcp.f32 %v605_v14  ;;  %v608_v21 = vadd.f32 1.0, %v1178_v16  ;;  %v481_v32 = vpop.f32.mrf.mxu1  ;;  %v1469_v2 = vadd.f32 %v1381_v18, %v417_v27  ;;  %v1003_v11 = vmul.f32 -1.442695, %v1461_v53 }
  0xe8   : > { %v1182_v23 = vpop.eup %1181  ;;  %1207 = vrcp.f32 %v621_v17  ;;  %v624_v24 = vadd.f32 1.0, %v1180_v19  ;;  %v1123_v47 = vpop.f32.mrf.mxu0  ;;  %v1472_v5 = vadd.f32 %v1381_v18, %v481_v32  ;;  %v1019_v15 = vmul.f32 -1.442695, %v1465_v60 }
  0xe9   : > { %v1184_v29 = vpop.eup %1183  ;;  %1209 = vrcp.f32 %v608_v21  ;;  %v606_v30 = vadd.f32 1.0, %v1182_v23  ;;  %v1139_v54 = vpop.f32.mrf.mxu1  ;;  %v1475_v6 = vadd.f32 %v1123_v47, %v1381_v18  ;;  %v1001_v21 = vmul.f32 -1.442695, %v1469_v2 }
  0xea   : > { %v1186_v33 = vpop.eup %1185  ;;  %1211 = vrcp.f32 %v624_v24  ;;  %v622_v35 = vadd.f32 1.0, %v1184_v29  ;;  %v430_v7 = vpop.f32.mrf.mxu0  ;;  %v1481_v16 = vadd.f32 %v1139_v54, %v1381_v18  ;;  %v1017_v29 = vmul.f32 -1.442695, %v1472_v5 }
  0xeb   : > { %v1188_v38 = vpop.eup %1187  ;;  %1213 = vrcp.f32 %v606_v30  ;;  %v611_v39 = vadd.f32 1.0, %v1186_v33  ;;  %v494_v12 = vpop.f32.mrf.mxu1  ;;  %v1486_v23 = vadd.f32 %v1381_v18, %v430_v7 }
  0xec   : > { %v1190_v42 = vpop.eup %1189  ;;  %1215 = vrcp.f32 %v622_v35  ;;  %v627_v44 = vadd.f32 1.0, %v1188_v38  ;;  %v1124_v30 = vpop.f32.mrf.mxu0  ;;  %v1500_v38 = vadd.f32 %v1381_v18, %v494_v12  ;;  %v1022_v47 = vmul.f32 -1.442695, %v1481_v16 }
  0xed   : > { %v1192_v48 = vpop.eup %1191  ;;  %1217 = vrcp.f32 %v611_v39  ;;  %v609_v50 = vadd.f32 1.0, %v1190_v42  ;;  %v1140_v39 = vpop.f32.mrf.mxu1 }
  0xee   : > { %v1194_v56 = vpop.eup %1193  ;;  %1219 = vrcp.f32 %v627_v44  ;;  %v625_v57 = vadd.f32 1.0, %v1192_v48 }
  0xef   : > { %v1196_v62 = vpop.eup %1195  ;;  %1221 = vrcp.f32 %v609_v50  ;;  %v612_v63 = vadd.f32 1.0, %v1194_v56 }
  0xf0   : > { %v1198_v3 = vpop.eup %1197  ;;  %1223 = vrcp.f32 %v625_v57  ;;  %v628_v4 = vadd.f32 1.0, %v1196_v62  ;;  %v1512_v57 = vadd.f32 %v1124_v30, %v1381_v18 }
  0xf1   : > { %v1200_v8 = vpop.eup %1199  ;;  %1225 = vrcp.f32 %v612_v63  ;;  %v610_v9 = vadd.f32 1.0, %v1198_v3  ;;  %v497_v3 = vpop.f32.mrf.mxu1 }
  0xf2   : > { %v1202_v13 = vpop.eup %1201  ;;  %1227 = vrcp.f32 %v628_v4  ;;  %v626_v14 = vadd.f32 1.0, %v1200_v8  ;;  %v1522_v8 = vadd.f32 %v1140_v39, %v1381_v18 }
  0xf3   : > { %v1204_v17 = vpop.eup %1203  ;;  %v703_v19 = vmul.f32 %v1202_v13, %v1384_v20  ;;  %1229 = vrcp.f32 %v610_v9  ;;  %v1006_v20 = vmul.f32 -1.442695, %v1475_v6 }
  0xf4   : > { %v1206_v24 = vpop.eup %1205  ;;  %v719_v27 = vmul.f32 %v1204_v17, %v1387_v22  ;;  %1231 = vrcp.f32 %v626_v14  ;;  %v1534_v14 = vadd.f32 %v1381_v18, %v497_v3 }
  0xf5   : > { %v1208_v32 = vpop.eup %1207  ;;  %v1060_v33 = vpack.c.bf16 %v703_v19, %v703_v19  ;;  %v701_v35 = vmul.f32 %v1206_v24, %v1391_v25  ;;  %1233 = vpow2.f32 %v1002_v45  ;;  %v1004_v45 = vmul.f32 -1.442695, %v1486_v23 }
  0xf6   : > { %v1210_v42 = vpop.eup %1209  ;;  %v1076_v44 = vpack.c.bf16 %v719_v27, %v719_v27  ;;  %v717_v22 = vmul.f32 %v1208_v32, %v1395_v28  ;;  %1235 = vpow2.f32 %v1018_v59  ;;  %v433_v59 = vpop.f32.mrf.mxu0  ;;  %v1007_v19 = vmul.f32 -1.442695, %v1512_v57 }
  0xf7   : > { %v1212_v48 = vpop.eup %1211  ;;  %864 = vst.msk [vmem:[%s1493_s25 + $0x8] sm:$0xf] %vm861_vm2, %v1060_v33  ;;  %v1058_v50 = vpack.c.bf16 %v701_v35, %v701_v35  ;;  %v704_v25 = vmul.f32 %v1210_v42, %v1399_v31  ;;  %1237 = vpow2.f32 %v1000_v1  ;;  %v1020_v1 = vmul.f32 -1.442695, %v1500_v38 }
  0xf8   : > { %v1214_v54 = vpop.eup %1213  ;;  %880 = vst.msk [vmem:[%s1493_s25 + $0x48] sm:$0xf] %vm861_vm2, %v1076_v44  ;;  %v1074_v56 = vpack.c.bf16 %v717_v22, %v717_v22  ;;  %v720_v28 = vmul.f32 %v1212_v48, %v1403_v34  ;;  %1239 = vpow2.f32 %v1016_v10  ;;  %v1021_v33 = vmul.f32 -1.442695, %v1534_v14 }
  0xf9   : > { %v1216_v62 = vpop.eup %1215  ;;  %862 = vst.msk [vmem:[%s1493_s25] sm:$0xf] %vm861_vm2, %v1058_v50  ;;  %v1061_v31 = vpack.c.bf16 %v704_v25, %v704_v25  ;;  %v702_v63 = vmul.f32 %v1214_v54, %v1407_v37  ;;  %1241 = vpow2.f32 %v1003_v11  ;;  %v1528_v11 = vadd.f32 %v1381_v18, %v433_v59 }
  0xfa   : > { %v1218_v4 = vpop.eup %1217  ;;  %878 = vst.msk [vmem:[%s1493_s25 + $0x40] sm:$0xf] %vm861_vm2, %v1074_v56  ;;  %v1077_v34 = vpack.c.bf16 %v720_v28, %v720_v28  ;;  %v718_v7 = vmul.f32 %v1216_v62, %v1411_v40  ;;  %1243 = vpow2.f32 %v1019_v15  ;;  %v1023_v18 = vmul.f32 -1.442695, %v1522_v8 }
  0xfb   : > { %v1220_v9 = vpop.eup %1219  ;;  %865 = vst.msk [vmem:[%s1493_s25 + $0xc] sm:$0xf] %vm861_vm2, %v1061_v31  ;;  %v1059_v37 = vpack.c.bf16 %v702_v63, %v702_v63  ;;  %v707_v10 = vmul.f32 %v1218_v4, %v1415_v43  ;;  %1245 = vpow2.f32 %v1001_v21 }
  0xfc   : > { %v1222_v12 = vpop.eup %1221  ;;  %881 = vst.msk [vmem:[%s1493_s25 + $0x4c] sm:$0xf] %vm861_vm2, %v1077_v34  ;;  %v1075_v40 = vpack.c.bf16 %v718_v7, %v718_v7  ;;  %v723_v13 = vmul.f32 %v1220_v9, %v1419_v46  ;;  %1247 = vpow2.f32 %v1017_v29 }
  0xfd   : > { %v1224_v15 = vpop.eup %1223  ;;  %863 = vst.msk [vmem:[%s1493_s25 + $0x4] sm:$0xf] %vm861_vm2, %v1059_v37  ;;  %v1064_v43 = vpack.c.bf16 %v707_v10, %v707_v10  ;;  %v705_v17 = vmul.f32 %v1222_v12, %v1423_v49  ;;  %1249 = vpow2.f32 %v1006_v20  ;;  %v1005_v20 = vmul.f32 -1.442695, %v1528_v11 }
  0xfe   : > { %v1226_v21 = vpop.eup %1225  ;;  %879 = vst.msk [vmem:[%s1493_s25 + $0x44] sm:$0xf] %vm861_vm2, %v1075_v40  ;;  %v1080_v24 = vpack.c.bf16 %v723_v13, %v723_v13  ;;  %v721_v46 = vmul.f32 %v1224_v15, %v1427_v52  ;;  %1251 = vpow2.f32 %v1022_v47 }
  0xff   : > { %v1228_v27 = vpop.eup %1227  ;;  %868 = vst.msk [vmem:[%s1493_s25 + $0x18] sm:$0xf] %vm861_vm2, %v1064_v43  ;;  %v1062_v29 = vpack.c.bf16 %v705_v17, %v705_v17  ;;  %v708_v49 = vmul.f32 %v1226_v21, %v1431_v55  ;;  %1253 = vpow2.f32 %v1004_v45 }
 0x100   : > { %v1230_v30 = vpop.eup %1229  ;;  %884 = vst.msk [vmem:[%s1493_s25 + $0x58] sm:$0xf] %vm861_vm2, %v1080_v24  ;;  %v1078_v32 = vpack.c.bf16 %v721_v46, %v721_v46  ;;  %v724_v52 = vmul.f32 %v1228_v27, %v1435_v58  ;;  %1255 = vpow2.f32 %v1020_v1 }
 0x101   : > { %v1232_v35 = vpop.eup %1231  ;;  %866 = vst.msk [vmem:[%s1493_s25 + $0x10] sm:$0xf] %vm861_vm2, %v1062_v29  ;;  %v1065_v39 = vpack.c.bf16 %v708_v49, %v708_v49  ;;  %v706_v55 = vmul.f32 %v1230_v30, %v1439_v61  ;;  %1257 = vpow2.f32 %v1007_v19 }
 0x102   : > { %v1234_v42 = vpop.eup %1233  ;;  %882 = vst.msk [vmem:[%s1493_s25 + $0x50] sm:$0xf] %vm861_vm2, %v1078_v32  ;;  %v1081_v44 = vpack.c.bf16 %v724_v52, %v724_v52  ;;  %v722_v22 = vmul.f32 %v1232_v35, %v1443_v0  ;;  %1259 = vpow2.f32 %v1023_v18 }
 0x103   : > { %v1236_v58 = vpop.eup %1235  ;;  %869 = vst.msk [vmem:[%s1493_s25 + $0x1c] sm:$0xf] %vm861_vm2, %v1065_v39  ;;  %v1063_v47 = vpack.c.bf16 %v706_v55, %v706_v55  ;;  %v615_v48 = vadd.f32 1.0, %v1234_v42  ;;  %1261 = vpow2.f32 %v1005_v20 }
 0x104   : > { %v1238_v50 = vpop.eup %1237  ;;  %885 = vst.msk [vmem:[%s1493_s25 + $0x5c] sm:$0xf] %vm861_vm2, %v1081_v44  ;;  %v1079_v61 = vpack.c.bf16 %v722_v22, %v722_v22  ;;  %v631_v25 = vadd.f32 1.0, %v1236_v58  ;;  %1263 = vpow2.f32 %v1021_v33 }
 0x105   : > { %v1240_v45 = vpop.eup %1239  ;;  %867 = vst.msk [vmem:[%s1493_s25 + $0x14] sm:$0xf] %vm861_vm2, %v1063_v47  ;;  %1265 = vrcp.f32 %v615_v48  ;;  %v613_v54 = vadd.f32 1.0, %v1238_v50 }
 0x106   : > { %v1242_v0 = vpop.eup %1241  ;;  %883 = vst.msk [vmem:[%s1493_s25 + $0x54] sm:$0xf] %vm861_vm2, %v1079_v61  ;;  %1267 = vrcp.f32 %v631_v25  ;;  %v629_v56 = vadd.f32 1.0, %v1240_v45 }
 0x107   : > { %v1244_v28 = vpop.eup %1243  ;;  %1269 = vrcp.f32 %v613_v54  ;;  %v616_v59 = vadd.f32 1.0, %v1242_v0 }
 0x108   : > { %v1246_v62 = vpop.eup %1245  ;;  %1271 = vrcp.f32 %v629_v56  ;;  %v632_v31 = vadd.f32 1.0, %v1244_v28 }
 0x109   : > { %v1248_v63 = vpop.eup %1247  ;;  %1273 = vrcp.f32 %v616_v59  ;;  %v614_v1 = vadd.f32 1.0, %v1246_v62 }
 0x10a   : > { %v1250_v3 = vpop.eup %1249  ;;  %1275 = vrcp.f32 %v632_v31  ;;  %v630_v4 = vadd.f32 1.0, %v1248_v63 }
 0x10b   : > { %v1252_v34 = vpop.eup %1251  ;;  %1277 = vrcp.f32 %v614_v1  ;;  %v619_v7 = vadd.f32 1.0, %v1250_v3 }
 0x10c   : > { %v1254_v9 = vpop.eup %1253  ;;  %1279 = vrcp.f32 %v630_v4  ;;  %v635_v37 = vadd.f32 1.0, %v1252_v34 }
 0x10d   : > { %v1256_v10 = vpop.eup %1255  ;;  %1281 = vrcp.f32 %v619_v7  ;;  %v617_v12 = vadd.f32 1.0, %v1254_v9 }
 0x10e   : > { %v1258_v40 = vpop.eup %1257  ;;  %1283 = vrcp.f32 %v635_v37  ;;  %v633_v13 = vadd.f32 1.0, %v1256_v10 }
 0x10f   : > { %v1260_v15 = vpop.eup %1259  ;;  %1285 = vrcp.f32 %v617_v12  ;;  %v620_v43 = vadd.f32 1.0, %v1258_v40 }
 0x110   : > { %v1262_v17 = vpop.eup %1261  ;;  %1287 = vrcp.f32 %v633_v13  ;;  %v636_v19 = vadd.f32 1.0, %v1260_v15 }
 0x111   : > { %v1264_v21 = vpop.eup %1263  ;;  %1289 = vrcp.f32 %v620_v43  ;;  %v618_v24 = vadd.f32 1.0, %v1262_v17 }
 0x112   : > { %v1266_v46 = vpop.eup %1265  ;;  %1291 = vrcp.f32 %v636_v19  ;;  %v634_v18 = vadd.f32 1.0, %v1264_v21 }
 0x113   : > { %v1268_v27 = vpop.eup %1267  ;;  %v711_v29 = vmul.f32 %v1266_v46, %v1448_v26  ;;  %1293 = vrcp.f32 %v618_v24 }
 0x114   : > { %v1270_v49 = vpop.eup %1269  ;;  %v727_v20 = vmul.f32 %v1268_v27, %v1451_v36  ;;  %1295 = vrcp.f32 %v634_v18 }
 0x115   : > { %v1272_v30 = vpop.eup %1271  ;;  %v1068_v32 = vpack.c.bf16 %v711_v29, %v711_v29  ;;  %v709_v52 = vmul.f32 %v1270_v49, %v1454_v41 }
 0x116   : > { %v1274_v33 = vpop.eup %1273  ;;  %v1084_v35 = vpack.c.bf16 %v727_v20, %v727_v20  ;;  %v725_v39 = vmul.f32 %v1272_v30, %v1458_v51 }
 0x117   : > { %v1276_v55 = vpop.eup %1275  ;;  %872 = vst.msk [vmem:[%s1493_s25 + $0x28] sm:$0xf] %vm861_vm2, %v1068_v32  ;;  %v1066_v26 = vpack.c.bf16 %v709_v52, %v709_v52  ;;  %v712_v42 = vmul.f32 %v1274_v33, %v1461_v53 }
 0x118   : > { %v1278_v44 = vpop.eup %1277  ;;  %888 = vst.msk [vmem:[%s1493_s25 + $0x68] sm:$0xf] %vm861_vm2, %v1084_v35  ;;  %v1082_v36 = vpack.c.bf16 %v725_v39, %v725_v39  ;;  %v728_v22 = vmul.f32 %v1276_v55, %v1465_v60 }
 0x119   : > { %v1280_v41 = vpop.eup %1279  ;;  %870 = vst.msk [vmem:[%s1493_s25 + $0x20] sm:$0xf] %vm861_vm2, %v1066_v26  ;;  %v1069_v58 = vpack.c.bf16 %v712_v42, %v712_v42  ;;  %v710_v51 = vmul.f32 %v1278_v44, %v1469_v2 }
 0x11a   : > { %v1282_v47 = vpop.eup %1281  ;;  %886 = vst.msk [vmem:[%s1493_s25 + $0x60] sm:$0xf] %vm861_vm2, %v1082_v36  ;;  %v1085_v48 = vpack.c.bf16 %v728_v22, %v728_v22  ;;  %v726_v53 = vmul.f32 %v1280_v41, %v1472_v5 }
 0x11b   : > { %v1284_v50 = vpop.eup %1283  ;;  %873 = vst.msk [vmem:[%s1493_s25 + $0x2c] sm:$0xf] %vm861_vm2, %v1069_v58  ;;  %v1067_v61 = vpack.c.bf16 %v710_v51, %v710_v51  ;;  %v715_v60 = vmul.f32 %v1282_v47, %v1475_v6 }
 0x11c   : > { %v1286_v25 = vpop.eup %1285  ;;  %889 = vst.msk [vmem:[%s1493_s25 + $0x6c] sm:$0xf] %vm861_vm2, %v1085_v48  ;;  %v1083_v45 = vpack.c.bf16 %v726_v53, %v726_v53  ;;  %v731_v2 = vmul.f32 %v1284_v50, %v1481_v16 }
 0x11d   : > { %v1288_v54 = vpop.eup %1287  ;;  %871 = vst.msk [vmem:[%s1493_s25 + $0x24] sm:$0xf] %vm861_vm2, %v1067_v61  ;;  %v1072_v0 = vpack.c.bf16 %v715_v60, %v715_v60  ;;  %v713_v5 = vmul.f32 %v1286_v25, %v1486_v23 }
 0x11e   : > { %v1290_v56 = vpop.eup %1289  ;;  %887 = vst.msk [vmem:[%s1493_s25 + $0x64] sm:$0xf] %vm861_vm2, %v1083_v45  ;;  %v1088_v28 = vpack.c.bf16 %v731_v2, %v731_v2  ;;  %v729_v6 = vmul.f32 %v1288_v54, %v1500_v38 }
 0x11f   : > { %v1292_v59 = vpop.eup %1291  ;;  %876 = vst.msk [vmem:[%s1493_s25 + $0x38] sm:$0xf] %vm861_vm2, %v1072_v0  ;;  %v1070_v16 = vpack.c.bf16 %v713_v5, %v713_v5  ;;  %v716_v62 = vmul.f32 %v1290_v56, %v1512_v57 }
 0x120   : > { %v1294_v31 = vpop.eup %1293  ;;  %892 = vst.msk [vmem:[%s1493_s25 + $0x78] sm:$0xf] %vm861_vm2, %v1088_v28  ;;  %v1086_v23 = vpack.c.bf16 %v729_v6, %v729_v6  ;;  %v732_v63 = vmul.f32 %v1292_v59, %v1522_v8 }
 0x121   : > { %v1296_v1 = vpop.eup %1295  ;;  %874 = vst.msk [vmem:[%s1493_s25 + $0x30] sm:$0xf] %vm861_vm2, %v1070_v16  ;;  %v1073_v38 = vpack.c.bf16 %v716_v62, %v716_v62  ;;  %v714_v3 = vmul.f32 %v1294_v31, %v1528_v11 }
 0x122   : > { %890 = vst.msk [vmem:[%s1493_s25 + $0x70] sm:$0xf] %vm861_vm2, %v1086_v23  ;;  %v1089_v4 = vpack.c.bf16 %v732_v63, %v732_v63  ;;  %v730_v34 = vmul.f32 %v1296_v1, %v1534_v14 }
 0x123   : > { %877 = vst.msk [vmem:[%s1493_s25 + $0x3c] sm:$0xf] %vm861_vm2, %v1073_v38  ;;  %v1071_v57 = vpack.c.bf16 %v714_v3, %v714_v3 }
 0x124   : > { %893 = vst.msk [vmem:[%s1493_s25 + $0x7c] sm:$0xf] %vm861_vm2, %v1089_v4  ;;  %v1087_v7 = vpack.c.bf16 %v730_v34, %v730_v34 }
 0x125   : > { %875 = vst.msk [vmem:[%s1493_s25 + $0x34] sm:$0xf] %vm861_vm2, %v1071_v57 }
 0x126   : > { %891 = vst.msk [vmem:[%s1493_s25 + $0x74] sm:$0xf] %vm861_vm2, %v1087_v7 }
 0x127 PF: > { %s13_s12 = sadd.s32 1, %s1303_s12  }
 0x128   : > { %p10_p4 = scmp.ge.s32.totalorder %s13_s12, 4  }
 0x12a   :  { %12 = sbr.rel (!%p10_p4) target bundleno = 1 (0x1), region = 62 }

// kernel: c3_forward.4
= control target key start
LH: loop header
LB: loop body
LE: loop exit
PB: predicated region body
PF: predicated region fallthrough
CT: control target
= control target key end

     0   :  { %s2319_s21 = smov 0   ;;  %s2876_s0 = inlined_call_operand.vmem [shape: bf16[512,4], index: 0, kind: input, shape index: {}]   ;;  %s2877_s1 = inlined_call_operand.vmem [shape: bf16[4,2], index: 1, kind: input, shape index: {}]   ;;  %s2878_s2 = inlined_call_operand.vmem [shape: f32[1,2], index: 2, kind: input, shape index: {}]   ;;  %s2879_s3 = inlined_call_operand.vmem [shape: bf16[4,2], index: 3, kind: input, shape index: {}]   ;;  %s2880_s4 = inlined_call_operand.vmem [shape: f32[1,2], index: 4, kind: input, shape index: {}]   ;;  %s2881_s5 = inlined_call_operand.vmem [shape: bf16[512,2], index: 5, kind: output, shape index: {0}]   ;;  %s2882_s6 = inlined_call_operand.vmem [shape: bf16[512,2], index: 6, kind: output, shape index: {1}]  }
   0x1 LB: > { %s1635_s22 = sadd.s32 4294967295, %s2282_s21   ;;  %p1639_p0 = scmp.ge.s32.totalorder %s2282_s21, 1  ;;  %s2282_s21 = sphi %s2319_s21, %s17_s21  }
   0x2   : > { %p216_p1 = scmp.lt.s32.totalorder %s2282_s21, 3 }
   0x4   : > { %p217_p2 = pnand %p1639_p0, %p216_p1 }
   0x5   : > { %s1640_s27 = sshll.u32 (!%p217_p2), %s1635_s22, 5 }
   0x6   : > { %220 = sbr.rel (%p217_p2) target bundleno = 359 (0x167), region = 40  ;;  %p252_p3 = scmp.lt.s32.totalorder (!%p217_p2), %s1640_s27, 63 }
   0xb   : > { %v302_v0 = vld [vmem:[%s2877_s1] sm:$0x3]  ;;  %vm439_vm0 = vcmask 1041408   ;;  %s2884_s27 = smov (!%p252_p3, %s1640_s27), 63  ;;  %vm390_vm1 = vcmask 31744   ;;  %vm1128_vm2 = vcmask 11264  }
   0xc   : > { %v604_v1 = vld [vmem:[%s2879_s3] sm:$0x3]  ;;  %1992 = vmatprep.subr.msk.bf16.mxu0 %vm439_vm0, %v302_v0  ;;  %v441_v2 = vsel %vm439_vm0, %v302_v0, 0  ;;  %s2333_s28 = sshll.u32 %s2884_s27, 2 }
   0xd   : > { %1993 = vmatprep.subr.msk.bf16.mxu1 %vm439_vm0, %v604_v1  ;;  %v613_v3 = vsel %vm439_vm0, %v604_v1, 0  ;;  %1925 = vmatpush3.bf16.msra.mxu0 %v441_v2  ;;  %s2339_s7 = scalar_lea.vmem %s2876_s0, %s2333_s28  ;;  %v2392_v20 = vld [vmem:[%s2878_s2] ss:$0 sm:$0xff]  ;;  %s2508_s14 = scalar_lea.vmem %s2881_s5, %s2333_s28 }
   0xe   : > { %1959 = vmatpush3.bf16.msra.mxu1 %v613_v3  ;;  %v2002_v4 = vld [vmem:[%s2339_s7] sm:$0xff]   ;;  %v2003_v5 = vld [vmem:[%s2339_s7 + $0x8] sm:$0xff]   ;;  %v2004_v6 = vld [vmem:[%s2339_s7 + $0x10] sm:$0xff]   ;;  %s2517_s17 = scalar_lea.vmem %s2882_s6, %s2333_s28 }
   0xf   : > { %1926 = vmatprep.mubr.msk.bf16.mxu0 %vm390_vm1, %v2002_v4  ;;  %1960 = vmatprep.mubr.msk.bf16.mxu1 %vm390_vm1, %v2002_v4  ;;  %v2005_v7 = vld [vmem:[%s2339_s7 + $0x18] sm:$0xff]   ;;  %v2006_v8 = vld [vmem:[%s2339_s7 + $0x20] sm:$0xff]   ;;  %v2007_v9 = vld [vmem:[%s2339_s7 + $0x28] sm:$0xff]  }
  0x10   : > { %1927 = vmatmul.mubr.msk.bf16.vlgmr.msra.gmra.mxu0 %vm390_vm1, %v2003_v5  ;;  %v2008_v10 = vld [vmem:[%s2339_s7 + $0x30] sm:$0xff]   ;;  %v2009_v11 = vld [vmem:[%s2339_s7 + $0x38] sm:$0xff]   ;;  %v2010_v12 = vld [vmem:[%s2339_s7 + $0x40] sm:$0xff]  }
  0x11   : > { %1961 = vmatmul.mubr.msk.bf16.vlgmr.msra.gmra.mxu1 %vm390_vm1, %v2003_v5  ;;  %1930 = vmatprep.mubr.msk.bf16.mxu0 %vm390_vm1, %v2004_v6  ;;  %v2011_v13 = vld [vmem:[%s2339_s7 + $0x48] sm:$0xff]   ;;  %v2012_v14 = vld [vmem:[%s2339_s7 + $0x50] sm:$0xff]   ;;  %v2013_v15 = vld [vmem:[%s2339_s7 + $0x58] sm:$0xff]  }
  0x12   : > { %1964 = vmatprep.mubr.msk.bf16.mxu1 %vm390_vm1, %v2004_v6  ;;  %v2014_v16 = vld [vmem:[%s2339_s7 + $0x60] sm:$0xff]   ;;  %v2015_v17 = vld [vmem:[%s2339_s7 + $0x68] sm:$0xff]   ;;  %v2016_v18 = vld [vmem:[%s2339_s7 + $0x70] sm:$0xff]  }
  0x13   : > { %v2017_v19 = vld [vmem:[%s2339_s7 + $0x78] sm:$0xff]   ;;  %v2397_v21 = vld [vmem:[%s2880_s4] ss:$0 sm:$0xff] }
  0x18   : > { %1931 = vmatmul.mubr.msk.bf16.gmra.mxu0 %vm390_vm1, %v2005_v7 }
  0x19   : > { %1965 = vmatmul.mubr.msk.bf16.gmra.mxu1 %vm390_vm1, %v2005_v7  ;;  %1934 = vmatprep.mubr.msk.bf16.mxu0 %vm390_vm1, %v2006_v8 }
  0x1a   : > { %1968 = vmatprep.mubr.msk.bf16.mxu1 %vm390_vm1, %v2006_v8 }
  0x20   : > { %1935 = vmatmul.mubr.msk.bf16.gmra.mxu0 %vm390_vm1, %v2007_v9 }
  0x21   : > { %1969 = vmatmul.mubr.msk.bf16.gmra.mxu1 %vm390_vm1, %v2007_v9  ;;  %1938 = vmatprep.mubr.msk.bf16.mxu0 %vm390_vm1, %v2008_v10 }
  0x22   : > { %1972 = vmatprep.mubr.msk.bf16.mxu1 %vm390_vm1, %v2008_v10 }
  0x28   : > { %1939 = vmatmul.mubr.msk.bf16.gmra.mxu0 %vm390_vm1, %v2009_v11 }
  0x29   : > { %1973 = vmatmul.mubr.msk.bf16.gmra.mxu1 %vm390_vm1, %v2009_v11  ;;  %1942 = vmatprep.mubr.msk.bf16.mxu0 %vm390_vm1, %v2010_v12 }
  0x2a   : > { %1976 = vmatprep.mubr.msk.bf16.mxu1 %vm390_vm1, %v2010_v12 }
  0x30   : > { %1943 = vmatmul.mubr.msk.bf16.gmra.mxu0 %vm390_vm1, %v2011_v13 }
  0x31   : > { %1977 = vmatmul.mubr.msk.bf16.gmra.mxu1 %vm390_vm1, %v2011_v13  ;;  %1946 = vmatprep.mubr.msk.bf16.mxu0 %vm390_vm1, %v2012_v14 }
  0x32   : > { %1980 = vmatprep.mubr.msk.bf16.mxu1 %vm390_vm1, %v2012_v14 }
  0x38   : > { %1947 = vmatmul.mubr.msk.bf16.gmra.mxu0 %vm390_vm1, %v2013_v15 }
  0x39   : > { %1981 = vmatmul.mubr.msk.bf16.gmra.mxu1 %vm390_vm1, %v2013_v15  ;;  %1950 = vmatprep.mubr.msk.bf16.mxu0 %vm390_vm1, %v2014_v16 }
  0x3a   : > { %1984 = vmatprep.mubr.msk.bf16.mxu1 %vm390_vm1, %v2014_v16 }
  0x40   : > { %1951 = vmatmul.mubr.msk.bf16.gmra.mxu0 %vm390_vm1, %v2015_v17 }
  0x41   : > { %1985 = vmatmul.mubr.msk.bf16.gmra.mxu1 %vm390_vm1, %v2015_v17  ;;  %1954 = vmatprep.mubr.msk.bf16.mxu0 %vm390_vm1, %v2016_v18 }
  0x42   : > { %1988 = vmatprep.mubr.msk.bf16.mxu1 %vm390_vm1, %v2016_v18 }
  0x48   : > { %1955 = vmatmul.mubr.msk.bf16.gmra.mxu0 %vm390_vm1, %v2017_v19 }
  0x49   : > { %1989 = vmatmul.mubr.msk.bf16.gmra.mxu1 %vm390_vm1, %v2017_v19 }
  0xd0   : > { %v1928_v22 = vpop.f32.mrf.mxu0 }
  0xd1   : > { %v1962_v23 = vpop.f32.mrf.mxu1  ;;  %v2400_v24 = vadd.f32 %v1928_v22, %v2392_v20 }
  0xd2   : > { %v2403_v25 = vadd.f32 %v1962_v23, %v2397_v21  ;;  %v477_v26 = vpop.f32.mrf.mxu0 }
  0xd3   : > { %v649_v27 = vpop.f32.mrf.mxu1  ;;  %v1698_v28 = vmul.f32 -1.442695, %v2400_v24  ;;  %v2408_v30 = vadd.f32 %v2392_v20, %v477_v26 }
  0xd4   : > { %v1762_v29 = vmul.f32 -1.442695, %v2403_v25  ;;  %v2411_v31 = vadd.f32 %v2397_v21, %v649_v27  ;;  %v1929_v32 = vpop.f32.mrf.mxu0 }
  0xd5   : > { %v1963_v33 = vpop.f32.mrf.mxu1  ;;  %2018 = vpow2.f32 %v1698_v28  ;;  %v1696_v34 = vmul.f32 -1.442695, %v2408_v30  ;;  %v2416_v36 = vadd.f32 %v1929_v32, %v2392_v20 }
  0xd6   : > { %v1760_v35 = vmul.f32 -1.442695, %v2411_v31  ;;  %2020 = vpow2.f32 %v1762_v29  ;;  %v2419_v37 = vadd.f32 %v1963_v33, %v2397_v21  ;;  %v480_v38 = vpop.f32.mrf.mxu0 }
  0xd7   : > { %v652_v39 = vpop.f32.mrf.mxu1  ;;  %2022 = vpow2.f32 %v1696_v34  ;;  %v1699_v40 = vmul.f32 -1.442695, %v2416_v36  ;;  %v2423_v41 = vadd.f32 %v2392_v20, %v480_v38 }
  0xd8   : > { %v2426_v42 = vadd.f32 %v2397_v21, %v652_v39  ;;  %2024 = vpow2.f32 %v1760_v35  ;;  %v1763_v43 = vmul.f32 -1.442695, %v2419_v37  ;;  %v1932_v44 = vpop.f32.mrf.mxu0 }
  0xd9   : > { %v1966_v45 = vpop.f32.mrf.mxu1  ;;  %2026 = vpow2.f32 %v1699_v40  ;;  %v1697_v46 = vmul.f32 -1.442695, %v2423_v41  ;;  %v2432_v48 = vadd.f32 %v1932_v44, %v2392_v20 }
  0xda   : > { %v1761_v47 = vmul.f32 -1.442695, %v2426_v42  ;;  %2028 = vpow2.f32 %v1763_v43  ;;  %v2435_v49 = vadd.f32 %v1966_v45, %v2397_v21  ;;  %v493_v50 = vpop.f32.mrf.mxu0 }
  0xdb   : > { %v665_v51 = vpop.f32.mrf.mxu1  ;;  %2030 = vpow2.f32 %v1697_v46  ;;  %v1702_v52 = vmul.f32 -1.442695, %v2432_v48  ;;  %v2439_v53 = vadd.f32 %v2392_v20, %v493_v50 }
  0xdc   : > { %v2442_v54 = vadd.f32 %v2397_v21, %v665_v51  ;;  %2032 = vpow2.f32 %v1761_v47  ;;  %v1766_v55 = vmul.f32 -1.442695, %v2435_v49  ;;  %v1933_v56 = vpop.f32.mrf.mxu0 }
  0xdd   : > { %v1967_v57 = vpop.f32.mrf.mxu1  ;;  %2034 = vpow2.f32 %v1702_v52  ;;  %v1700_v58 = vmul.f32 -1.442695, %v2439_v53  ;;  %v2448_v60 = vadd.f32 %v1933_v56, %v2392_v20 }
  0xde   : > { %v1764_v59 = vmul.f32 -1.442695, %v2442_v54  ;;  %2036 = vpow2.f32 %v1766_v55  ;;  %v2451_v61 = vadd.f32 %v1967_v57, %v2397_v21  ;;  %v496_v62 = vpop.f32.mrf.mxu0 }
  0xdf   : > { %v668_v63 = vpop.f32.mrf.mxu1  ;;  %2038 = vpow2.f32 %v1700_v58  ;;  %v1703_v0 = vmul.f32 -1.442695, %v2448_v60  ;;  %v2455_v1 = vadd.f32 %v2392_v20, %v496_v62 }
  0xe0   : > { %v2458_v2 = vadd.f32 %v2397_v21, %v668_v63  ;;  %2040 = vpow2.f32 %v1764_v59  ;;  %v1767_v3 = vmul.f32 -1.442695, %v2451_v61  ;;  %v1936_v4 = vpop.f32.mrf.mxu0 }
  0xe1   : > { %v1970_v5 = vpop.f32.mrf.mxu1  ;;  %2042 = vpow2.f32 %v1703_v0  ;;  %v1701_v6 = vmul.f32 -1.442695, %v2455_v1  ;;  %v2464_v29 = vadd.f32 %v1936_v4, %v2392_v20 }
  0xe2   : > { %v1765_v7 = vmul.f32 -1.442695, %v2458_v2  ;;  %v2019_v8 = vpop.eup %2018  ;;  %2044 = vpow2.f32 %v1767_v3  ;;  %v509_v9 = vpop.f32.mrf.mxu0  ;;  %v2467_v40 = vadd.f32 %v1970_v5, %v2397_v21 }
  0xe3   : > { %v681_v10 = vpop.f32.mrf.mxu1  ;;  %v2021_v11 = vpop.eup %2020  ;;  %v874_v12 = vadd.f32 1.0, %v2019_v8  ;;  %2046 = vpow2.f32 %v1701_v6  ;;  %v2470_v45 = vadd.f32 %v2392_v20, %v509_v9  ;;  %v1706_v50 = vmul.f32 -1.442695, %v2464_v29 }
  0xe4   : > { %v2023_v13 = vpop.eup %2022  ;;  %v1259_v14 = vadd.f32 1.0, %v2021_v11  ;;  %2048 = vpow2.f32 %v1765_v7  ;;  %v1937_v15 = vpop.f32.mrf.mxu0  ;;  %v2474_v56 = vadd.f32 %v2397_v21, %v681_v10  ;;  %v1770_v63 = vmul.f32 -1.442695, %v2467_v40 }
  0xe5   : > { %v2025_v16 = vpop.eup %2024  ;;  %2050 = vrcp.f32 %v874_v12  ;;  %v872_v17 = vadd.f32 1.0, %v2023_v13  ;;  %v1971_v18 = vpop.f32.mrf.mxu1  ;;  %v2477_v57 = vadd.f32 %v1937_v15, %v2392_v20  ;;  %v1704_v5 = vmul.f32 -1.442695, %v2470_v45 }
  0xe6   : > { %v2027_v19 = vpop.eup %2026  ;;  %2052 = vrcp.f32 %v1259_v14  ;;  %v1257_v22 = vadd.f32 1.0, %v2025_v16  ;;  %v512_v32 = vpop.f32.mrf.mxu0  ;;  %v2481_v0 = vadd.f32 %v1971_v18, %v2397_v21  ;;  %v1768_v14 = vmul.f32 -1.442695, %v2474_v56 }
  0xe7   : > { %v2029_v23 = vpop.eup %2028  ;;  %2054 = vrcp.f32 %v872_v17  ;;  %v875_v26 = vadd.f32 1.0, %v2027_v19  ;;  %v684_v35 = vpop.f32.mrf.mxu1  ;;  %v2485_v6 = vadd.f32 %v2392_v20, %v512_v32  ;;  %v1707_v15 = vmul.f32 -1.442695, %v2477_v57 }
  0xe8   : > { %v2031_v27 = vpop.eup %2030  ;;  %2056 = vrcp.f32 %v1257_v22  ;;  %v1260_v28 = vadd.f32 1.0, %v2029_v23  ;;  %v1940_v51 = vpop.f32.mrf.mxu0  ;;  %v2488_v9 = vadd.f32 %v2397_v21, %v684_v35  ;;  %v1771_v19 = vmul.f32 -1.442695, %v2481_v0 }
  0xe9   : > { %v2033_v33 = vpop.eup %2032  ;;  %2058 = vrcp.f32 %v875_v26  ;;  %v873_v34 = vadd.f32 1.0, %v2031_v27  ;;  %v1974_v58 = vpop.f32.mrf.mxu1  ;;  %v2491_v10 = vadd.f32 %v1940_v51, %v2392_v20  ;;  %v1705_v27 = vmul.f32 -1.442695, %v2485_v6 }
  0xea   : > { %v2035_v38 = vpop.eup %2034  ;;  %2060 = vrcp.f32 %v1260_v28  ;;  %v1258_v39 = vadd.f32 1.0, %v2033_v33  ;;  %v525_v11 = vpop.f32.mrf.mxu0  ;;  %v2497_v22 = vadd.f32 %v1974_v58, %v2397_v21 }
  0xeb   : > { %v2037_v43 = vpop.eup %2036  ;;  %2062 = vrcp.f32 %v873_v34  ;;  %v878_v44 = vadd.f32 1.0, %v2035_v38  ;;  %v697_v16 = vpop.f32.mrf.mxu1  ;;  %v2502_v28 = vadd.f32 %v2392_v20, %v525_v11  ;;  %v1769_v34 = vmul.f32 -1.442695, %v2488_v9 }
  0xec   : > { %v2039_v46 = vpop.eup %2038  ;;  %2064 = vrcp.f32 %v1258_v39  ;;  %v1263_v47 = vadd.f32 1.0, %v2037_v43  ;;  %v1941_v35 = vpop.f32.mrf.mxu0 }
  0xed   : > { %v2041_v52 = vpop.eup %2040  ;;  %2066 = vrcp.f32 %v878_v44  ;;  %v876_v55 = vadd.f32 1.0, %v2039_v46  ;;  %v1975_v44 = vpop.f32.mrf.mxu1 }
  0xee   : > { %v2043_v59 = vpop.eup %2042  ;;  %2068 = vrcp.f32 %v1263_v47  ;;  %v1261_v62 = vadd.f32 1.0, %v2041_v52  ;;  %v1774_v52 = vmul.f32 -1.442695, %v2497_v22 }
  0xef   : > { %v2045_v3 = vpop.eup %2044  ;;  %2070 = vrcp.f32 %v876_v55  ;;  %v879_v4 = vadd.f32 1.0, %v2043_v59 }
  0xf0   : > { %v2047_v7 = vpop.eup %2046  ;;  %2072 = vrcp.f32 %v1261_v62  ;;  %v1264_v8 = vadd.f32 1.0, %v2045_v3  ;;  %v528_v3 = vpop.f32.mrf.mxu0 }
  0xf1   : > { %v2049_v12 = vpop.eup %2048  ;;  %2074 = vrcp.f32 %v879_v4  ;;  %v877_v13 = vadd.f32 1.0, %v2047_v7 }
  0xf2   : > { %v2051_v17 = vpop.eup %2050  ;;  %2076 = vrcp.f32 %v1264_v8  ;;  %v1262_v18 = vadd.f32 1.0, %v2049_v12  ;;  %v700_v8 = vpop.f32.mrf.mxu1 }
  0xf3   : > { %v2053_v23 = vpop.eup %2052  ;;  %v970_v26 = vmul.f32 %v2051_v17, %v2400_v24  ;;  %2078 = vrcp.f32 %v877_v13  ;;  %v1710_v24 = vmul.f32 -1.442695, %v2491_v10  ;;  %v2543_v13 = vadd.f32 %v1975_v44, %v2397_v21 }
  0xf4   : > { %v2055_v32 = vpop.eup %2054  ;;  %v1355_v33 = vmul.f32 %v2053_v23, %v2403_v25  ;;  %2080 = vrcp.f32 %v1262_v18  ;;  %v2521_v25 = vadd.f32 %v2397_v21, %v697_v16  ;;  %v2549_v16 = vadd.f32 %v2392_v20, %v528_v3  ;;  %v2557_v23 = vpop.f32.mrf.mxu0 }
  0xf5   : > { %v2057_v38 = vpop.eup %2056  ;;  %v1828_v39 = vpack.c.bf16 %v970_v26, %v970_v26  ;;  %v968_v43 = vmul.f32 %v2055_v32, %v2408_v30  ;;  %2082 = vpow2.f32 %v1706_v50  ;;  %v1708_v50 = vmul.f32 -1.442695, %v2502_v28 }
  0xf6   : > { %v2059_v46 = vpop.eup %2058  ;;  %v1860_v47 = vpack.c.bf16 %v1355_v33, %v1355_v33  ;;  %v1353_v51 = vmul.f32 %v2057_v38, %v2411_v31  ;;  %2084 = vpow2.f32 %v1770_v63  ;;  %v2533_v63 = vadd.f32 %v1941_v35, %v2392_v20  ;;  %v2563_v33 = vpop.f32.mrf.mxu1 }
  0xf7   : > { %v2061_v55 = vpop.eup %2060  ;;  %1131 = vst.msk [vmem:[%s2508_s14 + $0x8] sm:$0xf] %vm1128_vm2, %v1828_v39  ;;  %v1826_v58 = vpack.c.bf16 %v968_v43, %v968_v43  ;;  %v971_v30 = vmul.f32 %v2059_v46, %v2416_v36  ;;  %2086 = vpow2.f32 %v1704_v5  ;;  %v1772_v7 = vmul.f32 -1.442695, %v2521_v25 }
  0xf8   : > { %v2063_v59 = vpop.eup %2062  ;;  %1515 = vst.msk [vmem:[%s2517_s17 + $0x8] sm:$0xf] %vm1128_vm2, %v1860_v47  ;;  %v1858_v62 = vpack.c.bf16 %v1353_v51, %v1353_v51  ;;  %v1356_v31 = vmul.f32 %v2061_v55, %v2419_v37  ;;  %2088 = vpow2.f32 %v1768_v14  ;;  %v1711_v32 = vmul.f32 -1.442695, %v2533_v63  ;;  %v541_v51 = vpop.f32.mrf.mxu0 }
  0xf9   : > { %v2065_v4 = vpop.eup %2064  ;;  %1129 = vst.msk [vmem:[%s2508_s14] sm:$0xf] %vm1128_vm2, %v1826_v58  ;;  %v1829_v36 = vpack.c.bf16 %v971_v30, %v971_v30  ;;  %v969_v5 = vmul.f32 %v2063_v59, %v2423_v41  ;;  %2090 = vpow2.f32 %v1707_v15  ;;  %v1775_v38 = vmul.f32 -1.442695, %v2543_v13  ;;  %v713_v58 = vpop.f32.mrf.mxu1 }
  0xfa   : > { %v2067_v11 = vpop.eup %2066  ;;  %1513 = vst.msk [vmem:[%s2517_s17] sm:$0xf] %vm1128_vm2, %v1858_v62  ;;  %v1861_v37 = vpack.c.bf16 %v1356_v31, %v1356_v31  ;;  %v1354_v12 = vmul.f32 %v2065_v4, %v2426_v42  ;;  %2092 = vpow2.f32 %v1771_v19  ;;  %v2555_v19 = vadd.f32 %v2397_v21, %v700_v8 }
  0xfb   : > { %v2069_v14 = vpop.eup %2068  ;;  %1132 = vst.msk [vmem:[%s2508_s14 + $0xc] sm:$0xf] %vm1128_vm2, %v1829_v36  ;;  %v1827_v41 = vpack.c.bf16 %v969_v5, %v969_v5  ;;  %v974_v15 = vmul.f32 %v2067_v11, %v2432_v48  ;;  %2094 = vpow2.f32 %v1705_v27  ;;  %v1709_v43 = vmul.f32 -1.442695, %v2549_v16  ;;  %v1945_v36 = vpop.f32.mrf.mxu0 }
  0xfc   : > { %v2071_v17 = vpop.eup %2070  ;;  %1516 = vst.msk [vmem:[%s2517_s17 + $0xc] sm:$0xf] %vm1128_vm2, %v1861_v37  ;;  %v1859_v42 = vpack.c.bf16 %v1354_v12, %v1354_v12  ;;  %v1359_v18 = vmul.f32 %v2069_v14, %v2435_v49  ;;  %2096 = vpow2.f32 %v1769_v34  ;;  %v1773_v47 = vmul.f32 -1.442695, %v2555_v19 }
  0xfd   : > { %v2073_v26 = vpop.eup %2072  ;;  %1130 = vst.msk [vmem:[%s2508_s14 + $0x4] sm:$0xf] %vm1128_vm2, %v1827_v41  ;;  %v1832_v48 = vpack.c.bf16 %v974_v15, %v974_v15  ;;  %v972_v27 = vmul.f32 %v2071_v17, %v2439_v53  ;;  %2098 = vpow2.f32 %v1710_v24  ;;  %v2593_v15 = vadd.f32 %v2557_v23, %v2392_v20  ;;  %v544_v17 = vpop.f32.mrf.mxu0 }
  0xfe   : > { %v2075_v49 = vpop.eup %2074  ;;  %1514 = vst.msk [vmem:[%s2517_s17 + $0x4] sm:$0xf] %vm1128_vm2, %v1859_v42  ;;  %v1864_v34 = vpack.c.bf16 %v1359_v18, %v1359_v18  ;;  %v1357_v35 = vmul.f32 %v2073_v26, %v2442_v54  ;;  %2100 = vpow2.f32 %v1774_v52 }
  0xff   : > { %v2077_v39 = vpop.eup %2076  ;;  %1135 = vst.msk [vmem:[%s2508_s14 + $0x18] sm:$0xf] %vm1128_vm2, %v1832_v48  ;;  %v1830_v53 = vpack.c.bf16 %v972_v27, %v972_v27  ;;  %v975_v24 = vmul.f32 %v2075_v49, %v2448_v60  ;;  %2102 = vpow2.f32 %v1708_v50 }
 0x100   : > { %v2079_v44 = vpop.eup %2078  ;;  %1519 = vst.msk [vmem:[%s2517_s17 + $0x18] sm:$0xf] %vm1128_vm2, %v1864_v34  ;;  %v1862_v46 = vpack.c.bf16 %v1357_v35, %v1357_v35  ;;  %v1360_v54 = vmul.f32 %v2077_v39, %v2451_v61  ;;  %2104 = vpow2.f32 %v1772_v7  ;;  %v1979_v7 = vpop.f32.mrf.mxu1  ;;  %v2600_v35 = vadd.f32 %v2392_v20, %v541_v51 }
 0x101   : > { %v2081_v52 = vpop.eup %2080  ;;  %1133 = vst.msk [vmem:[%s2508_s14 + $0x10] sm:$0xf] %vm1128_vm2, %v1830_v53  ;;  %v1833_v60 = vpack.c.bf16 %v975_v24, %v975_v24  ;;  %v973_v55 = vmul.f32 %v2079_v44, %v2455_v1  ;;  %2106 = vpow2.f32 %v1711_v32  ;;  %v2597_v32 = vadd.f32 %v2563_v33, %v2397_v21  ;;  %v1948_v53 = vpop.f32.mrf.mxu0 }
 0x102   : > { %v2083_v30 = vpop.eup %2082  ;;  %1517 = vst.msk [vmem:[%s2517_s17 + $0x10] sm:$0xf] %vm1128_vm2, %v1862_v46  ;;  %v1865_v50 = vpack.c.bf16 %v1360_v54, %v1360_v54  ;;  %v1358_v61 = vmul.f32 %v2081_v52, %v2458_v2  ;;  %2108 = vpow2.f32 %v1775_v38  ;;  %v716_v26 = vpop.f32.mrf.mxu1  ;;  %v1714_v39 = vmul.f32 -1.442695, %v2593_v15 }
 0x103   : > { %v2085_v59 = vpop.eup %2084  ;;  %1136 = vst.msk [vmem:[%s2508_s14 + $0x1c] sm:$0xf] %vm1128_vm2, %v1833_v60  ;;  %v1831_v62 = vpack.c.bf16 %v973_v55, %v973_v55  ;;  %v882_v31 = vadd.f32 1.0, %v2083_v30  ;;  %2110 = vpow2.f32 %v1709_v43  ;;  %v2604_v44 = vadd.f32 %v2397_v21, %v713_v58 }
 0x104   : > { %v2087_v3 = vpop.eup %2086  ;;  %1520 = vst.msk [vmem:[%s2517_s17 + $0x1c] sm:$0xf] %vm1128_vm2, %v1865_v50  ;;  %v1863_v1 = vpack.c.bf16 %v1358_v61, %v1358_v61  ;;  %v1267_v4 = vadd.f32 1.0, %v2085_v59  ;;  %2112 = vpow2.f32 %v1773_v47  ;;  %v2607_v33 = vadd.f32 %v1945_v36, %v2392_v20  ;;  %v1982_v46 = vpop.f32.mrf.mxu1 }
 0x105   : > { %v2089_v5 = vpop.eup %2088  ;;  %1134 = vst.msk [vmem:[%s2508_s14 + $0x14] sm:$0xf] %vm1128_vm2, %v1831_v62  ;;  %2114 = vrcp.f32 %v882_v31  ;;  %v880_v2 = vadd.f32 1.0, %v2087_v3  ;;  %v1778_v51 = vmul.f32 -1.442695, %v2597_v32  ;;  %v2611_v52 = vadd.f32 %v1979_v7, %v2397_v21  ;;  %v557_v31 = vpop.f32.mrf.mxu0 }
 0x106   : > { %v2091_v8 = vpop.eup %2090  ;;  %1518 = vst.msk [vmem:[%s2517_s17 + $0x14] sm:$0xf] %vm1128_vm2, %v1863_v1  ;;  %2116 = vrcp.f32 %v1267_v4  ;;  %v1265_v11 = vadd.f32 1.0, %v2089_v5  ;;  %v1712_v30 = vmul.f32 -1.442695, %v2600_v35  ;;  %v2615_v58 = vadd.f32 %v2392_v20, %v544_v17  ;;  %v729_v5 = vpop.f32.mrf.mxu1 }
 0x107   : > { %v2093_v37 = vpop.eup %2092  ;;  %2118 = vrcp.f32 %v880_v2  ;;  %v883_v12 = vadd.f32 1.0, %v2091_v8  ;;  %v2618_v59 = vadd.f32 %v2397_v21, %v716_v26  ;;  %v2621_v62 = vadd.f32 %v1948_v53, %v2392_v20 }
 0x108   : > { %v2095_v14 = vpop.eup %2094  ;;  %2120 = vrcp.f32 %v1265_v11  ;;  %v1268_v41 = vadd.f32 1.0, %v2093_v37  ;;  %v1776_v4 = vmul.f32 -1.442695, %v2604_v44  ;;  %v1715_v36 = vmul.f32 -1.442695, %v2607_v33 }
 0x109   : > { %v2097_v42 = vpop.eup %2096  ;;  %2122 = vrcp.f32 %v883_v12  ;;  %v881_v18 = vadd.f32 1.0, %v2095_v14  ;;  %v1779_v8 = vmul.f32 -1.442695, %v2611_v52  ;;  %v2627_v11 = vadd.f32 %v1982_v46, %v2397_v21 }
 0x10a   : > { %v2099_v48 = vpop.eup %2098  ;;  %2124 = vrcp.f32 %v1268_v41  ;;  %v1266_v27 = vadd.f32 1.0, %v2097_v42  ;;  %v1713_v14 = vmul.f32 -1.442695, %v2615_v58  ;;  %v2632_v41 = vadd.f32 %v2392_v20, %v557_v31 }
 0x10b   : > { %v2101_v49 = vpop.eup %2100  ;;  %2126 = vrcp.f32 %v881_v18  ;;  %v886_v34 = vadd.f32 1.0, %v2099_v48  ;;  %v1777_v18 = vmul.f32 -1.442695, %v2618_v59  ;;  %v1718_v26 = vmul.f32 -1.442695, %v2621_v62  ;;  %v1949_v48 = vpop.f32.mrf.mxu0 }
 0x10c   : > { %v2103_v23 = vpop.eup %2102  ;;  %2128 = vrcp.f32 %v1266_v27  ;;  %v1271_v38 = vadd.f32 1.0, %v2101_v49 }
 0x10d   : > { %v2105_v24 = vpop.eup %2104  ;;  %2130 = vrcp.f32 %v886_v34  ;;  %v884_v43 = vadd.f32 1.0, %v2103_v23  ;;  %v2639_v34 = vadd.f32 %v2397_v21, %v729_v5  ;;  %v1983_v23 = vpop.f32.mrf.mxu1 }
 0x10e   : > { %v2107_v54 = vpop.eup %2106  ;;  %2132 = vrcp.f32 %v1271_v38  ;;  %v1269_v47 = vadd.f32 1.0, %v2105_v24  ;;  %v1782_v24 = vmul.f32 -1.442695, %v2627_v11 }
 0x10f   : > { %v2109_v60 = vpop.eup %2108  ;;  %2134 = vrcp.f32 %v884_v43  ;;  %v887_v55 = vadd.f32 1.0, %v2107_v54 }
 0x110   : > { %v2111_v50 = vpop.eup %2110  ;;  %2136 = vrcp.f32 %v1269_v47  ;;  %v1272_v61 = vadd.f32 1.0, %v2109_v60  ;;  %v560_v60 = vpop.f32.mrf.mxu0 }
 0x111   : > { %v2113_v3 = vpop.eup %2112  ;;  %2138 = vrcp.f32 %v887_v55  ;;  %v885_v1 = vadd.f32 1.0, %v2111_v50  ;;  %v1780_v50 = vmul.f32 -1.442695, %v2639_v34  ;;  %v2667_v5 = vadd.f32 %v2392_v20, %v560_v60 }
 0x112   : > { %v2115_v2 = vpop.eup %2114  ;;  %2140 = vrcp.f32 %v1272_v61  ;;  %v1270_v7 = vadd.f32 1.0, %v2113_v3  ;;  %v732_v61 = vpop.f32.mrf.mxu1 }
 0x113   : > { %v2117_v37 = vpop.eup %2116  ;;  %v978_v12 = vmul.f32 %v2115_v2, %v2464_v29  ;;  %2142 = vrcp.f32 %v885_v1  ;;  %v2661_v1 = vadd.f32 %v1983_v23, %v2397_v21 }
 0x114   : > { %v2119_v17 = vpop.eup %2118  ;;  %v1363_v42 = vmul.f32 %v2117_v37, %v2467_v40  ;;  %2144 = vrcp.f32 %v1270_v7  ;;  %v2675_v37 = vpop.f32.mrf.mxu0 }
 0x115   : > { %v2121_v27 = vpop.eup %2120  ;;  %v1836_v49 = vpack.c.bf16 %v978_v12, %v978_v12  ;;  %v976_v29 = vmul.f32 %v2119_v17, %v2470_v45  ;;  %2146 = vpow2.f32 %v1714_v39  ;;  %v1716_v39 = vmul.f32 -1.442695, %v2632_v41 }
 0x116   : > { %v2123_v38 = vpop.eup %2122  ;;  %v1868_v53 = vpack.c.bf16 %v1363_v42, %v1363_v42  ;;  %v1361_v40 = vmul.f32 %v2121_v27, %v2474_v56  ;;  %2148 = vpow2.f32 %v1778_v51  ;;  %v2651_v51 = vadd.f32 %v1949_v48, %v2392_v20  ;;  %v2681_v42 = vpop.f32.mrf.mxu1 }
 0x117   : > { %v2125_v43 = vpop.eup %2124  ;;  %1139 = vst.msk [vmem:[%s2508_s14 + $0x28] sm:$0xf] %vm1128_vm2, %v1836_v49  ;;  %v1834_v46 = vpack.c.bf16 %v976_v29, %v976_v29  ;;  %v979_v45 = vmul.f32 %v2123_v38, %v2477_v57  ;;  %2150 = vpow2.f32 %v1712_v30  ;;  %v1783_v27 = vmul.f32 -1.442695, %v2661_v1 }
 0x118   : > { %v2127_v54 = vpop.eup %2126  ;;  %1523 = vst.msk [vmem:[%s2517_s17 + $0x28] sm:$0xf] %vm1128_vm2, %v1868_v53  ;;  %v1866_v47 = vpack.c.bf16 %v1361_v40, %v1361_v40  ;;  %v1364_v56 = vmul.f32 %v2125_v43, %v2481_v0  ;;  %2152 = vpow2.f32 %v1776_v4  ;;  %v1719_v17 = vmul.f32 -1.442695, %v2651_v51  ;;  %v573_v40 = vpop.f32.mrf.mxu0 }
 0x119   : > { %v2129_v55 = vpop.eup %2128  ;;  %1137 = vst.msk [vmem:[%s2508_s14 + $0x20] sm:$0xf] %vm1128_vm2, %v1834_v46  ;;  %v1837_v57 = vpack.c.bf16 %v979_v45, %v979_v45  ;;  %v977_v30 = vmul.f32 %v2127_v54, %v2485_v6  ;;  %2154 = vpow2.f32 %v1715_v36  ;;  %v1717_v29 = vmul.f32 -1.442695, %v2667_v5  ;;  %v745_v46 = vpop.f32.mrf.mxu1 }
 0x11a   : > { %v2131_v31 = vpop.eup %2130  ;;  %1521 = vst.msk [vmem:[%s2517_s17 + $0x20] sm:$0xf] %vm1128_vm2, %v1866_v47  ;;  %v1869_v0 = vpack.c.bf16 %v1364_v56, %v1364_v56  ;;  %v1362_v3 = vmul.f32 %v2129_v55, %v2488_v9  ;;  %2156 = vpow2.f32 %v1779_v8  ;;  %v2673_v8 = vadd.f32 %v2397_v21, %v732_v61 }
 0x11b   : > { %v2133_v4 = vpop.eup %2132  ;;  %1140 = vst.msk [vmem:[%s2508_s14 + $0x2c] sm:$0xf] %vm1128_vm2, %v1837_v57  ;;  %v1835_v6 = vpack.c.bf16 %v977_v30, %v977_v30  ;;  %v982_v36 = vmul.f32 %v2131_v31, %v2491_v10  ;;  %2158 = vpow2.f32 %v1713_v14  ;;  %v1953_v57 = vpop.f32.mrf.mxu0 }
 0x11c   : > { %v2135_v2 = vpop.eup %2134  ;;  %1524 = vst.msk [vmem:[%s2517_s17 + $0x2c] sm:$0xf] %vm1128_vm2, %v1869_v0  ;;  %v1867_v9 = vpack.c.bf16 %v1362_v3, %v1362_v3  ;;  %v1367_v7 = vmul.f32 %v2133_v4, %v2497_v22  ;;  %2160 = vpow2.f32 %v1777_v18  ;;  %v1781_v53 = vmul.f32 -1.442695, %v2673_v8 }
 0x11d   : > { %v2137_v12 = vpop.eup %2136  ;;  %1138 = vst.msk [vmem:[%s2508_s14 + $0x24] sm:$0xf] %vm1128_vm2, %v1835_v6  ;;  %v1840_v10 = vpack.c.bf16 %v982_v36, %v982_v36  ;;  %v980_v14 = vmul.f32 %v2135_v2, %v2502_v28  ;;  %2162 = vpow2.f32 %v1718_v26  ;;  %v576_v36 = vpop.f32.mrf.mxu0 }
 0x11e   : > { %v2139_v22 = vpop.eup %2138  ;;  %1522 = vst.msk [vmem:[%s2517_s17 + $0x24] sm:$0xf] %vm1128_vm2, %v1867_v9  ;;  %v1872_v18 = vpack.c.bf16 %v1367_v7, %v1367_v7  ;;  %v1365_v48 = vmul.f32 %v2137_v12, %v2521_v25  ;;  %2164 = vpow2.f32 %v1782_v24  ;;  %v2711_v7 = vadd.f32 %v2675_v37, %v2392_v20 }
 0x11f   : > { %v2141_v49 = vpop.eup %2140  ;;  %1143 = vst.msk [vmem:[%s2508_s14 + $0x38] sm:$0xf] %vm1128_vm2, %v1840_v10  ;;  %v1838_v28 = vpack.c.bf16 %v980_v14, %v980_v14  ;;  %v983_v26 = vmul.f32 %v2139_v22, %v2533_v63  ;;  %2166 = vpow2.f32 %v1716_v39  ;;  %v2721_v37 = vadd.f32 %v2397_v21, %v745_v46 }
 0x120   : > { %v2143_v23 = vpop.eup %2142  ;;  %1527 = vst.msk [vmem:[%s2517_s17 + $0x38] sm:$0xf] %vm1128_vm2, %v1872_v18  ;;  %v1870_v38 = vpack.c.bf16 %v1365_v48, %v1365_v48  ;;  %v1368_v25 = vmul.f32 %v2141_v49, %v2543_v13  ;;  %2168 = vpow2.f32 %v1780_v50  ;;  %v1987_v50 = vpop.f32.mrf.mxu1  ;;  %v2718_v48 = vadd.f32 %v2392_v20, %v573_v40 }
 0x121   : > { %v2145_v24 = vpop.eup %2144  ;;  %1141 = vst.msk [vmem:[%s2508_s14 + $0x30] sm:$0xf] %vm1128_vm2, %v1838_v28  ;;  %v1841_v63 = vpack.c.bf16 %v983_v26, %v983_v26  ;;  %v981_v43 = vmul.f32 %v2143_v23, %v2549_v16  ;;  %2170 = vpow2.f32 %v1719_v17  ;;  %v2715_v17 = vadd.f32 %v2681_v42, %v2397_v21  ;;  %v1956_v28 = vpop.f32.mrf.mxu0 }
 0x122   : > { %v2147_v45 = vpop.eup %2146  ;;  %1525 = vst.msk [vmem:[%s2517_s17 + $0x30] sm:$0xf] %vm1128_vm2, %v1870_v38  ;;  %v1873_v39 = vpack.c.bf16 %v1368_v25, %v1368_v25  ;;  %v1366_v13 = vmul.f32 %v2145_v24, %v2555_v19  ;;  %2172 = vpow2.f32 %v1783_v27  ;;  %v748_v12 = vpop.f32.mrf.mxu1  ;;  %v1722_v23 = vmul.f32 -1.442695, %v2711_v7 }
 0x123   : > { %v2149_v54 = vpop.eup %2148  ;;  %1144 = vst.msk [vmem:[%s2508_s14 + $0x3c] sm:$0xf] %vm1128_vm2, %v1841_v63  ;;  %v1839_v47 = vpack.c.bf16 %v981_v43, %v981_v43  ;;  %v890_v56 = vadd.f32 1.0, %v2147_v45  ;;  %2174 = vpow2.f32 %v1717_v29  ;;  %v2725_v42 = vadd.f32 %v1953_v57, %v2392_v20 }
 0x124   : > { %v2151_v60 = vpop.eup %2150  ;;  %1528 = vst.msk [vmem:[%s2517_s17 + $0x3c] sm:$0xf] %vm1128_vm2, %v1873_v39  ;;  %v1871_v16 = vpack.c.bf16 %v1366_v13, %v1366_v13  ;;  %v1275_v55 = vadd.f32 1.0, %v2149_v54  ;;  %2176 = vpow2.f32 %v1781_v53  ;;  %v1990_v38 = vpop.f32.mrf.mxu1  ;;  %v1786_v40 = vmul.f32 -1.442695, %v2715_v17 }
 0x125   : > { %v2153_v30 = vpop.eup %2152  ;;  %1142 = vst.msk [vmem:[%s2508_s14 + $0x34] sm:$0xf] %vm1128_vm2, %v1839_v47  ;;  %2178 = vrcp.f32 %v890_v56  ;;  %v888_v19 = vadd.f32 1.0, %v2151_v60  ;;  %v2729_v24 = vadd.f32 %v1987_v50, %v2397_v21  ;;  %v1720_v46 = vmul.f32 -1.442695, %v2718_v48  ;;  %v589_v56 = vpop.f32.mrf.mxu0 }
 0x126   : > { %v2155_v61 = vpop.eup %2154  ;;  %1526 = vst.msk [vmem:[%s2517_s17 + $0x34] sm:$0xf] %vm1128_vm2, %v1871_v16  ;;  %2180 = vrcp.f32 %v1275_v55  ;;  %v1273_v31 = vadd.f32 1.0, %v2153_v30  ;;  %v2733_v45 = vadd.f32 %v2392_v20, %v576_v36  ;;  %v1784_v54 = vmul.f32 -1.442695, %v2721_v37  ;;  %v761_v30 = vpop.f32.mrf.mxu1 }
 0x127   : > { %v2157_v0 = vpop.eup %2156  ;;  %2182 = vrcp.f32 %v888_v19  ;;  %v891_v3 = vadd.f32 1.0, %v2155_v61  ;;  %v2737_v47 = vadd.f32 %v2397_v21, %v748_v12  ;;  %v1723_v55 = vmul.f32 -1.442695, %v2725_v42 }
 0x128   : > { %v2159_v4 = vpop.eup %2158  ;;  %2184 = vrcp.f32 %v1273_v31  ;;  %v1276_v6 = vadd.f32 1.0, %v2157_v0  ;;  %v2741_v57 = vadd.f32 %v1956_v28, %v2392_v20  ;;  %v1787_v61 = vmul.f32 -1.442695, %v2729_v24 }
 0x129   : > { %v2161_v2 = vpop.eup %2160  ;;  %2186 = vrcp.f32 %v891_v3  ;;  %v889_v9 = vadd.f32 1.0, %v2159_v4  ;;  %v2745_v31 = vadd.f32 %v1990_v38, %v2397_v21  ;;  %v1721_v4 = vmul.f32 -1.442695, %v2733_v45 }
 0x12a   : > { %v2163_v10 = vpop.eup %2162  ;;  %2188 = vrcp.f32 %v1276_v6  ;;  %v1274_v14 = vadd.f32 1.0, %v2161_v2  ;;  %v2750_v6 = vadd.f32 %v2392_v20, %v589_v56  ;;  %v2755_v12 = vadd.f32 %v2397_v21, %v761_v30 }
 0x12b   : > { %v2165_v22 = vpop.eup %2164  ;;  %2190 = vrcp.f32 %v889_v9  ;;  %v894_v18 = vadd.f32 1.0, %v2163_v10  ;;  %v1785_v9 = vmul.f32 -1.442695, %v2737_v47  ;;  %v1957_v10 = vpop.f32.mrf.mxu0  ;;  %v1726_v20 = vmul.f32 -1.442695, %v2741_v57 }
 0x12c   : > { %v2167_v27 = vpop.eup %2166  ;;  %2192 = vrcp.f32 %v1274_v14  ;;  %v1279_v49 = vadd.f32 1.0, %v2165_v22  ;;  %v1790_v28 = vmul.f32 -1.442695, %v2745_v31 }
 0x12d   : > { %v2169_v26 = vpop.eup %2168  ;;  %2194 = vrcp.f32 %v894_v18  ;;  %v892_v29 = vadd.f32 1.0, %v2167_v27  ;;  %v1991_v18 = vpop.f32.mrf.mxu1 }
 0x12e   : > { %v2171_v25 = vpop.eup %2170  ;;  %2196 = vrcp.f32 %v1279_v49  ;;  %v1277_v53 = vadd.f32 1.0, %v2169_v26 }
 0x12f   : > { %v2173_v63 = vpop.eup %2172  ;;  %2198 = vrcp.f32 %v892_v29  ;;  %v895_v43 = vadd.f32 1.0, %v2171_v25  ;;  %v1788_v25 = vmul.f32 -1.442695, %v2755_v12 }
 0x130   : > { %v2175_v39 = vpop.eup %2174  ;;  %2200 = vrcp.f32 %v1277_v53  ;;  %v1280_v13 = vadd.f32 1.0, %v2173_v63  ;;  %v592_v53 = vpop.f32.mrf.mxu0 }
 0x131   : > { %v2177_v60 = vpop.eup %2176  ;;  %2202 = vrcp.f32 %v895_v43  ;;  %v893_v16 = vadd.f32 1.0, %v2175_v39  ;;  %v2274_v43 = vld [vmem:[%s2878_s2] ss:$0 sm:$0xff] }
 0x132   : > { %v2179_v19 = vpop.eup %2178  ;;  %2204 = vrcp.f32 %v1280_v13  ;;  %v1278_v50 = vadd.f32 1.0, %v2177_v60  ;;  %v2788_v30 = vadd.f32 %v2274_v43, %v592_v53 }
 0x133   : > { %v2181_v0 = vpop.eup %2180  ;;  %v986_v3 = vmul.f32 %v2179_v19, %v2593_v15  ;;  %2206 = vrcp.f32 %v893_v16 }
 0x134   : > { %v2183_v36 = vpop.eup %2182  ;;  %v1371_v2 = vmul.f32 %v2181_v0, %v2597_v32  ;;  %2208 = vrcp.f32 %v1278_v50 }
 0x135   : > { %v2185_v14 = vpop.eup %2184  ;;  %v1844_v22 = vpack.c.bf16 %v986_v3, %v986_v3  ;;  %v984_v15 = vmul.f32 %v2183_v36, %v2600_v35  ;;  %2210 = vpow2.f32 %v1722_v23  ;;  %v1724_v35 = vmul.f32 -1.442695, %v2750_v6 }
 0x136   : > { %v2187_v27 = vpop.eup %2186  ;;  %v1876_v49 = vpack.c.bf16 %v1371_v2, %v1371_v2  ;;  %v1369_v32 = vmul.f32 %v2185_v14, %v2604_v44  ;;  %2212 = vpow2.f32 %v1786_v40 }
 0x137   : > { %v2189_v21 = vpop.eup %2188  ;;  %1147 = vst.msk [vmem:[%s2508_s14 + $0x48] sm:$0xf] %vm1128_vm2, %v1844_v22  ;;  %v1842_v26 = vpack.c.bf16 %v984_v15, %v984_v15  ;;  %v987_v29 = vmul.f32 %v2187_v27, %v2607_v33  ;;  %2214 = vpow2.f32 %v1720_v46  ;;  %v2775_v46 = vadd.f32 %v2274_v43, %v1957_v10 }
 0x138   : > { %v2191_v23 = vpop.eup %2190  ;;  %1531 = vst.msk [vmem:[%s2517_s17 + $0x48] sm:$0xf] %vm1128_vm2, %v1876_v49  ;;  %v1874_v38 = vpack.c.bf16 %v1369_v32, %v1369_v32  ;;  %v1372_v44 = vmul.f32 %v2189_v21, %v2611_v52  ;;  %2216 = vpow2.f32 %v1784_v54  ;;  %v764_v52 = vpop.f32.mrf.mxu1  ;;  %v1725_v22 = vmul.f32 -1.442695, %v2788_v30 }
 0x139   : > { %v2193_v40 = vpop.eup %2192  ;;  %1145 = vst.msk [vmem:[%s2508_s14 + $0x40] sm:$0xf] %vm1128_vm2, %v1842_v26  ;;  %v1845_v63 = vpack.c.bf16 %v987_v29, %v987_v29  ;;  %v985_v33 = vmul.f32 %v2191_v23, %v2615_v58  ;;  %2218 = vpow2.f32 %v1723_v55  ;;  %v2275_v58 = vld [vmem:[%s2880_s4] ss:$0 sm:$0xff] }
 0x13a   : > { %v2195_v39 = vpop.eup %2194  ;;  %1529 = vst.msk [vmem:[%s2517_s17 + $0x40] sm:$0xf] %vm1128_vm2, %v1874_v38  ;;  %v1877_v13 = vpack.c.bf16 %v1372_v44, %v1372_v44  ;;  %v1370_v54 = vmul.f32 %v2193_v40, %v2618_v59  ;;  %2220 = vpow2.f32 %v1787_v61  ;;  %v2783_v56 = vadd.f32 %v2275_v58, %v1991_v18 }
 0x13b   : > { %v2197_v60 = vpop.eup %2196  ;;  %1148 = vst.msk [vmem:[%s2508_s14 + $0x4c] sm:$0xf] %vm1128_vm2, %v1845_v63  ;;  %v1843_v16 = vpack.c.bf16 %v985_v33, %v985_v33  ;;  %v990_v55 = vmul.f32 %v2195_v39, %v2621_v62  ;;  %2222 = vpow2.f32 %v1721_v4  ;;  %v2793_v61 = vadd.f32 %v2275_v58, %v764_v52 }
 0x13c   : > { %v2199_v19 = vpop.eup %2198  ;;  %1532 = vst.msk [vmem:[%s2517_s17 + $0x4c] sm:$0xf] %vm1128_vm2, %v1877_v13  ;;  %v1875_v59 = vpack.c.bf16 %v1370_v54, %v1370_v54  ;;  %v1375_v50 = vmul.f32 %v2197_v60, %v2627_v11  ;;  %2224 = vpow2.f32 %v1785_v9  ;;  %v1727_v4 = vmul.f32 -1.442695, %v2775_v46 }
 0x13d   : > { %v2201_v0 = vpop.eup %2200  ;;  %1146 = vst.msk [vmem:[%s2508_s14 + $0x44] sm:$0xf] %vm1128_vm2, %v1843_v16  ;;  %v1848_v3 = vpack.c.bf16 %v990_v55, %v990_v55  ;;  %v988_v62 = vmul.f32 %v2199_v19, %v2632_v41  ;;  %2226 = vpow2.f32 %v1726_v20  ;;  %v1791_v9 = vmul.f32 -1.442695, %v2783_v56 }
 0x13e   : > { %v2203_v36 = vpop.eup %2202  ;;  %1530 = vst.msk [vmem:[%s2517_s17 + $0x44] sm:$0xf] %vm1128_vm2, %v1875_v59  ;;  %v1880_v2 = vpack.c.bf16 %v1375_v50, %v1375_v50  ;;  %v1373_v11 = vmul.f32 %v2201_v0, %v2639_v34  ;;  %2228 = vpow2.f32 %v1790_v28  ;;  %v1789_v18 = vmul.f32 -1.442695, %v2793_v61 }
 0x13f   : > { %v2205_v10 = vpop.eup %2204  ;;  %1151 = vst.msk [vmem:[%s2508_s14 + $0x58] sm:$0xf] %vm1128_vm2, %v1848_v3  ;;  %v1846_v14 = vpack.c.bf16 %v988_v62, %v988_v62  ;;  %v991_v41 = vmul.f32 %v2203_v36, %v2651_v51  ;;  %2230 = vpow2.f32 %v1724_v35 }
 0x140   : > { %v2207_v15 = vpop.eup %2206  ;;  %1535 = vst.msk [vmem:[%s2517_s17 + $0x58] sm:$0xf] %vm1128_vm2, %v1880_v2  ;;  %v1878_v20 = vpack.c.bf16 %v1373_v11, %v1373_v11  ;;  %v1376_v34 = vmul.f32 %v2205_v10, %v2661_v1  ;;  %2232 = vpow2.f32 %v1788_v25 }
 0x141   : > { %v2209_v27 = vpop.eup %2208  ;;  %1149 = vst.msk [vmem:[%s2508_s14 + $0x50] sm:$0xf] %vm1128_vm2, %v1846_v14  ;;  %v1849_v49 = vpack.c.bf16 %v991_v41, %v991_v41  ;;  %v989_v51 = vmul.f32 %v2207_v15, %v2667_v5  ;;  %2234 = vpow2.f32 %v1727_v4 }
 0x142   : > { %v2211_v32 = vpop.eup %2210  ;;  %1533 = vst.msk [vmem:[%s2517_s17 + $0x50] sm:$0xf] %vm1128_vm2, %v1878_v20  ;;  %v1881_v28 = vpack.c.bf16 %v1376_v34, %v1376_v34  ;;  %v1374_v21 = vmul.f32 %v2209_v27, %v2673_v8  ;;  %2236 = vpow2.f32 %v1791_v9 }
 0x143   : > { %v2213_v1 = vpop.eup %2212  ;;  %1152 = vst.msk [vmem:[%s2508_s14 + $0x5c] sm:$0xf] %vm1128_vm2, %v1849_v49  ;;  %v1847_v26 = vpack.c.bf16 %v989_v51, %v989_v51  ;;  %v898_v29 = vadd.f32 1.0, %v2211_v32  ;;  %2238 = vpow2.f32 %v1725_v22 }
 0x144   : > { %v2215_v35 = vpop.eup %2214  ;;  %1536 = vst.msk [vmem:[%s2517_s17 + $0x5c] sm:$0xf] %vm1128_vm2, %v1881_v28  ;;  %v1879_v5 = vpack.c.bf16 %v1374_v21, %v1374_v21  ;;  %v1283_v23 = vadd.f32 1.0, %v2213_v1  ;;  %2240 = vpow2.f32 %v1789_v18 }
 0x145   : > { %v2217_v38 = vpop.eup %2216  ;;  %1150 = vst.msk [vmem:[%s2508_s14 + $0x54] sm:$0xf] %vm1128_vm2, %v1847_v26  ;;  %2242 = vrcp.f32 %v898_v29  ;;  %v896_v44 = vadd.f32 1.0, %v2215_v35 }
 0x146   : > { %v2219_v8 = vpop.eup %2218  ;;  %1534 = vst.msk [vmem:[%s2517_s17 + $0x54] sm:$0xf] %vm1128_vm2, %v1879_v5  ;;  %2244 = vrcp.f32 %v1283_v23  ;;  %v1281_v25 = vadd.f32 1.0, %v2217_v38 }
 0x147   : > { %v2221_v53 = vpop.eup %2220  ;;  %2246 = vrcp.f32 %v896_v44  ;;  %v899_v40 = vadd.f32 1.0, %v2219_v8 }
 0x148   : > { %v2223_v63 = vpop.eup %2222  ;;  %2248 = vrcp.f32 %v1281_v25  ;;  %v1284_v33 = vadd.f32 1.0, %v2221_v53 }
 0x149   : > { %v2225_v43 = vpop.eup %2224  ;;  %2250 = vrcp.f32 %v899_v40  ;;  %v897_v52 = vadd.f32 1.0, %v2223_v63 }
 0x14a   : > { %v2227_v39 = vpop.eup %2226  ;;  %2252 = vrcp.f32 %v1284_v33  ;;  %v1282_v13 = vadd.f32 1.0, %v2225_v43 }
 0x14b   : > { %v2229_v54 = vpop.eup %2228  ;;  %2254 = vrcp.f32 %v897_v52  ;;  %v902_v58 = vadd.f32 1.0, %v2227_v39 }
 0x14c   : > { %v2231_v60 = vpop.eup %2230  ;;  %2256 = vrcp.f32 %v1282_v13  ;;  %v1287_v16 = vadd.f32 1.0, %v2229_v54 }
 0x14d   : > { %v2233_v55 = vpop.eup %2232  ;;  %2258 = vrcp.f32 %v902_v58  ;;  %v900_v19 = vadd.f32 1.0, %v2231_v60 }
 0x14e   : > { %v2235_v59 = vpop.eup %2234  ;;  %2260 = vrcp.f32 %v1287_v16  ;;  %v1285_v50 = vadd.f32 1.0, %v2233_v55 }
 0x14f   : > { %v2237_v0 = vpop.eup %2236  ;;  %2262 = vrcp.f32 %v900_v19  ;;  %v903_v3 = vadd.f32 1.0, %v2235_v59 }
 0x150   : > { %v2239_v62 = vpop.eup %2238  ;;  %2264 = vrcp.f32 %v1285_v50  ;;  %v1288_v4 = vadd.f32 1.0, %v2237_v0 }
 0x151   : > { %v2241_v36 = vpop.eup %2240  ;;  %2266 = vrcp.f32 %v903_v3  ;;  %v901_v2 = vadd.f32 1.0, %v2239_v62 }
 0x152   : > { %v2243_v11 = vpop.eup %2242  ;;  %2268 = vrcp.f32 %v1288_v4  ;;  %v1286_v9 = vadd.f32 1.0, %v2241_v36 }
 0x153   : > { %v2245_v10 = vpop.eup %2244  ;;  %v994_v14 = vmul.f32 %v2243_v11, %v2711_v7  ;;  %2270 = vrcp.f32 %v901_v2 }
 0x154   : > { %v2247_v41 = vpop.eup %2246  ;;  %v1379_v22 = vmul.f32 %v2245_v10, %v2715_v17  ;;  %2272 = vrcp.f32 %v1286_v9 }
 0x155   : > { %v2249_v15 = vpop.eup %2248  ;;  %v1852_v20 = vpack.c.bf16 %v994_v14, %v994_v14  ;;  %v992_v34 = vmul.f32 %v2247_v41, %v2718_v48 }
 0x156   : > { %v2251_v18 = vpop.eup %2250  ;;  %v1884_v27 = vpack.c.bf16 %v1379_v22, %v1379_v22  ;;  %v1377_v49 = vmul.f32 %v2249_v15, %v2721_v37 }
 0x157   : > { %v2253_v51 = vpop.eup %2252  ;;  %1155 = vst.msk [vmem:[%s2508_s14 + $0x68] sm:$0xf] %vm1128_vm2, %v1852_v20  ;;  %v1850_v7 = vpack.c.bf16 %v992_v34, %v992_v34  ;;  %v995_v32 = vmul.f32 %v2251_v18, %v2725_v42 }
 0x158   : > { %v2255_v28 = vpop.eup %2254  ;;  %1539 = vst.msk [vmem:[%s2517_s17 + $0x68] sm:$0xf] %vm1128_vm2, %v1884_v27  ;;  %v1882_v17 = vpack.c.bf16 %v1377_v49, %v1377_v49  ;;  %v1380_v21 = vmul.f32 %v2253_v51, %v2729_v24 }
 0x159   : > { %v2257_v48 = vpop.eup %2256  ;;  %1153 = vst.msk [vmem:[%s2508_s14 + $0x60] sm:$0xf] %vm1128_vm2, %v1850_v7  ;;  %v1853_v1 = vpack.c.bf16 %v995_v32, %v995_v32  ;;  %v993_v37 = vmul.f32 %v2255_v28, %v2733_v45 }
 0x15a   : > { %v2259_v26 = vpop.eup %2258  ;;  %1537 = vst.msk [vmem:[%s2517_s17 + $0x60] sm:$0xf] %vm1128_vm2, %v1882_v17  ;;  %v1885_v29 = vpack.c.bf16 %v1380_v21, %v1380_v21  ;;  %v1378_v42 = vmul.f32 %v2257_v48, %v2737_v47 }
 0x15b   : > { %v2261_v35 = vpop.eup %2260  ;;  %1156 = vst.msk [vmem:[%s2508_s14 + $0x6c] sm:$0xf] %vm1128_vm2, %v1853_v1  ;;  %v1851_v5 = vpack.c.bf16 %v993_v37, %v993_v37  ;;  %v998_v24 = vmul.f32 %v2259_v26, %v2741_v57 }
 0x15c   : > { %v2263_v23 = vpop.eup %2262  ;;  %1540 = vst.msk [vmem:[%s2517_s17 + $0x6c] sm:$0xf] %vm1128_vm2, %v1885_v29  ;;  %v1883_v38 = vpack.c.bf16 %v1378_v42, %v1378_v42  ;;  %v1383_v45 = vmul.f32 %v2261_v35, %v2745_v31 }
 0x15d   : > { %v2265_v44 = vpop.eup %2264  ;;  %1154 = vst.msk [vmem:[%s2508_s14 + $0x64] sm:$0xf] %vm1128_vm2, %v1851_v5  ;;  %v1856_v8 = vpack.c.bf16 %v998_v24, %v998_v24  ;;  %v996_v47 = vmul.f32 %v2263_v23, %v2750_v6 }
 0x15e   : > { %v2267_v25 = vpop.eup %2266  ;;  %1538 = vst.msk [vmem:[%s2517_s17 + $0x64] sm:$0xf] %vm1128_vm2, %v1883_v38  ;;  %v1888_v53 = vpack.c.bf16 %v1383_v45, %v1383_v45  ;;  %v1381_v57 = vmul.f32 %v2265_v44, %v2755_v12 }
 0x15f   : > { %v2269_v40 = vpop.eup %2268  ;;  %1159 = vst.msk [vmem:[%s2508_s14 + $0x78] sm:$0xf] %vm1128_vm2, %v1856_v8  ;;  %v1854_v31 = vpack.c.bf16 %v996_v47, %v996_v47  ;;  %v999_v63 = vmul.f32 %v2267_v25, %v2775_v46 }
 0x160   : > { %v2271_v33 = vpop.eup %2270  ;;  %1543 = vst.msk [vmem:[%s2517_s17 + $0x78] sm:$0xf] %vm1128_vm2, %v1888_v53  ;;  %v1886_v6 = vpack.c.bf16 %v1381_v57, %v1381_v57  ;;  %v1384_v43 = vmul.f32 %v2269_v40, %v2783_v56 }
 0x161   : > { %v2273_v52 = vpop.eup %2272  ;;  %1157 = vst.msk [vmem:[%s2508_s14 + $0x70] sm:$0xf] %vm1128_vm2, %v1854_v31  ;;  %v1857_v12 = vpack.c.bf16 %v999_v63, %v999_v63  ;;  %v997_v39 = vmul.f32 %v2271_v33, %v2788_v30 }
 0x162   : > { %1541 = vst.msk [vmem:[%s2517_s17 + $0x70] sm:$0xf] %vm1128_vm2, %v1886_v6  ;;  %v1889_v13 = vpack.c.bf16 %v1384_v43, %v1384_v43  ;;  %v1382_v54 = vmul.f32 %v2273_v52, %v2793_v61 }
 0x163   : > { %1160 = vst.msk [vmem:[%s2508_s14 + $0x7c] sm:$0xf] %vm1128_vm2, %v1857_v12  ;;  %v1855_v46 = vpack.c.bf16 %v997_v39, %v997_v39 }
 0x164   : > { %1544 = vst.msk [vmem:[%s2517_s17 + $0x7c] sm:$0xf] %vm1128_vm2, %v1889_v13  ;;  %v1887_v58 = vpack.c.bf16 %v1382_v54, %v1382_v54 }
 0x165   : > { %1158 = vst.msk [vmem:[%s2508_s14 + $0x74] sm:$0xf] %vm1128_vm2, %v1855_v46 }
 0x166   : > { %1542 = vst.msk [vmem:[%s2517_s17 + $0x74] sm:$0xf] %vm1128_vm2, %v1887_v58 }
 0x167 PF: > { %s17_s21 = sadd.s32 1, %s2282_s21  }
 0x168   : > { %p14_p4 = scmp.ge.s32.totalorder %s17_s21, 4  }
 0x16a   :  { %16 = sbr.rel (!%p14_p4) target bundleno = 1 (0x1), region = 82 }

// kernel: c3_forward.7
= control target key start
LH: loop header
LB: loop body
LE: loop exit
PB: predicated region body
PF: predicated region fallthrough
CT: control target
= control target key end

     0   :  { %s1687_s18 = smov 0   ;;  %s2016_s0 = inlined_call_operand.vmem [shape: bf16[512,2], index: 0, kind: input, shape index: {}]   ;;  %s2017_s1 = inlined_call_operand.vmem [shape: bf16[512,2], index: 1, kind: input, shape index: {}]   ;;  %s2018_s2 = inlined_call_operand.vmem [shape: bf16[2,4], index: 2, kind: input, shape index: {}]   ;;  %s2019_s3 = inlined_call_operand.vmem [shape: bf16[2,4], index: 3, kind: input, shape index: {}]   ;;  %s2020_s4 = inlined_call_operand.vmem [shape: f32[1,4], index: 4, kind: input, shape index: {}]   ;;  %s2021_s5 = inlined_call_operand.vmem [shape: f32[512,4], index: 5, kind: output, shape index: {}]  }
   0x1 LB: > { %s1267_s19 = sadd.s32 4294967295, %s1655_s18   ;;  %p1271_p0 = scmp.ge.s32.totalorder %s1655_s18, 1  ;;  %s1655_s18 = sphi %s1687_s18, %s15_s18  }
   0x2   : > { %p199_p1 = scmp.lt.s32.totalorder %s1655_s18, 3 }
   0x4   : > { %p200_p2 = pnand %p1271_p0, %p199_p1 }
   0x5   : > { %s1272_s24 = sshll.u32 (!%p200_p2), %s1267_s19, 5 }
   0x6   : > { %203 = sbr.rel (%p200_p2) target bundleno = 312 (0x138), region = 40  ;;  %p233_p3 = scmp.lt.s32.totalorder (!%p200_p2), %s1272_s24, 63 }
   0xb   : > { %v316_v0 = vld [vmem:[%s2019_s3] sm:$0x1]  ;;  %vm446_vm0 = vcmask 1040384   ;;  %s2023_s24 = smov (!%p233_p3, %s1272_s24), 63  ;;  %vm397_vm1 = vcmask 15360   ;;  %vm1166_vm2 = vcmask 31744  }
   0xc   : > { %v283_v1 = vld [vmem:[%s2018_s2] sm:$0x1]  ;;  %1479 = vmatprep.subr.msk.bf16.mxu0 %vm446_vm0, %v316_v0  ;;  %v448_v2 = vsel %vm446_vm0, %v316_v0, 0  ;;  %s1273_s25 = sshll.u32 %s2023_s24, 2  ;;  %s1277_s9 = sshll.u32 %s2023_s24, 3 }
   0xd   : > { %1480 = vmatprep.subr.msk.bf16.mxu1 %vm446_vm0, %v283_v1  ;;  %v740_v3 = vsel %vm446_vm0, %v283_v1, 0  ;;  %1412 = vmatpush3.bf16.msra.mxu0 %v448_v2  ;;  %s1707_s28 = scalar_lea.vmem %s2017_s1, %s1273_s25  ;;  %s1713_s6 = scalar_lea.vmem %s2016_s0, %s1273_s25  ;;  %v1781_v38 = vld [vmem:[%s2020_s4] ss:$0 sm:$0xff] }
   0xe   : > { %1446 = vmatpush3.bf16.msra.mxu1 %v740_v3  ;;  %v1489_v4 = vld [vmem:[%s1707_s28] sm:$0xff]   ;;  %v1491_v6 = vld [vmem:[%s1707_s28 + $0x8] sm:$0xff]   ;;  %v1493_v8 = vld [vmem:[%s1707_s28 + $0x10] sm:$0xff]   ;;  %s1851_s12 = scalar_lea.vmem %s2021_s5, %s1277_s9 }
   0xf   : > { %v1490_v5 = vld [vmem:[%s1713_s6] sm:$0xff]   ;;  %1413 = vmatprep.mubr.msk.bf16.mxu0 %vm397_vm1, %v1489_v4  ;;  %v1492_v7 = vld [vmem:[%s1713_s6 + $0x8] sm:$0xff]   ;;  %v1494_v9 = vld [vmem:[%s1713_s6 + $0x10] sm:$0xff]  }
  0x10   : > { %1447 = vmatprep.mubr.msk.bf16.mxu1 %vm397_vm1, %v1490_v5  ;;  %1414 = vmatmul.mubr.msk.bf16.vlgmr.msra.gmra.mxu0 %vm397_vm1, %v1491_v6  ;;  %v1495_v10 = vld [vmem:[%s1707_s28 + $0x18] sm:$0xff]   ;;  %v1497_v12 = vld [vmem:[%s1707_s28 + $0x20] sm:$0xff]   ;;  %v1499_v14 = vld [vmem:[%s1707_s28 + $0x28] sm:$0xff]  }
  0x11   : > { %1448 = vmatmul.mubr.msk.bf16.vlgmr.msra.gmra.mxu1 %vm397_vm1, %v1492_v7  ;;  %1417 = vmatprep.mubr.msk.bf16.mxu0 %vm397_vm1, %v1493_v8  ;;  %v1496_v11 = vld [vmem:[%s1713_s6 + $0x18] sm:$0xff]   ;;  %v1498_v13 = vld [vmem:[%s1713_s6 + $0x20] sm:$0xff]   ;;  %v1500_v15 = vld [vmem:[%s1713_s6 + $0x28] sm:$0xff]  }
  0x12   : > { %1451 = vmatprep.mubr.msk.bf16.mxu1 %vm397_vm1, %v1494_v9  ;;  %v1501_v16 = vld [vmem:[%s1707_s28 + $0x30] sm:$0xff]   ;;  %v1503_v18 = vld [vmem:[%s1707_s28 + $0x38] sm:$0xff]   ;;  %v1505_v20 = vld [vmem:[%s1707_s28 + $0x40] sm:$0xff]  }
  0x13   : > { %v1502_v17 = vld [vmem:[%s1713_s6 + $0x30] sm:$0xff]   ;;  %v1504_v19 = vld [vmem:[%s1713_s6 + $0x38] sm:$0xff]   ;;  %v1506_v21 = vld [vmem:[%s1713_s6 + $0x40] sm:$0xff]  }
  0x14   : > { %v1507_v22 = vld [vmem:[%s1707_s28 + $0x48] sm:$0xff]   ;;  %v1509_v24 = vld [vmem:[%s1707_s28 + $0x50] sm:$0xff]   ;;  %v1511_v26 = vld [vmem:[%s1707_s28 + $0x58] sm:$0xff]  }
  0x15   : > { %v1508_v23 = vld [vmem:[%s1713_s6 + $0x48] sm:$0xff]   ;;  %v1510_v25 = vld [vmem:[%s1713_s6 + $0x50] sm:$0xff]   ;;  %v1512_v27 = vld [vmem:[%s1713_s6 + $0x58] sm:$0xff]  }
  0x16   : > { %v1513_v28 = vld [vmem:[%s1707_s28 + $0x60] sm:$0xff]   ;;  %v1515_v30 = vld [vmem:[%s1707_s28 + $0x68] sm:$0xff]   ;;  %v1517_v32 = vld [vmem:[%s1707_s28 + $0x70] sm:$0xff]  }
  0x17   : > { %v1514_v29 = vld [vmem:[%s1713_s6 + $0x60] sm:$0xff]   ;;  %v1516_v31 = vld [vmem:[%s1713_s6 + $0x68] sm:$0xff]   ;;  %v1518_v33 = vld [vmem:[%s1713_s6 + $0x70] sm:$0xff]  }
  0x18   : > { %1418 = vmatmul.mubr.msk.bf16.gmra.mxu0 %vm397_vm1, %v1495_v10  ;;  %v1519_v34 = vld [vmem:[%s1707_s28 + $0x78] sm:$0xff]  }
  0x19   : > { %1452 = vmatmul.mubr.msk.bf16.gmra.mxu1 %vm397_vm1, %v1496_v11  ;;  %1421 = vmatprep.mubr.msk.bf16.mxu0 %vm397_vm1, %v1497_v12  ;;  %v1520_v35 = vld [vmem:[%s1713_s6 + $0x78] sm:$0xff]  }
  0x1a   : > { %1455 = vmatprep.mubr.msk.bf16.mxu1 %vm397_vm1, %v1498_v13 }
  0x20   : > { %1422 = vmatmul.mubr.msk.bf16.gmra.mxu0 %vm397_vm1, %v1499_v14 }
  0x21   : > { %1456 = vmatmul.mubr.msk.bf16.gmra.mxu1 %vm397_vm1, %v1500_v15  ;;  %1425 = vmatprep.mubr.msk.bf16.mxu0 %vm397_vm1, %v1501_v16 }
  0x22   : > { %1459 = vmatprep.mubr.msk.bf16.mxu1 %vm397_vm1, %v1502_v17 }
  0x28   : > { %1426 = vmatmul.mubr.msk.bf16.gmra.mxu0 %vm397_vm1, %v1503_v18 }
  0x29   : > { %1460 = vmatmul.mubr.msk.bf16.gmra.mxu1 %vm397_vm1, %v1504_v19  ;;  %1429 = vmatprep.mubr.msk.bf16.mxu0 %vm397_vm1, %v1505_v20 }
  0x2a   : > { %1463 = vmatprep.mubr.msk.bf16.mxu1 %vm397_vm1, %v1506_v21 }
  0x30   : > { %1430 = vmatmul.mubr.msk.bf16.gmra.mxu0 %vm397_vm1, %v1507_v22 }
  0x31   : > { %1464 = vmatmul.mubr.msk.bf16.gmra.mxu1 %vm397_vm1, %v1508_v23  ;;  %1433 = vmatprep.mubr.msk.bf16.mxu0 %vm397_vm1, %v1509_v24 }
  0x32   : > { %1467 = vmatprep.mubr.msk.bf16.mxu1 %vm397_vm1, %v1510_v25 }
  0x38   : > { %1434 = vmatmul.mubr.msk.bf16.gmra.mxu0 %vm397_vm1, %v1511_v26 }
  0x39   : > { %1468 = vmatmul.mubr.msk.bf16.gmra.mxu1 %vm397_vm1, %v1512_v27  ;;  %1437 = vmatprep.mubr.msk.bf16.mxu0 %vm397_vm1, %v1513_v28 }
  0x3a   : > { %1471 = vmatprep.mubr.msk.bf16.mxu1 %vm397_vm1, %v1514_v29 }
  0x40   : > { %1438 = vmatmul.mubr.msk.bf16.gmra.mxu0 %vm397_vm1, %v1515_v30 }
  0x41   : > { %1472 = vmatmul.mubr.msk.bf16.gmra.mxu1 %vm397_vm1, %v1516_v31  ;;  %1441 = vmatprep.mubr.msk.bf16.mxu0 %vm397_vm1, %v1517_v32 }
  0x42   : > { %1475 = vmatprep.mubr.msk.bf16.mxu1 %vm397_vm1, %v1518_v33 }
  0x48   : > { %1442 = vmatmul.mubr.msk.bf16.gmra.mxu0 %vm397_vm1, %v1519_v34 }
  0x49   : > { %1476 = vmatmul.mubr.msk.bf16.gmra.mxu1 %vm397_vm1, %v1520_v35 }
  0xd0   : > { %v1415_v36 = vpop.f32.mrf.mxu0 }
  0xd1   : > { %v1449_v37 = vpop.f32.mrf.mxu1 }
  0xd2   : > { %v785_v39 = vadd.f32 %v1449_v37, %v1415_v36  ;;  %v484_v40 = vpop.f32.mrf.mxu0 }
  0xd3   : > { %v776_v41 = vpop.f32.mrf.mxu1 }
  0xd4   : > { %v1784_v42 = vadd.f32 %v1781_v38, %v785_v39  ;;  %v777_v43 = vadd.f32 %v776_v41, %v484_v40  ;;  %v1416_v44 = vpop.f32.mrf.mxu0 }
  0xd5   : > { %v1450_v45 = vpop.f32.mrf.mxu1 }
  0xd6   : > { %v1345_v46 = vmul.f32 -1.442695, %v1784_v42  ;;  %v1788_v47 = vadd.f32 %v1781_v38, %v777_v43  ;;  %v788_v48 = vadd.f32 %v1450_v45, %v1416_v44  ;;  %v487_v49 = vpop.f32.mrf.mxu0 }
  0xd7   : > { %v779_v50 = vpop.f32.mrf.mxu1 }
  0xd8   : > { %1521 = vpow2.f32 %v1345_v46  ;;  %v1343_v51 = vmul.f32 -1.442695, %v1788_v47  ;;  %v1792_v52 = vadd.f32 %v1781_v38, %v788_v48  ;;  %v780_v53 = vadd.f32 %v779_v50, %v487_v49  ;;  %v1419_v54 = vpop.f32.mrf.mxu0 }
  0xd9   : > { %v1453_v55 = vpop.f32.mrf.mxu1 }
  0xda   : > { %1523 = vpow2.f32 %v1343_v51  ;;  %v1346_v56 = vmul.f32 -1.442695, %v1792_v52  ;;  %v1796_v57 = vadd.f32 %v1781_v38, %v780_v53  ;;  %v801_v58 = vadd.f32 %v1453_v55, %v1419_v54  ;;  %v500_v59 = vpop.f32.mrf.mxu0 }
  0xdb   : > { %v792_v60 = vpop.f32.mrf.mxu1 }
  0xdc   : > { %1525 = vpow2.f32 %v1346_v56  ;;  %v1344_v61 = vmul.f32 -1.442695, %v1796_v57  ;;  %v1800_v62 = vadd.f32 %v1781_v38, %v801_v58  ;;  %v793_v63 = vadd.f32 %v792_v60, %v500_v59  ;;  %v1420_v0 = vpop.f32.mrf.mxu0 }
  0xdd   : > { %v1454_v1 = vpop.f32.mrf.mxu1 }
  0xde   : > { %1527 = vpow2.f32 %v1344_v61  ;;  %v1349_v2 = vmul.f32 -1.442695, %v1800_v62  ;;  %v1804_v3 = vadd.f32 %v1781_v38, %v793_v63  ;;  %v804_v4 = vadd.f32 %v1454_v1, %v1420_v0  ;;  %v503_v5 = vpop.f32.mrf.mxu0 }
  0xdf   : > { %v795_v6 = vpop.f32.mrf.mxu1 }
  0xe0   : > { %1529 = vpow2.f32 %v1349_v2  ;;  %v1347_v7 = vmul.f32 -1.442695, %v1804_v3  ;;  %v1808_v8 = vadd.f32 %v1781_v38, %v804_v4  ;;  %v796_v9 = vadd.f32 %v795_v6, %v503_v5  ;;  %v1423_v10 = vpop.f32.mrf.mxu0 }
  0xe1   : > { %v1457_v11 = vpop.f32.mrf.mxu1 }
  0xe2   : > { %1531 = vpow2.f32 %v1347_v7  ;;  %v1350_v12 = vmul.f32 -1.442695, %v1808_v8  ;;  %v1812_v13 = vadd.f32 %v1781_v38, %v796_v9  ;;  %v817_v14 = vadd.f32 %v1457_v11, %v1423_v10  ;;  %v516_v15 = vpop.f32.mrf.mxu0 }
  0xe3   : > { %v808_v16 = vpop.f32.mrf.mxu1 }
  0xe4   : > { %1533 = vpow2.f32 %v1350_v12  ;;  %v1348_v17 = vmul.f32 -1.442695, %v1812_v13  ;;  %v1816_v18 = vadd.f32 %v1781_v38, %v817_v14  ;;  %v809_v19 = vadd.f32 %v808_v16, %v516_v15  ;;  %v1424_v20 = vpop.f32.mrf.mxu0 }
  0xe5   : > { %v1522_v21 = vpop.eup %1521  ;;  %v1458_v22 = vpop.f32.mrf.mxu1 }
  0xe6   : > { %v1040_v23 = vadd.f32 1.0, %v1522_v21  ;;  %1535 = vpow2.f32 %v1348_v17  ;;  %v1353_v24 = vmul.f32 -1.442695, %v1816_v18  ;;  %v1820_v25 = vadd.f32 %v1781_v38, %v809_v19  ;;  %v519_v26 = vpop.f32.mrf.mxu0 }
  0xe7   : > { %v1524_v27 = vpop.eup %1523  ;;  %v820_v28 = vadd.f32 %v1458_v22, %v1424_v20  ;;  %v811_v29 = vpop.f32.mrf.mxu1 }
  0xe8   : > { %1537 = vrcp.f32 %v1040_v23  ;;  %v1038_v30 = vadd.f32 1.0, %v1524_v27  ;;  %v1351_v31 = vmul.f32 -1.442695, %v1820_v25  ;;  %v812_v32 = vadd.f32 %v811_v29, %v519_v26  ;;  %v1427_v33 = vpop.f32.mrf.mxu0 }
  0xe9   : > { %v1526_v34 = vpop.eup %1525  ;;  %1539 = vpow2.f32 %v1353_v24  ;;  %v1824_v35 = vadd.f32 %v1781_v38, %v820_v28  ;;  %v1461_v36 = vpop.f32.mrf.mxu1 }
  0xea   : > { %1541 = vrcp.f32 %v1038_v30  ;;  %v1041_v37 = vadd.f32 1.0, %v1526_v34  ;;  %v1827_v39 = vadd.f32 %v1781_v38, %v812_v32  ;;  %v833_v40 = vadd.f32 %v1461_v36, %v1427_v33  ;;  %v532_v41 = vpop.f32.mrf.mxu0 }
  0xeb   : > { %v1528_v43 = vpop.eup %1527  ;;  %1543 = vpow2.f32 %v1351_v31  ;;  %v1354_v44 = vmul.f32 -1.442695, %v1824_v35  ;;  %v824_v45 = vpop.f32.mrf.mxu1 }
  0xec   : > { %1545 = vrcp.f32 %v1041_v37  ;;  %v1039_v46 = vadd.f32 1.0, %v1528_v43  ;;  %v1352_v48 = vmul.f32 -1.442695, %v1827_v39  ;;  %v1832_v49 = vadd.f32 %v1781_v38, %v833_v40  ;;  %v1428_v50 = vpop.f32.mrf.mxu0 }
  0xed   : > { %v1530_v51 = vpop.eup %1529  ;;  %1547 = vpow2.f32 %v1354_v44  ;;  %v825_v53 = vadd.f32 %v824_v45, %v532_v41  ;;  %v1462_v54 = vpop.f32.mrf.mxu1 }
  0xee   : > { %1549 = vrcp.f32 %v1039_v46  ;;  %v1044_v55 = vadd.f32 1.0, %v1530_v51  ;;  %v1357_v56 = vmul.f32 -1.442695, %v1832_v49  ;;  %v836_v58 = vadd.f32 %v1462_v54, %v1428_v50  ;;  %v535_v59 = vpop.f32.mrf.mxu0 }
  0xef   : > { %v1532_v60 = vpop.eup %1531  ;;  %1551 = vpow2.f32 %v1352_v48  ;;  %v1836_v61 = vadd.f32 %v1781_v38, %v825_v53  ;;  %v827_v63 = vpop.f32.mrf.mxu1 }
  0xf0   : > { %1553 = vrcp.f32 %v1044_v55  ;;  %v1042_v0 = vadd.f32 1.0, %v1532_v60  ;;  %v1839_v1 = vadd.f32 %v1781_v38, %v836_v58  ;;  %v828_v2 = vadd.f32 %v827_v63, %v535_v59  ;;  %v1431_v4 = vpop.f32.mrf.mxu0 }
  0xf1   : > { %v1534_v5 = vpop.eup %1533  ;;  %1555 = vpow2.f32 %v1357_v56  ;;  %v1355_v6 = vmul.f32 -1.442695, %v1836_v61  ;;  %v1465_v7 = vpop.f32.mrf.mxu1 }
  0xf2   : > { %1557 = vrcp.f32 %v1042_v0  ;;  %v1045_v9 = vadd.f32 1.0, %v1534_v5  ;;  %v1358_v10 = vmul.f32 -1.442695, %v1839_v1  ;;  %v1845_v11 = vadd.f32 %v1781_v38, %v828_v2  ;;  %v548_v12 = vpop.f32.mrf.mxu0 }
  0xf3   : > { %v1536_v14 = vpop.eup %1535  ;;  %1559 = vpow2.f32 %v1355_v6  ;;  %v849_v15 = vadd.f32 %v1465_v7, %v1431_v4  ;;  %v840_v16 = vpop.f32.mrf.mxu1 }
  0xf4   : > { %1561 = vrcp.f32 %v1045_v9  ;;  %v1043_v17 = vadd.f32 1.0, %v1536_v14  ;;  %v1356_v19 = vmul.f32 -1.442695, %v1845_v11  ;;  %v841_v20 = vadd.f32 %v840_v16, %v548_v12  ;;  %v1432_v21 = vpop.f32.mrf.mxu0 }
  0xf5   : > { %v1538_v22 = vpop.eup %1537  ;;  %1563 = vpow2.f32 %v1358_v10  ;;  %v1854_v23 = vadd.f32 %v1781_v38, %v849_v15  ;;  %v1466_v24 = vpop.f32.mrf.mxu1 }
  0xf6   : > { %v1540_v26 = vpop.eup %1539  ;;  %v1136_v27 = vmul.f32 %v1538_v22, %v1784_v42  ;;  %1565 = vrcp.f32 %v1043_v17  ;;  %v1858_v28 = vadd.f32 %v1781_v38, %v841_v20  ;;  %v852_v29 = vadd.f32 %v1466_v24, %v1432_v21  ;;  %v551_v30 = vpop.f32.mrf.mxu0 }
  0xf7   : > { %v1542_v31 = vpop.eup %1541  ;;  %v1048_v32 = vadd.f32 1.0, %v1540_v26  ;;  %1567 = vpow2.f32 %v1356_v19  ;;  %v1361_v33 = vmul.f32 -1.442695, %v1854_v23  ;;  %v843_v34 = vpop.f32.mrf.mxu1 }
  0xf8   : > { %v1544_v36 = vpop.eup %1543  ;;  %1169 = vst.msk [vmem:[%s1851_s12 + $0x10] sm:$0xff] %vm1166_vm2, %v1136_v27  ;;  %v1134_v37 = vmul.f32 %v1542_v31, %v1788_v47  ;;  %v1359_v42 = vmul.f32 -1.442695, %v1858_v28  ;;  %v1866_v40 = vadd.f32 %v1781_v38, %v852_v29  ;;  %v844_v41 = vadd.f32 %v843_v34, %v551_v30  ;;  %v1435_v43 = vpop.f32.mrf.mxu0 }
  0xf9   : > { %v1546_v44 = vpop.eup %1545  ;;  %1569 = vrcp.f32 %v1048_v32  ;;  %v1046_v45 = vadd.f32 1.0, %v1544_v36  ;;  %v1469_v46 = vpop.f32.mrf.mxu1 }
  0xfa   : > { %v1548_v48 = vpop.eup %1547  ;;  %1167 = vst.msk [vmem:[%s1851_s12] sm:$0xff] %vm1166_vm2, %v1134_v37  ;;  %v1137_v50 = vmul.f32 %v1546_v44, %v1792_v52  ;;  %1571 = vpow2.f32 %v1361_v33  ;;  %v1362_v47 = vmul.f32 -1.442695, %v1866_v40  ;;  %v1873_v51 = vadd.f32 %v1781_v38, %v844_v41  ;;  %v564_v53 = vpop.f32.mrf.mxu0 }
  0xfb   : > { %v1550_v54 = vpop.eup %1549  ;;  %1573 = vrcp.f32 %v1046_v45  ;;  %v1049_v55 = vadd.f32 1.0, %v1548_v48  ;;  %v865_v56 = vadd.f32 %v1469_v46, %v1435_v43  ;;  %v856_v58 = vpop.f32.mrf.mxu1 }
  0xfc   : > { %v1552_v59 = vpop.eup %1551  ;;  %1170 = vst.msk [vmem:[%s1851_s12 + $0x18] sm:$0xff] %vm1166_vm2, %v1137_v50  ;;  %v1135_v60 = vmul.f32 %v1550_v54, %v1796_v57  ;;  %1575 = vpow2.f32 %v1359_v42  ;;  %v1360_v52 = vmul.f32 -1.442695, %v1873_v51  ;;  %v857_v63 = vadd.f32 %v856_v58, %v564_v53  ;;  %v1436_v0 = vpop.f32.mrf.mxu0 }
  0xfd   : > { %v1554_v2 = vpop.eup %1553  ;;  %1577 = vrcp.f32 %v1049_v55  ;;  %v1047_v4 = vadd.f32 1.0, %v1552_v59  ;;  %v1880_v5 = vadd.f32 %v1781_v38, %v865_v56  ;;  %v1470_v6 = vpop.f32.mrf.mxu1 }
  0xfe   : > { %v1556_v7 = vpop.eup %1555  ;;  %1168 = vst.msk [vmem:[%s1851_s12 + $0x8] sm:$0xff] %vm1166_vm2, %v1135_v60  ;;  %v1140_v9 = vmul.f32 %v1554_v2, %v1800_v62  ;;  %1579 = vpow2.f32 %v1362_v47  ;;  %v1886_v57 = vadd.f32 %v1781_v38, %v857_v63  ;;  %v868_v10 = vadd.f32 %v1470_v6, %v1436_v0  ;;  %v567_v12 = vpop.f32.mrf.mxu0 }
  0xff   : > { %v1558_v14 = vpop.eup %1557  ;;  %1581 = vrcp.f32 %v1047_v4  ;;  %v1052_v15 = vadd.f32 1.0, %v1556_v7  ;;  %v1365_v16 = vmul.f32 -1.442695, %v1880_v5  ;;  %v859_v17 = vpop.f32.mrf.mxu1 }
 0x100   : > { %v1560_v19 = vpop.eup %1559  ;;  %1173 = vst.msk [vmem:[%s1851_s12 + $0x30] sm:$0xff] %vm1166_vm2, %v1140_v9  ;;  %v1138_v20 = vmul.f32 %v1558_v14, %v1804_v3  ;;  %1583 = vpow2.f32 %v1360_v52  ;;  %v1363_v62 = vmul.f32 -1.442695, %v1886_v57  ;;  %v1894_v21 = vadd.f32 %v1781_v38, %v868_v10  ;;  %v1439_v22 = vpop.f32.mrf.mxu0 }
 0x101   : > { %v1562_v24 = vpop.eup %1561  ;;  %1585 = vrcp.f32 %v1052_v15  ;;  %v1050_v26 = vadd.f32 1.0, %v1560_v19  ;;  %v860_v27 = vadd.f32 %v859_v17, %v567_v12  ;;  %v1473_v29 = vpop.f32.mrf.mxu1 }
 0x102   : > { %v1564_v30 = vpop.eup %1563  ;;  %1171 = vst.msk [vmem:[%s1851_s12 + $0x20] sm:$0xff] %vm1166_vm2, %v1138_v20  ;;  %v1141_v31 = vmul.f32 %v1562_v24, %v1808_v8  ;;  %1587 = vpow2.f32 %v1365_v16  ;;  %v1366_v3 = vmul.f32 -1.442695, %v1894_v21  ;;  %v881_v32 = vadd.f32 %v1473_v29, %v1439_v22  ;;  %v580_v33 = vpop.f32.mrf.mxu0 }
 0x103   : > { %v1566_v34 = vpop.eup %1565  ;;  %1589 = vrcp.f32 %v1050_v26  ;;  %v1053_v36 = vadd.f32 1.0, %v1564_v30  ;;  %v1901_v37 = vadd.f32 %v1781_v38, %v860_v27  ;;  %v872_v42 = vpop.f32.mrf.mxu1 }
 0x104   : > { %v1568_v41 = vpop.eup %1567  ;;  %1174 = vst.msk [vmem:[%s1851_s12 + $0x38] sm:$0xff] %vm1166_vm2, %v1141_v31  ;;  %v1139_v43 = vmul.f32 %v1566_v34, %v1812_v13  ;;  %1591 = vpow2.f32 %v1363_v62  ;;  %v1907_v8 = vadd.f32 %v1781_v38, %v881_v32  ;;  %v873_v44 = vadd.f32 %v872_v42, %v580_v33  ;;  %v1440_v45 = vpop.f32.mrf.mxu0 }
 0x105   : > { %1593 = vrcp.f32 %v1053_v36  ;;  %v1051_v46 = vadd.f32 1.0, %v1568_v41  ;;  %v1364_v48 = vmul.f32 -1.442695, %v1901_v37  ;;  %v1474_v50 = vpop.f32.mrf.mxu1 }
 0x106   : > { %v1570_v47 = vpop.eup %1569  ;;  %1172 = vst.msk [vmem:[%s1851_s12 + $0x28] sm:$0xff] %vm1166_vm2, %v1139_v43  ;;  %1595 = vpow2.f32 %v1366_v3  ;;  %v1369_v53 = vmul.f32 -1.442695, %v1907_v8  ;;  %v1914_v13 = vadd.f32 %v1781_v38, %v873_v44  ;;  %v884_v54 = vadd.f32 %v1474_v50, %v1440_v45  ;;  %v583_v55 = vpop.f32.mrf.mxu0 }
 0x107   : > { %v1572_v56 = vpop.eup %1571  ;;  %v1144_v58 = vmul.f32 %v1570_v47, %v1816_v18  ;;  %1597 = vrcp.f32 %v1051_v46  ;;  %v875_v59 = vpop.f32.mrf.mxu1 }
 0x108   : > { %v1574_v60 = vpop.eup %1573  ;;  %v1056_v52 = vadd.f32 1.0, %v1572_v56  ;;  %1599 = vpow2.f32 %v1364_v48  ;;  %v1367_v63 = vmul.f32 -1.442695, %v1914_v13  ;;  %v1919_v0 = vadd.f32 %v1781_v38, %v884_v54  ;;  %v1443_v2 = vpop.f32.mrf.mxu0 }
 0x109   : > { %v1576_v4 = vpop.eup %1575  ;;  %1177 = vst.msk [vmem:[%s1851_s12 + $0x50] sm:$0xff] %vm1166_vm2, %v1144_v58  ;;  %v1142_v6 = vmul.f32 %v1574_v60, %v1820_v25  ;;  %1601 = vpow2.f32 %v1369_v53  ;;  %v876_v7 = vadd.f32 %v875_v59, %v583_v55  ;;  %v1477_v18 = vpop.f32.mrf.mxu1 }
 0x10a   : > { %v1578_v9 = vpop.eup %1577  ;;  %1603 = vrcp.f32 %v1056_v52  ;;  %v1054_v10 = vadd.f32 1.0, %v1576_v4  ;;  %v1370_v12 = vmul.f32 -1.442695, %v1919_v0  ;;  %v897_v14 = vadd.f32 %v1477_v18, %v1443_v2  ;;  %v596_v15 = vpop.f32.mrf.mxu0 }
 0x10b   : > { %v1580_v16 = vpop.eup %1579  ;;  %1175 = vst.msk [vmem:[%s1851_s12 + $0x40] sm:$0xff] %vm1166_vm2, %v1142_v6  ;;  %v1145_v17 = vmul.f32 %v1578_v9, %v1824_v35  ;;  %1605 = vpow2.f32 %v1367_v63  ;;  %v1929_v19 = vadd.f32 %v1781_v38, %v876_v7  ;;  %v888_v25 = vpop.f32.mrf.mxu1 }
 0x10c   : > { %v1582_v20 = vpop.eup %1581  ;;  %1607 = vrcp.f32 %v1054_v10  ;;  %v1057_v62 = vadd.f32 1.0, %v1580_v16  ;;  %v1932_v22 = vadd.f32 %v1781_v38, %v897_v14  ;;  %v889_v24 = vadd.f32 %v888_v25, %v596_v15  ;;  %v1444_v26 = vpop.f32.mrf.mxu0 }
 0x10d   : > { %v1584_v27 = vpop.eup %1583  ;;  %1178 = vst.msk [vmem:[%s1851_s12 + $0x58] sm:$0xff] %vm1166_vm2, %v1145_v17  ;;  %v1143_v29 = vmul.f32 %v1582_v20, %v1827_v39  ;;  %1609 = vpow2.f32 %v1370_v12  ;;  %v1368_v35 = vmul.f32 -1.442695, %v1929_v19  ;;  %v1478_v30 = vpop.f32.mrf.mxu1 }
 0x10e   : > { %v1586_v31 = vpop.eup %1585  ;;  %1611 = vrcp.f32 %v1057_v62  ;;  %v1055_v3 = vadd.f32 1.0, %v1584_v27  ;;  %v1373_v32 = vmul.f32 -1.442695, %v1932_v22  ;;  %v1940_v33 = vadd.f32 %v1781_v38, %v889_v24  ;;  %v599_v34 = vpop.f32.mrf.mxu0 }
 0x10f   : > { %v1588_v36 = vpop.eup %1587  ;;  %1176 = vst.msk [vmem:[%s1851_s12 + $0x48] sm:$0xff] %vm1166_vm2, %v1143_v29  ;;  %v1148_v42 = vmul.f32 %v1586_v31, %v1832_v49  ;;  %1613 = vpow2.f32 %v1368_v35  ;;  %v900_v39 = vadd.f32 %v1478_v30, %v1444_v26  ;;  %v891_v41 = vpop.f32.mrf.mxu1 }
 0x110   : > { %v1590_v43 = vpop.eup %1589  ;;  %1615 = vrcp.f32 %v1055_v3  ;;  %v1060_v44 = vadd.f32 1.0, %v1588_v36  ;;  %v1371_v45 = vmul.f32 -1.442695, %v1940_v33  ;;  %v892_v46 = vadd.f32 %v891_v41, %v599_v34 }
 0x111   : > { %v1592_v48 = vpop.eup %1591  ;;  %1181 = vst.msk [vmem:[%s1851_s12 + $0x70] sm:$0xff] %vm1166_vm2, %v1148_v42  ;;  %v1146_v50 = vmul.f32 %v1590_v43, %v1836_v61  ;;  %1617 = vpow2.f32 %v1373_v32  ;;  %v1950_v47 = vadd.f32 %v1781_v38, %v900_v39 }
 0x112   : > { %v1594_v49 = vpop.eup %1593  ;;  %1619 = vrcp.f32 %v1060_v44  ;;  %v1058_v53 = vadd.f32 1.0, %v1592_v48  ;;  %v1953_v54 = vadd.f32 %v1781_v38, %v892_v46 }
 0x113   : > { %v1596_v55 = vpop.eup %1595  ;;  %1179 = vst.msk [vmem:[%s1851_s12 + $0x60] sm:$0xff] %vm1166_vm2, %v1146_v50  ;;  %v1149_v56 = vmul.f32 %v1594_v49, %v1839_v1  ;;  %1621 = vpow2.f32 %v1371_v45  ;;  %v1374_v61 = vmul.f32 -1.442695, %v1950_v47 }
 0x114   : > { %v1598_v58 = vpop.eup %1597  ;;  %1623 = vrcp.f32 %v1058_v53  ;;  %v1061_v59 = vadd.f32 1.0, %v1596_v55  ;;  %v1372_v60 = vmul.f32 -1.442695, %v1953_v54 }
 0x115   : > { %v1600_v52 = vpop.eup %1599  ;;  %1182 = vst.msk [vmem:[%s1851_s12 + $0x78] sm:$0xff] %vm1166_vm2, %v1149_v56  ;;  %v1147_v38 = vmul.f32 %v1598_v58, %v1845_v11  ;;  %1625 = vpow2.f32 %v1374_v61 }
 0x116   : > { %v1602_v63 = vpop.eup %1601  ;;  %1627 = vrcp.f32 %v1061_v59  ;;  %v1059_v2 = vadd.f32 1.0, %v1600_v52 }
 0x117   : > { %v1604_v4 = vpop.eup %1603  ;;  %1180 = vst.msk [vmem:[%s1851_s12 + $0x68] sm:$0xff] %vm1166_vm2, %v1147_v38  ;;  %v1064_v1 = vadd.f32 1.0, %v1602_v63  ;;  %1629 = vpow2.f32 %v1372_v60 }
 0x118   : > { %v1606_v6 = vpop.eup %1605  ;;  %v1152_v7 = vmul.f32 %v1604_v4, %v1854_v23  ;;  %1631 = vrcp.f32 %v1059_v2 }
 0x119   : > { %v1608_v18 = vpop.eup %1607  ;;  %1633 = vrcp.f32 %v1064_v1  ;;  %v1062_v9 = vadd.f32 1.0, %v1606_v6 }
 0x11a   : > { %v1610_v11 = vpop.eup %1609  ;;  %1185 = vst.msk [vmem:[%s1851_s12 + $0x90] sm:$0xff] %vm1166_vm2, %v1152_v7  ;;  %v1150_v10 = vmul.f32 %v1608_v18, %v1858_v28 }
 0x11b   : > { %v1612_v12 = vpop.eup %1611  ;;  %1635 = vrcp.f32 %v1062_v9  ;;  %v1065_v14 = vadd.f32 1.0, %v1610_v11 }
 0x11c   : > { %v1614_v15 = vpop.eup %1613  ;;  %1183 = vst.msk [vmem:[%s1851_s12 + $0x80] sm:$0xff] %vm1166_vm2, %v1150_v10  ;;  %v1153_v16 = vmul.f32 %v1612_v12, %v1866_v40 }
 0x11d   : > { %v1616_v23 = vpop.eup %1615  ;;  %1637 = vrcp.f32 %v1065_v14  ;;  %v1063_v17 = vadd.f32 1.0, %v1614_v15 }
 0x11e   : > { %v1618_v25 = vpop.eup %1617  ;;  %1186 = vst.msk [vmem:[%s1851_s12 + $0x98] sm:$0xff] %vm1166_vm2, %v1153_v16  ;;  %v1151_v20 = vmul.f32 %v1616_v23, %v1873_v51 }
 0x11f   : > { %v1620_v62 = vpop.eup %1619  ;;  %1639 = vrcp.f32 %v1063_v17  ;;  %v1068_v28 = vadd.f32 1.0, %v1618_v25 }
 0x120   : > { %v1622_v24 = vpop.eup %1621  ;;  %1184 = vst.msk [vmem:[%s1851_s12 + $0x88] sm:$0xff] %vm1166_vm2, %v1151_v20  ;;  %v1156_v26 = vmul.f32 %v1620_v62, %v1880_v5 }
 0x121   : > { %v1624_v27 = vpop.eup %1623  ;;  %1641 = vrcp.f32 %v1068_v28  ;;  %v1066_v40 = vadd.f32 1.0, %v1622_v24 }
 0x122   : > { %v1626_v29 = vpop.eup %1625  ;;  %1189 = vst.msk [vmem:[%s1851_s12 + $0xb0] sm:$0xff] %vm1166_vm2, %v1156_v26  ;;  %v1154_v35 = vmul.f32 %v1624_v27, %v1886_v57 }
 0x123   : > { %v1628_v51 = vpop.eup %1627  ;;  %1643 = vrcp.f32 %v1066_v40  ;;  %v1069_v30 = vadd.f32 1.0, %v1626_v29 }
 0x124   : > { %v1630_v31 = vpop.eup %1629  ;;  %1187 = vst.msk [vmem:[%s1851_s12 + $0xa0] sm:$0xff] %vm1166_vm2, %v1154_v35  ;;  %v1157_v5 = vmul.f32 %v1628_v51, %v1894_v21 }
 0x125   : > { %v1632_v3 = vpop.eup %1631  ;;  %1645 = vrcp.f32 %v1069_v30  ;;  %v1067_v32 = vadd.f32 1.0, %v1630_v31 }
 0x126   : > { %v1634_v34 = vpop.eup %1633  ;;  %1190 = vst.msk [vmem:[%s1851_s12 + $0xb8] sm:$0xff] %vm1166_vm2, %v1157_v5  ;;  %v1155_v57 = vmul.f32 %v1632_v3, %v1901_v37 }
 0x127   : > { %v1160_v36 = vmul.f32 %v1634_v34, %v1907_v8  ;;  %1647 = vrcp.f32 %v1067_v32 }
 0x128   : > { %v1636_v42 = vpop.eup %1635  ;;  %1188 = vst.msk [vmem:[%s1851_s12 + $0xa8] sm:$0xff] %vm1166_vm2, %v1155_v57 }
 0x129   : > { %1193 = vst.msk [vmem:[%s1851_s12 + $0xd0] sm:$0xff] %vm1166_vm2, %v1160_v36  ;;  %v1158_v21 = vmul.f32 %v1636_v42, %v1914_v13 }
 0x12a   : > { %v1638_v39 = vpop.eup %1637 }
 0x12b   : > { %1191 = vst.msk [vmem:[%s1851_s12 + $0xc0] sm:$0xff] %vm1166_vm2, %v1158_v21  ;;  %v1161_v41 = vmul.f32 %v1638_v39, %v1919_v0 }
 0x12c   : > { %v1640_v37 = vpop.eup %1639 }
 0x12d   : > { %1194 = vst.msk [vmem:[%s1851_s12 + $0xd8] sm:$0xff] %vm1166_vm2, %v1161_v41  ;;  %v1159_v8 = vmul.f32 %v1640_v37, %v1929_v19 }
 0x12e   : > { %v1642_v43 = vpop.eup %1641 }
 0x12f   : > { %1192 = vst.msk [vmem:[%s1851_s12 + $0xc8] sm:$0xff] %vm1166_vm2, %v1159_v8  ;;  %v1164_v44 = vmul.f32 %v1642_v43, %v1932_v22 }
 0x130   : > { %v1644_v45 = vpop.eup %1643 }
 0x131   : > { %1197 = vst.msk [vmem:[%s1851_s12 + $0xf0] sm:$0xff] %vm1166_vm2, %v1164_v44  ;;  %v1162_v13 = vmul.f32 %v1644_v45, %v1940_v33 }
 0x132   : > { %v1646_v46 = vpop.eup %1645 }
 0x133   : > { %1195 = vst.msk [vmem:[%s1851_s12 + $0xe0] sm:$0xff] %vm1166_vm2, %v1162_v13  ;;  %v1165_v0 = vmul.f32 %v1646_v46, %v1950_v47 }
 0x134   : > { %v1648_v48 = vpop.eup %1647 }
 0x135   : > { %1198 = vst.msk [vmem:[%s1851_s12 + $0xf8] sm:$0xff] %vm1166_vm2, %v1165_v0  ;;  %v1163_v19 = vmul.f32 %v1648_v48, %v1953_v54 }
 0x137   : > { %1196 = vst.msk [vmem:[%s1851_s12 + $0xe8] sm:$0xff] %vm1166_vm2, %v1163_v19 }
 0x138 PF: > { %s15_s18 = sadd.s32 1, %s1655_s18  }
 0x139   : > { %p12_p4 = scmp.ge.s32.totalorder %s15_s18, 4  }
 0x13b   :  { %14 = sbr.rel (!%p12_p4) target bundleno = 1 (0x1), region = 73 }

// kernel: c3_forward.6
= control target key start
LH: loop header
LB: loop body
LE: loop exit
PB: predicated region body
PF: predicated region fallthrough
CT: control target
= control target key end

     0   :  { %s5290_s12 = smov 0   ;;  %s6882_s0 = inlined_call_operand.vmem [shape: bf16[2,342,2], index: 0, kind: input, shape index: {}]   ;;  %s6883_s1 = inlined_call_operand.vmem [shape: bf16[18,2], index: 1, kind: input, shape index: {}]   ;;  %s6884_s2 = inlined_call_operand.vmem [shape: f32[1,2], index: 2, kind: input, shape index: {}]   ;;  %s6885_s3 = inlined_call_operand.vmem [shape: bf16[2,288,2], index: 3, kind: output, shape index: {}]  }
   0x1 LB: > { %s4167_s13 = sadd.s32 4294967295, %s5268_s12   ;;  %p4171_p0 = scmp.ge.s32.totalorder %s5268_s12, 1  ;;  %s5268_s12 = sphi %s5290_s12, %s13_s12  }
   0x2   : > { %p137_p1 = scmp.lt.s32.totalorder %s5268_s12, 3 }
   0x4   : > { %p138_p2 = pnand %p4171_p0, %p137_p1 }
   0x6   : > { %141 = sbr.rel (%p138_p2) target bundleno = 594 (0x252), region = 32 }
   0xb   : > { %v5050_v0 = vld [vmem:[%s6883_s1] ss:$0 sps:$4 sm:$0x22]   ;;  %vm512_vm0 = vcmask 1040384   ;;  %p161_p3 = scmp.lt.s32.totalorder %s4167_s13, 1  ;;  %vm457_vm2 = vcmask 15360  }
   0xc   : > { %v456_v1 = vrot.slane %v5050_v0, 1  ;;  %v5055_v2 = vld [vmem:[%s6883_s1] ss:$0 sps:$4 sm:$0x44]   ;;  %vm304_vm1 = vsmask.f32 7424 }
   0xd   : > { %s6925_s13 = smov (!%p161_p3, %s4167_s13), 1  ;;  %v208_v3 = vld [vmem:[%s6883_s1] sm:$0x1]  ;;  %v955_v5 = vrot.slane %v5055_v2, 2  ;;  %v5369_v37 = vld [vmem:[%s6883_s1 + $0x4] sm:$0x1] }
   0xe   : > { %5030 = vmatprep.subr.msk.bf16.mxu0 %vm512_vm0, %v456_v1  ;;  %5031 = vmatprep.subr.msk.bf16.mxu1 %vm512_vm0, %v456_v1  ;;  %v514_v4 = vsel %vm512_vm0, %v456_v1, 0  ;;  %s5040_s20 = smul.u32 172, %s6925_s13  ;;  %v5318_v6 = vld [vmem:[%s6883_s1] ss:$0 sps:$4 sm:$0x88]   ;;  %v730_v7 = vsel %vm512_vm0, %v208_v3, 0 }
   0xf   : > { %4687 = vmatpush3.bf16.msra.mxu0 %v514_v4  ;;  %5029 = vmatpush3.bf16.msra.mxu1 %v514_v4  ;;  %v1011_v12 = vsel %vm512_vm0, %v955_v5, 0  ;;  %v1397_v20 = vrot.slane %v5318_v6, 3  ;;  %vm914_vm3 = vcmask 1046528   ;;  %vm2119_vm4 = vcmask 1045504   ;;  %s5041_s11 = smul.u32 144, %s6925_s13 }
  0x10   : > { %5033 = vmatprep.subr.msk.bf16.mxu0 %vm512_vm0, %v955_v5  ;;  %5032 = vmatprep.subr.msk.bf16.mxu1 %vm512_vm0, %v208_v3  ;;  %s5323_s25 = scalar_lea.vmem %s6882_s0, %s5040_s20  ;;  %vm1673_vm5 = vsmask.f32 6400  ;;  %vm3328_vm6 = vcmask 1044480   ;;  %vm2878_vm7 = vsmask.f32 5376  ;;  %vm4075_vm8 = vcmask 11264  }
  0x11   : > { %v172_v8 = vld [vmem:[%s5323_s25] sm:$0xf]  ;;  %v5328_v9 = vld [vmem:[%s5323_s25 + $0x4] sm:$0xf]  ;;  %v5334_v11 = vld [vmem:[%s5323_s25 + $0x8] sm:$0xff]   ;;  %s6668_s15 = scalar_lea.vmem %s6885_s3, %s5041_s11 }
  0x12   : > { %v5331_v10 = vcombine.low %v172_v8, %v5328_v9  ;;  %v313_v15 = vshll.u32 %v5334_v11, 16  ;;  %v317_v16 = vshrl.u32 %v5334_v11, 16  ;;  %v5342_v17 = vld [vmem:[%s5323_s25 + $0x50] sm:$0xff]   ;;  %v5345_v18 = vld [vmem:[%s5323_s25 + $0x58] sm:$0xff]   ;;  %v5357_v28 = vld [vmem:[%s5323_s25 + $0x60] sm:$0xff]  }
  0x13   : > { %v5348_v19 = vld [vmem:[%s5323_s25 + $0x10] sm:$0xff]   ;;  %v385_v23 = vshll.u32 %v5342_v17, 16  ;;  %v389_v24 = vshrl.u32 %v5342_v17, 16  ;;  %v393_v25 = vshll.u32 %v5345_v18, 16  ;;  %v397_v26 = vshrl.u32 %v5345_v18, 16  ;;  %v5362_v32 = vld [vmem:[%s5323_s25 + $0x18] sm:$0xff]  }
  0x14   : > { %v306_v13 = vshrl.u32 %v5331_v10, 16  ;;  %v308_v14 = vshll.u32 %v5331_v10, 16  ;;  %v315_v22 = vrot.slane %v313_v15, 1  ;;  %v321_v27 = vshll.u32 %v5348_v19, 16  ;;  %v5375_v41 = vld [vmem:[%s5323_s25 + $0x68] sm:$0xff]   ;;  %v5379_v43 = vld [vmem:[%s5323_s25 + $0x20] sm:$0xff]  }
  0x15   : > { %v5359_v31 = vrot.slane %v385_v23, 1  ;;  %v395_v33 = vrot.slane %v393_v25, 1  ;;  %v401_v35 = vshll.u32 %v5357_v28, 16  ;;  %v325_v36 = vshrl.u32 %v5348_v19, 16  ;;  %v5384_v48 = vld [vmem:[%s5323_s25 + $0x70] sm:$0xff]   ;;  %v5391_v53 = vld [vmem:[%s5323_s25 + $0x28] sm:$0xff]  }
  0x16   : > { %v310_v21 = vrot.slane %v308_v14, 1  ;;  %v319_v30 = vor.u32 %v317_v16, %v315_v22  ;;  %v323_v34 = vrot.slane %v321_v27, 1  ;;  %v329_v40 = vshll.u32 %v5362_v32, 16  ;;  %v5406_v1 = vld [vmem:[%s5323_s25 + $0x78] sm:$0xff]   ;;  %v5417_v14 = vld [vmem:[%s5323_s25 + $0x30] sm:$0xff]   ;;  %v5420_v15 = vld [vmem:[%s5323_s25 + $0x80] sm:$0xff]  }
  0x17   : > { %v391_v39 = vor.u32 %v389_v24, %v5359_v31  ;;  %v405_v42 = vshrl.u32 %v5357_v28, 16  ;;  %v399_v44 = vor.u32 %v397_v26, %v395_v33  ;;  %v403_v46 = vrot.slane %v401_v35, 1 }
  0x18   : > { %v311_v29 = vor.u32 %v310_v21, %v306_v13  ;;  %v324_v45 = vsel %vm304_vm1, %v319_v30, %v323_v34  ;;  %v327_v47 = vor.u32 %v325_v36, %v323_v34  ;;  %v331_v50 = vrot.slane %v329_v40, 1 }
  0x19   : > { %v396_v49 = vsel %vm304_vm1, %v391_v39, %v395_v33  ;;  %v409_v51 = vshll.u32 %v5375_v41, 16  ;;  %v333_v52 = vshrl.u32 %v5362_v32, 16  ;;  %v404_v54 = vsel %vm304_vm1, %v399_v44, %v403_v46  ;;  %v5434_v33 = vld [vmem:[%s5323_s25 + $0x88] sm:$0xff]   ;;  %v5443_v44 = vld [vmem:[%s5323_s25 + $0x40] sm:$0xff]  }
  0x1a   : > { %v316_v38 = vsel %vm304_vm1, %v311_v29, %v315_v22  ;;  %4708 = vmatprep.mubr.msk.bf16.mxu1 %vm457_vm2, %v396_v49  ;;  %v407_v55 = vor.u32 %v405_v42, %v403_v46  ;;  %v337_v56 = vshll.u32 %v5379_v43, 16  ;;  %v413_v57 = vshrl.u32 %v5375_v41, 16  ;;  %v5429_v29 = vld [vmem:[%s5323_s25 + $0x38] sm:$0xff]   ;;  %v5069_v49 = vld [vmem:[%s5323_s25 + $0x90] ss:$0 sps:$4 sm:$0x11]  }
  0x1b   : > { %4688 = vmatprep.mubr.msk.bf16.mxu0 %vm457_vm2, %v316_v38  ;;  %4709 = vmatmul.mubr.msk.bf16.vlgmr.msra.gmra.mxu1 %vm457_vm2, %v404_v54  ;;  %v332_v58 = vsel %vm304_vm1, %v327_v47, %v331_v50  ;;  %v411_v59 = vrot.slane %v409_v51, 1  ;;  %v335_v60 = vor.u32 %v333_v52, %v331_v50  ;;  %v417_v61 = vshll.u32 %v5384_v48, 16 }
  0x1c   : > { %4689 = vmatmul.mubr.msk.bf16.vlgmr.msra.gmra.mxu0 %vm457_vm2, %v324_v45  ;;  %4725 = vmatpush3.bf16.msra.mxu1 %v730_v7  ;;  %v339_v62 = vrot.slane %v337_v56, 1  ;;  %v341_v63 = vshrl.u32 %v5379_v43, 16  ;;  %v345_v0 = vshll.u32 %v5391_v53, 16  ;;  %v421_v5 = vshrl.u32 %v5384_v48, 16  ;;  %v5446_v45 = vld [vmem:[%s5323_s25 + $0x48] sm:$0xff]  }
  0x1d   : > { %4763 = vmatpush3.bf16.msra.mxu0 %v1011_v12  ;;  %4692 = vmatprep.mubr.msk.bf16.mxu0 %vm457_vm2, %v332_v58  ;;  %v412_v2 = vsel %vm304_vm1, %v407_v55, %v411_v59  ;;  %v415_v3 = vor.u32 %v413_v57, %v411_v59  ;;  %v419_v4 = vrot.slane %v417_v61, 1  ;;  %v425_v13 = vshll.u32 %v5406_v1, 16 }
  0x1e   : > { %5035 = vmatprep.subr.msk.bf16.mxu0 %vm512_vm0, %v5369_v37  ;;  %5034 = vmatprep.subr.msk.bf16.mxu1 %vm512_vm0, %v1397_v20  ;;  %v340_v7 = vsel %vm304_vm1, %v335_v60, %v339_v62  ;;  %v343_v8 = vor.u32 %v341_v63, %v339_v62  ;;  %v347_v12 = vrot.slane %v345_v0, 1  ;;  %v349_v22 = vshrl.u32 %v5391_v53, 16 }
  0x1f   : > { %4712 = vmatprep.mubr.msk.bf16.mxu1 %vm457_vm2, %v412_v2  ;;  %v420_v16 = vsel %vm304_vm1, %v415_v3, %v419_v4  ;;  %v423_v21 = vor.u32 %v421_v5, %v419_v4  ;;  %v429_v23 = vshrl.u32 %v5406_v1, 16  ;;  %v427_v25 = vrot.slane %v425_v13, 1 }
  0x20   : > { %v348_v24 = vsel %vm304_vm1, %v343_v8, %v347_v12  ;;  %v353_v26 = vshll.u32 %v5417_v14, 16  ;;  %v433_v27 = vshll.u32 %v5420_v15, 16  ;;  %v357_v30 = vshrl.u32 %v5417_v14, 16  ;;  %v909_v8 = vld [vmem:[%s5323_s25] sm:$0xe] }
  0x21   : > { %v428_v34 = vsel %vm304_vm1, %v423_v21, %v427_v25  ;;  %v351_v35 = vor.u32 %v349_v22, %v347_v12  ;;  %v361_v39 = vshll.u32 %v5429_v29, 16  ;;  %v437_v40 = vshrl.u32 %v5420_v15, 16 }
  0x22   : > { %v355_v36 = vrot.slane %v353_v26, 1  ;;  %v435_v38 = vrot.slane %v433_v27, 1  ;;  %v441_v42 = vshll.u32 %v5434_v33, 16  ;;  %v431_v46 = vor.u32 %v429_v23, %v427_v25 }
  0x23   : > { %4713 = vmatmul.mubr.msk.bf16.gmra.mxu1 %vm457_vm2, %v420_v16  ;;  %v363_v50 = vrot.slane %v361_v39, 1  ;;  %v369_v54 = vshll.u32 %v5443_v44, 16  ;;  %v365_v56 = vshrl.u32 %v5429_v29, 16  ;;  %v373_v58 = vshrl.u32 %v5443_v44, 16 }
  0x24   : > { %4693 = vmatmul.mubr.msk.bf16.gmra.mxu0 %vm457_vm2, %v340_v7  ;;  %4716 = vmatprep.mubr.msk.bf16.mxu1 %vm457_vm2, %v428_v34  ;;  %v359_v47 = vor.u32 %v357_v30, %v355_v36  ;;  %v439_v51 = vor.u32 %v437_v40, %v435_v38  ;;  %v443_v52 = vrot.slane %v441_v42, 1  ;;  %v356_v55 = vsel %vm304_vm1, %v351_v35, %v355_v36  ;;  %v5484_v30 = vld [vmem:[%s6883_s1 + $0x4] ss:$0 sps:$4 sm:$0x22]  }
  0x25   : > { %4696 = vmatprep.mubr.msk.bf16.mxu0 %vm457_vm2, %v348_v24  ;;  %v377_v59 = vshll.u32 %v5446_v45, 16  ;;  %v436_v60 = vsel %vm304_vm1, %v431_v46, %v435_v38  ;;  %v445_v61 = vshrl.u32 %v5434_v33, 16  ;;  %v449_v62 = vshll.u32 %v5069_v49, 16 }
  0x26   : > { %v364_v57 = vsel %vm304_vm1, %v359_v47, %v363_v50  ;;  %v444_v63 = vsel %vm304_vm1, %v439_v51, %v443_v52  ;;  %v371_v0 = vrot.slane %v369_v54, 1  ;;  %v367_v2 = vor.u32 %v365_v56, %v363_v50  ;;  %v2114_v51 = vld [vmem:[%s5323_s25 + $0x8] sm:$0xc]  ;;  %v5551_v54 = vld [vmem:[%s5323_s25 + $0x10] sm:$0xff]  }
  0x27   : > { %v379_v4 = vrot.slane %v377_v59, 1  ;;  %v447_v5 = vor.u32 %v445_v61, %v443_v52  ;;  %v451_v7 = vrot.slane %v449_v62, 1  ;;  %v381_v13 = vshrl.u32 %v5446_v45, 16  ;;  %v5567_v61 = vld [vmem:[%s5323_s25 + $0x28] sm:$0xff]  }
  0x28   : > { %v375_v3 = vor.u32 %v373_v58, %v371_v0  ;;  %v372_v12 = vsel %vm304_vm1, %v367_v2, %v371_v0  ;;  %v4230_v21 = vcombine.low %v909_v8, %v5328_v9  ;;  %v948_v23 = vrot.slane %v5434_v33, 1  ;;  %v5593_v8 = vld [vmem:[%s5323_s25 + $0x40] sm:$0xff]  }
  0x29   : > { %v452_v22 = vsel %vm304_vm1, %v447_v5, %v451_v7  ;;  %v383_v24 = vor.u32 %v381_v13, %v379_v4  ;;  %v950_v25 = vrot.slane %v5069_v49, 1  ;;  %v916_v27 = vrot.slane %v5334_v11, 1  ;;  %v5586_v5 = vld [vmem:[%s5323_s25 + $0x38] sm:$0xff]  }
  0x2a   : > { %v380_v16 = vsel %vm304_vm1, %v375_v3, %v379_v4  ;;  %v915_v26 = vrot.slane %v4230_v21, 1  ;;  %v2160_v36 = vrot.slane %v5484_v30, 1  ;;  %v918_v38 = vrot.slane %v5348_v19, 1  ;;  %v5582_v3 = vld [vmem:[%s5323_s25 + $0x30] sm:$0xff]  }
  0x2b   : > { %4717 = vmatmul.mubr.msk.bf16.gmra.mxu1 %vm457_vm2, %v436_v60  ;;  %v5479_v9 = vsel %vm914_vm3, %v948_v23, %v950_v25  ;;  %v388_v34 = vsel %vm304_vm1, %v383_v24, %v5359_v31  ;;  %v920_v39 = vrot.slane %v5362_v32, 1  ;;  %v5502_v31 = vld [vmem:[%s6883_s1 + $0x4] ss:$0 sps:$4 sm:$0x44]   ;;  %v924_v42 = vrot.slane %v5391_v53, 1 }
  0x2c   : > { %4697 = vmatmul.mubr.msk.bf16.gmra.mxu0 %vm457_vm2, %v356_v55  ;;  %4720 = vmatprep.mubr.msk.bf16.mxu1 %vm457_vm2, %v444_v63  ;;  %v917_v35 = vsel %vm914_vm3, %v915_v26, %v916_v27  ;;  %v919_v6 = vsel %vm914_vm3, %v916_v27, %v918_v38  ;;  %v2602_v40 = vrot.slane %v5502_v31, 2  ;;  %v928_v47 = vrot.slane %v5429_v29, 1 }
  0x2d   : > { %4700 = vmatprep.mubr.msk.bf16.mxu0 %vm457_vm2, %v364_v57  ;;  %v930_v50 = vrot.slane %v5443_v44, 1  ;;  %v5556_v57 = vld [vmem:[%s5323_s25 + $0x18] sm:$0xff]   ;;  %v2121_v58 = vrot.slane %v5551_v54, 2  ;;  %v934_v60 = vrot.slane %v5342_v17, 1  ;;  %v936_v63 = vrot.slane %v5345_v18, 1 }
  0x2e   : > { %v2123_v59 = vrot.slane %v5556_v57, 2  ;;  %v2127_v4 = vrot.slane %v5567_v61, 2  ;;  %v2129_v13 = vrot.slane %v5582_v3, 2  ;;  %v2131_v21 = vrot.slane %v5586_v5, 2 }
  0x2f   : > { %v931_v52 = vsel %vm914_vm3, %v928_v47, %v930_v50  ;;  %v2133_v24 = vrot.slane %v5593_v8, 2  ;;  %v938_v27 = vrot.slane %v5357_v28, 1 }
  0x30   : > { %v5576_v0 = vsel %vm2119_vm4, %v2121_v58, %v2123_v59  ;;  %v5610_v25 = vsel %vm2119_vm4, %v2129_v13, %v2131_v21 }
  0x33   : > { %4721 = vmatmul.mubr.msk.bf16.gmra.mxu1 %vm457_vm2, %v452_v22  ;;  %v5605_v22 = vsel %vm2119_vm4, %v2127_v4, %v2129_v13 }
  0x34   : > { %4701 = vmatmul.mubr.msk.bf16.gmra.mxu0 %vm457_vm2, %v372_v12  ;;  %4726 = vmatprep.mubr.msk.bf16.mxu1 %vm457_vm2, %v5331_v10  ;;  %v1453_v10 = vsel %vm512_vm0, %v1397_v20, 0  ;;  %v921_v20 = vsel %vm914_vm3, %v918_v38, %v920_v39  ;;  %v5627_v38 = vld [vmem:[%s5323_s25 + $0x50] sm:$0xff]  }
  0x35   : > { %4704 = vmatprep.mubr.msk.bf16.mxu0 %vm457_vm2, %v380_v16  ;;  %v5601_v16 = vld [vmem:[%s5323_s25 + $0x48] sm:$0xff]  }
  0x36   : > { %v2135_v26 = vrot.slane %v5601_v16, 2 }
  0x3b   : > { %4727 = vmatmul.mubr.msk.bf16.vlgmr.msra.gmra.mxu1 %vm457_vm2, %v5334_v11  ;;  %v1899_v11 = vsel %vm512_vm0, %v5369_v37, 0 }
  0x3c   : > { %4705 = vmatmul.mubr.msk.bf16.gmra.mxu0 %vm457_vm2, %v388_v34  ;;  %4801 = vmatpush3.bf16.msra.mxu1 %v1453_v10  ;;  %v5616_v34 = vsel %vm2119_vm4, %v2131_v21, %v2133_v24  ;;  %v5622_v10 = vsel %vm2119_vm4, %v2133_v24, %v2135_v26 }
  0x3d   : > { %4764 = vmatprep.mubr.msk.bf16.mxu0 %vm457_vm2, %v917_v35  ;;  %4730 = vmatprep.mubr.msk.bf16.mxu1 %vm457_vm2, %v5348_v19  ;;  %v922_v19 = vrot.slane %v5379_v43, 1  ;;  %v940_v35 = vrot.slane %v5375_v41, 1 }
  0x3e   : > { %5036 = vmatprep.subr.msk.bf16.mxu1 %vm512_vm0, %v2160_v36 }
  0x3f   : > { %v923_v37 = vsel %vm914_vm3, %v920_v39, %v922_v19  ;;  %v925_v46 = vsel %vm914_vm3, %v922_v19, %v924_v42  ;;  %v939_v39 = vsel %vm914_vm3, %v936_v63, %v938_v27 }
  0x43   : > { %4731 = vmatmul.mubr.msk.bf16.gmra.mxu1 %vm457_vm2, %v5362_v32  ;;  %v926_v32 = vrot.slane %v5417_v14, 1 }
  0x44   : > { %4765 = vmatmul.mubr.msk.bf16.vlgmr.msra.gmra.mxu0 %vm457_vm2, %v919_v6  ;;  %4734 = vmatprep.mubr.msk.bf16.mxu1 %vm457_vm2, %v5379_v43  ;;  %v5631_v6 = vld [vmem:[%s5323_s25 + $0x58] sm:$0xff]  }
  0x45   : > { %4839 = vmatpush3.bf16.msra.mxu0 %v1899_v11  ;;  %4768 = vmatprep.mubr.msk.bf16.mxu0 %vm457_vm2, %v921_v20  ;;  %v927_v43 = vsel %vm914_vm3, %v924_v42, %v926_v32  ;;  %v929_v49 = vsel %vm914_vm3, %v926_v32, %v928_v47  ;;  %v941_v11 = vsel %vm914_vm3, %v938_v27, %v940_v35  ;;  %v2139_v20 = vrot.slane %v5631_v6, 2  ;;  %v5652_v32 = vld [vmem:[%s5323_s25 + $0x60] sm:$0xff]  }
  0x46   : > { %5037 = vmatprep.subr.msk.bf16.mxu0 %vm512_vm0, %v2602_v40 }
  0x4b   : > { %4735 = vmatmul.mubr.msk.bf16.gmra.mxu1 %vm457_vm2, %v5391_v53  ;;  %v932_v53 = vrot.slane %v5446_v45, 1 }
  0x4c   : > { %4769 = vmatmul.mubr.msk.bf16.gmra.mxu0 %vm457_vm2, %v923_v37  ;;  %4738 = vmatprep.mubr.msk.bf16.mxu1 %vm457_vm2, %v5417_v14  ;;  %v5547_v14 = vld [vmem:[%s5323_s25 + $0xc] sm:$0xf]  ;;  %v944_v37 = vrot.slane %v5406_v1, 1 }
  0x4d   : > { %4772 = vmatprep.mubr.msk.bf16.mxu0 %vm457_vm2, %v925_v46  ;;  %v4307_v55 = vcombine.low %v2114_v51, %v5547_v14  ;;  %v933_v56 = vsel %vm914_vm3, %v930_v50, %v932_v53  ;;  %v1226_v46 = vld [vmem:[%s5323_s25 + $0x8] sm:$0xe]  ;;  %v2141_v50 = vrot.slane %v5652_v32, 2  ;;  %v946_v51 = vrot.slane %v5420_v15, 1 }
  0x53   : > { %4739 = vmatmul.mubr.msk.bf16.gmra.mxu1 %vm457_vm2, %v5429_v29  ;;  %v2120_v29 = vrot.slane %v4307_v55, 2 }
  0x54   : > { %4773 = vmatmul.mubr.msk.bf16.gmra.mxu0 %vm457_vm2, %v927_v43  ;;  %4742 = vmatprep.mubr.msk.bf16.mxu1 %vm457_vm2, %v5443_v44  ;;  %v5561_v44 = vld [vmem:[%s5323_s25 + $0x20] sm:$0xff]   ;;  %v5656_v43 = vld [vmem:[%s5323_s25 + $0x68] sm:$0xff]  }
  0x55   : > { %4776 = vmatprep.mubr.msk.bf16.mxu0 %vm457_vm2, %v929_v49  ;;  %v5570_v62 = vsel %vm2119_vm4, %v2120_v29, %v2121_v58  ;;  %v2125_v2 = vrot.slane %v5561_v44, 2  ;;  %v1686_v29 = vshll.u32 %v5551_v54, 16 }
  0x57   : > { %v5589_v7 = vsel %vm2119_vm4, %v2123_v59, %v2125_v2  ;;  %v5596_v12 = vsel %vm2119_vm4, %v2125_v2, %v2127_v4  ;;  %v1358_v59 = vrot.slane %v5551_v54, 1  ;;  %v949_v2 = vsel %vm914_vm3, %v946_v51, %v948_v23  ;;  %v5686_v4 = vld [vmem:[%s5323_s25 + $0x78] sm:$0xff]  }
  0x58   : > { %v1692_v23 = vshrl.u32 %v5556_v57, 16 }
  0x5b   : > { %4743 = vmatmul.mubr.msk.bf16.gmra.mxu1 %vm457_vm2, %v5446_v45  ;;  %v935_v45 = vsel %vm914_vm3, %v932_v53, %v934_v60  ;;  %v4250_v53 = vcombine.low %v1226_v46, %v5547_v14  ;;  %v5714_v46 = vld [vmem:[%s6883_s1 + $0x4] ss:$0 sps:$4 sm:$0x88]  }
  0x5c   : > { %4777 = vmatmul.mubr.msk.bf16.gmra.mxu0 %vm457_vm2, %v931_v52  ;;  %4746 = vmatprep.mubr.msk.bf16.mxu1 %vm457_vm2, %v5342_v17  ;;  %v937_v17 = vsel %vm914_vm3, %v934_v60, %v936_v63  ;;  %v5679_v60 = vld [vmem:[%s5323_s25 + $0x70] sm:$0xff]   ;;  %v947_v63 = vsel %vm914_vm3, %v944_v37, %v946_v51 }
  0x5d   : > { %4780 = vmatprep.mubr.msk.bf16.mxu0 %vm457_vm2, %v933_v56  ;;  %v1675_v52 = vshrl.u32 %v4250_v53, 16  ;;  %v1678_v14 = vshll.u32 %v4250_v53, 16  ;;  %v1683_v56 = vshrl.u32 %v5551_v54, 16  ;;  %v1357_v58 = vrot.slane %v4250_v53, 1 }
  0x5e   : > { %v2145_v21 = vrot.slane %v5679_v60, 2 }
  0x5f   : > { %v1685_v13 = vrot.slane %v1683_v56, 1  ;;  %v1359_v54 = vsel %vm914_vm3, %v1357_v58, %v1358_v59  ;;  %v3052_v56 = vrot.slane %v5714_v46, 3  ;;  %v5920_v46 = vld [vmem:[%s5323_s25 + $0x30] sm:$0xff]  }
  0x63   : > { %4747 = vmatmul.mubr.msk.bf16.gmra.mxu1 %vm457_vm2, %v5345_v18  ;;  %v2137_v18 = vrot.slane %v5627_v38, 2 }
  0x64   : > { %4781 = vmatmul.mubr.msk.bf16.gmra.mxu0 %vm457_vm2, %v935_v45  ;;  %4750 = vmatprep.mubr.msk.bf16.mxu1 %vm457_vm2, %v5357_v28  ;;  %v942_v28 = vrot.slane %v5384_v48, 1  ;;  %v1680_v45 = vrot.slane %v1678_v14, 2 }
  0x65   : > { %4784 = vmatprep.mubr.msk.bf16.mxu0 %vm457_vm2, %v937_v17  ;;  %v5638_v19 = vsel %vm2119_vm4, %v2135_v26, %v2137_v18  ;;  %v5643_v42 = vsel %vm2119_vm4, %v2137_v18, %v2139_v20  ;;  %v1688_v17 = vrot.slane %v1686_v29, 2  ;;  %v1695_v26 = vshll.u32 %v5556_v57, 16 }
  0x66   : > { %v943_v47 = vsel %vm914_vm3, %v940_v35, %v942_v28  ;;  %v945_v49 = vsel %vm914_vm3, %v942_v28, %v944_v37  ;;  %v1704_v18 = vshll.u32 %v5561_v44, 16  ;;  %v1362_v28 = vrot.slane %v5561_v44, 1  ;;  %v5709_v37 = vld [vmem:[%s5323_s25 + $0x80] sm:$0xff]  }
  0x6b   : > { %4751 = vmatmul.mubr.msk.bf16.gmra.mxu1 %vm457_vm2, %v5375_v41  ;;  %v2143_v41 = vrot.slane %v5656_v43, 2 }
  0x6c   : > { %4785 = vmatmul.mubr.msk.bf16.gmra.mxu0 %vm457_vm2, %v939_v39  ;;  %4754 = vmatprep.mubr.msk.bf16.mxu1 %vm457_vm2, %v5384_v48  ;;  %v5664_v48 = vsel %vm2119_vm4, %v2139_v20, %v2141_v50  ;;  %v1689_v39 = vor.u32 %v1688_v17, %v1685_v13  ;;  %v1360_v20 = vrot.slane %v5556_v57, 1  ;;  %v2149_v57 = vrot.slane %v5709_v37, 2  ;;  %v5746_v13 = vld [vmem:[%s5323_s25 + $0x90] sm:$0xff]  }
  0x6d   : > { %4788 = vmatprep.mubr.msk.bf16.mxu0 %vm457_vm2, %v941_v11  ;;  %v5669_v55 = vsel %vm2119_vm4, %v2141_v50, %v2143_v41  ;;  %v5693_v24 = vsel %vm2119_vm4, %v2143_v41, %v2145_v21  ;;  %v1701_v11 = vshrl.u32 %v5561_v44, 16  ;;  %v1706_v41 = vrot.slane %v1704_v18, 2 }
  0x6e   : > { %v1361_v51 = vsel %vm914_vm3, %v1358_v59, %v1360_v20  ;;  %v1363_v14 = vsel %vm914_vm3, %v1360_v20, %v1362_v28  ;;  %v1710_v59 = vshrl.u32 %v5567_v61, 16 }
  0x6f   : > { %v1703_v53 = vrot.slane %v1701_v11, 1 }
  0x71   : > { %v1707_v30 = vor.u32 %v1706_v41, %v1703_v53  ;;  %v1737_v53 = vshrl.u32 %v5593_v8, 16  ;;  %v1740_v41 = vshll.u32 %v5593_v8, 16 }
  0x73   : > { %4755 = vmatmul.mubr.msk.bf16.gmra.mxu1 %vm457_vm2, %v5406_v1  ;;  %v1677_v1 = vrot.slane %v1675_v52, 1  ;;  %v2216_v52 = vsel %vm512_vm0, %v2160_v36, 0  ;;  %v1719_v36 = vshrl.u32 %v5582_v3, 16 }
  0x74   : > { %4789 = vmatmul.mubr.msk.bf16.gmra.mxu0 %vm457_vm2, %v943_v47  ;;  %4758 = vmatprep.mubr.msk.bf16.mxu1 %vm457_vm2, %v5420_v15  ;;  %v2147_v15 = vrot.slane %v5686_v4, 2  ;;  %v1697_v47 = vrot.slane %v1695_v26, 2 }
  0x75   : > { %4792 = vmatprep.mubr.msk.bf16.mxu0 %vm457_vm2, %v945_v49  ;;  %v1681_v35 = vor.u32 %v1680_v45, %v1677_v1  ;;  %v5717_v49 = vld [vmem:[%s5323_s25 + $0x88] sm:$0xff]   ;;  %v1364_v1 = vrot.slane %v5567_v61, 1  ;;  %v1366_v45 = vrot.slane %v5582_v3, 1  ;;  %v1721_v26 = vrot.slane %v1719_v36, 1 }
  0x76   : > { %v5699_v27 = vsel %vm2119_vm4, %v2145_v21, %v2147_v15  ;;  %v2151_v44 = vrot.slane %v5717_v49, 2  ;;  %v5731_v29 = vsel %vm2119_vm4, %v2147_v15, %v2149_v57  ;;  %v2658_v21 = vsel %vm512_vm0, %v2602_v40, 0 }
  0x77   : > { %v1690_v50 = vsel %vm1673_vm5, %v1681_v35, %v1689_v39  ;;  %v1712_v15 = vrot.slane %v1710_v59, 1  ;;  %v2153_v35 = vrot.slane %v5746_v13, 2  ;;  %v1365_v11 = vsel %vm914_vm3, %v1362_v28, %v1364_v1 }
  0x78   : > { %v1367_v40 = vsel %vm914_vm3, %v1364_v1, %v1366_v45  ;;  %v1728_v28 = vshrl.u32 %v5586_v5, 16  ;;  %v1739_v59 = vrot.slane %v1737_v53, 1 }
  0x79   : > { %v5770_v18 = vsel %vm2119_vm4, %v2151_v44, %v2153_v35 }
  0x7b   : > { %4759 = vmatmul.mubr.msk.bf16.gmra.mxu1 %vm457_vm2, %v5434_v33  ;;  %v1694_v33 = vrot.slane %v1692_v23, 1  ;;  %v5756_v23 = vld [vmem:[%s5323_s25 + $0x98] ss:$0 sps:$4 sm:$0x33]  }
  0x7c   : > { %4793 = vmatmul.mubr.msk.bf16.gmra.mxu0 %vm457_vm2, %v947_v63  ;;  %4802 = vmatprep.mubr.msk.bf16.mxu1 %vm457_vm2, %v1359_v54  ;;  %v1713_v63 = vshll.u32 %v5567_v61, 16  ;;  %v2155_v31 = vrot.slane %v5756_v23, 2 }
  0x7d   : > { %4796 = vmatprep.mubr.msk.bf16.mxu0 %vm457_vm2, %v949_v2  ;;  %v1698_v58 = vor.u32 %v1697_v47, %v1694_v33  ;;  %v1722_v2 = vshll.u32 %v5582_v3, 16  ;;  %v1731_v33 = vshll.u32 %v5586_v5, 16 }
  0x7e   : > { %v1715_v54 = vrot.slane %v1713_v63, 2  ;;  %v5776_v47 = vsel %vm2119_vm4, %v2153_v35, %v2155_v31  ;;  %v1742_v63 = vrot.slane %v1740_v41, 2 }
  0x7f   : > { %v1699_v17 = vsel %vm1673_vm5, %v1689_v39, %v1698_v58  ;;  %v1708_v61 = vsel %vm1673_vm5, %v1698_v58, %v1707_v30  ;;  %v1724_v3 = vrot.slane %v1722_v2, 2  ;;  %v5764_v39 = vld [vmem:[%s6883_s1 + $0x8] sm:$0x1] }
  0x80   : > { %v1716_v20 = vor.u32 %v1715_v54, %v1712_v15  ;;  %v1743_v1 = vor.u32 %v1742_v63, %v1739_v59  ;;  %v1374_v15 = vrot.slane %v5627_v38, 1  ;;  %v5801_v54 = vld [vmem:[%s5323_s25 + $0x14] sm:$0xf]  ;;  %v1776_v59 = vshll.u32 %v5652_v32, 16 }
  0x83   : > { %4803 = vmatmul.mubr.msk.bf16.vlgmr.msra.gmra.mxu1 %vm457_vm2, %v1361_v51  ;;  %v1370_v51 = vrot.slane %v5593_v8, 1  ;;  %v1746_v8 = vshrl.u32 %v5601_v16, 16 }
  0x84   : > { %4797 = vmatmul.mubr.msk.bf16.gmra.mxu0 %vm457_vm2, %v5479_v9  ;;  %v5737_v9 = vsel %vm2119_vm4, %v2149_v57, %v2151_v44  ;;  %4877 = vmatpush3.bf16.msra.mxu1 %v2216_v52  ;;  %v1368_v57 = vrot.slane %v5586_v5, 1  ;;  %v1717_v44 = vsel %vm1673_vm5, %v1707_v30, %v1716_v20  ;;  %v1730_v52 = vrot.slane %v1728_v28, 1 }
  0x85   : > { %4840 = vmatprep.mubr.msk.bf16.mxu0 %vm457_vm2, %v1690_v50  ;;  %4806 = vmatprep.mubr.msk.bf16.mxu1 %vm457_vm2, %v1363_v14  ;;  %v1725_v50 = vor.u32 %v1724_v3, %v1721_v26  ;;  %v1733_v14 = vrot.slane %v1731_v33, 2  ;;  %v1749_v30 = vshll.u32 %v5601_v16, 16  ;;  %v1748_v3 = vrot.slane %v1746_v8, 1  ;;  %v5811_v33 = vld [vmem:[%s5323_s25 + $0x20] sm:$0xff]  }
  0x86   : > { %5038 = vmatprep.subr.msk.bf16.mxu1 %vm512_vm0, %v3052_v56  ;;  %v1369_v36 = vsel %vm914_vm3, %v1366_v45, %v1368_v57  ;;  %v1371_v2 = vsel %vm914_vm3, %v1368_v57, %v1370_v51  ;;  %v1758_v45 = vshll.u32 %v5627_v38, 16  ;;  %v6886_v41 = vrot.slane %v5811_v33, 3 }
  0x87   : > { %v1726_v58 = vsel %vm1673_vm5, %v1716_v20, %v1725_v50  ;;  %v1734_v5 = vor.u32 %v1733_v14, %v1730_v52  ;;  %v1751_v35 = vrot.slane %v1749_v30, 2  ;;  %v1767_v52 = vshll.u32 %v5631_v6, 16 }
  0x88   : > { %v1760_v28 = vrot.slane %v1758_v45, 2 }
  0x89   : > { %v1735_v26 = vsel %vm1673_vm5, %v1725_v50, %v1734_v5  ;;  %v1752_v57 = vor.u32 %v1751_v35, %v1748_v3  ;;  %v1769_v30 = vrot.slane %v1767_v52, 2  ;;  %v1791_v35 = vshrl.u32 %v5679_v60, 16 }
  0x8b   : > { %4807 = vmatmul.mubr.msk.bf16.gmra.mxu1 %vm457_vm2, %v1365_v11  ;;  %v5806_v11 = vld [vmem:[%s5323_s25 + $0x18] sm:$0xff]  }
  0x8c   : > { %4841 = vmatmul.mubr.msk.bf16.vlgmr.msra.gmra.mxu0 %vm457_vm2, %v1699_v17  ;;  %4810 = vmatprep.mubr.msk.bf16.mxu1 %vm457_vm2, %v1367_v40  ;;  %v1755_v17 = vshrl.u32 %v5627_v38, 16  ;;  %v1744_v40 = vsel %vm1673_vm5, %v1734_v5, %v1743_v1  ;;  %v3330_v53 = vrot.slane %v5806_v11, 3  ;;  %v1753_v5 = vsel %vm1673_vm5, %v1743_v1, %v1752_v57 }
  0x8d   : > { %4915 = vmatpush3.bf16.msra.mxu0 %v2658_v21  ;;  %4844 = vmatprep.mubr.msk.bf16.mxu0 %vm457_vm2, %v1708_v61  ;;  %v1372_v21 = vrot.slane %v5601_v16, 1  ;;  %v3323_v61 = vld [vmem:[%s5323_s25 + $0x10] sm:$0x8] }
  0x8e   : > { %5039 = vmatprep.subr.msk.bf16.mxu0 %vm512_vm0, %v5764_v39  ;;  %v4385_v31 = vcombine.low %v3323_v61, %v5801_v54  ;;  %v1757_v20 = vrot.slane %v1755_v17, 1  ;;  %v5830_v63 = vsel %vm3328_vm6, %v3330_v53, %v6886_v41 }
  0x8f   : > { %v1373_v16 = vsel %vm914_vm3, %v1370_v51, %v1372_v21  ;;  %v1375_v50 = vsel %vm914_vm3, %v1372_v21, %v1374_v15  ;;  %v1778_v21 = vrot.slane %v1776_v59, 2  ;;  %v1812_v59 = vshll.u32 %v5709_v37, 16 }
  0x90   : > { %v3329_v38 = vrot.slane %v4385_v31, 3  ;;  %v1761_v51 = vor.u32 %v1760_v28, %v1757_v20  ;;  %v1794_v31 = vshll.u32 %v5679_v60, 16 }
  0x92   : > { %v5822_v14 = vsel %vm3328_vm6, %v3329_v38, %v3330_v53  ;;  %v1762_v17 = vsel %vm1673_vm5, %v1752_v57, %v1761_v51  ;;  %v1793_v53 = vrot.slane %v1791_v35, 1  ;;  %v1388_v35 = vrot.slane %v5717_v49, 1 }
  0x93   : > { %4811 = vmatmul.mubr.msk.bf16.gmra.mxu1 %vm457_vm2, %v1369_v36  ;;  %v1376_v36 = vrot.slane %v5631_v6, 1 }
  0x94   : > { %4845 = vmatmul.mubr.msk.bf16.gmra.mxu0 %vm457_vm2, %v1717_v44  ;;  %4814 = vmatprep.mubr.msk.bf16.mxu1 %vm457_vm2, %v1371_v2  ;;  %v1764_v44 = vshrl.u32 %v5631_v6, 16  ;;  %v1378_v2 = vrot.slane %v5652_v32, 1  ;;  %v1782_v6 = vshrl.u32 %v5656_v43, 16 }
  0x95   : > { %4848 = vmatprep.mubr.msk.bf16.mxu0 %vm457_vm2, %v1726_v58  ;;  %v1773_v58 = vshrl.u32 %v5652_v32, 16  ;;  %v1377_v61 = vsel %vm914_vm3, %v1374_v15, %v1376_v36  ;;  %v1785_v32 = vshll.u32 %v5656_v43, 16  ;;  %v1380_v15 = vrot.slane %v5656_v43, 1 }
  0x96   : > { %v1766_v8 = vrot.slane %v1764_v44, 1  ;;  %v1784_v28 = vrot.slane %v1782_v6, 1  ;;  %v1800_v43 = vshrl.u32 %v5686_v4, 16 }
  0x97   : > { %v1775_v45 = vrot.slane %v1773_v58, 1  ;;  %v1381_v57 = vsel %vm914_vm3, %v1378_v2, %v1380_v15  ;;  %v1809_v58 = vshrl.u32 %v5709_v37, 16 }
  0x98   : > { %v1770_v3 = vor.u32 %v1769_v30, %v1766_v8  ;;  %v1802_v8 = vrot.slane %v1800_v43, 1 }
  0x99   : > { %v1779_v1 = vor.u32 %v1778_v21, %v1775_v45  ;;  %v1811_v45 = vrot.slane %v1809_v58, 1  ;;  %v1814_v21 = vrot.slane %v1812_v59, 2 }
  0x9a   : > { %v1771_v20 = vsel %vm1673_vm5, %v1761_v51, %v1770_v3 }
  0x9b   : > { %4815 = vmatmul.mubr.msk.bf16.gmra.mxu1 %vm457_vm2, %v1373_v16  ;;  %v1787_v16 = vrot.slane %v1785_v32, 2  ;;  %v1780_v38 = vsel %vm1673_vm5, %v1770_v3, %v1779_v1  ;;  %v1815_v6 = vor.u32 %v1814_v21, %v1811_v45  ;;  %v1827_v32 = vshrl.u32 %v5746_v13, 16  ;;  %v5905_v45 = vld [vmem:[%s5323_s25 + $0x28] sm:$0xff]  }
  0x9c   : > { %4849 = vmatmul.mubr.msk.bf16.gmra.mxu0 %vm457_vm2, %v1735_v26  ;;  %4818 = vmatprep.mubr.msk.bf16.mxu1 %vm457_vm2, %v1375_v50  ;;  %v1379_v26 = vsel %vm914_vm3, %v1376_v36, %v1378_v2  ;;  %v1796_v50 = vrot.slane %v1794_v31, 2  ;;  %v1384_v36 = vrot.slane %v5686_v4, 1  ;;  %v1386_v2 = vrot.slane %v5709_v37, 1 }
  0x9d   : > { %4852 = vmatprep.mubr.msk.bf16.mxu0 %vm457_vm2, %v1744_v40  ;;  %v1382_v40 = vrot.slane %v5679_v60, 1  ;;  %v1788_v52 = vor.u32 %v1787_v16, %v1784_v28  ;;  %v1803_v60 = vshll.u32 %v5686_v4, 16  ;;  %v1818_v4 = vshrl.u32 %v5717_v49, 16 }
  0x9e   : > { %v1797_v51 = vor.u32 %v1796_v50, %v1793_v53  ;;  %v1821_v37 = vshll.u32 %v5717_v49, 16  ;;  %v1390_v31 = vrot.slane %v5746_v13, 1  ;;  %v1829_v16 = vrot.slane %v1827_v32, 1  ;;  %v5093_v50 = vld [vmem:[%s5323_s25 + $0x98] ss:$0 sps:$4 sm:$0x11]  }
  0x9f   : > { %v1383_v44 = vsel %vm914_vm3, %v1380_v15, %v1382_v40  ;;  %v1805_v30 = vrot.slane %v1803_v60, 2  ;;  %v1389_v53 = vsel %vm914_vm3, %v1386_v2, %v1388_v35  ;;  %v1392_v43 = vrot.slane %v5093_v50, 1  ;;  %v2431_v60 = vld [vmem:[%s5323_s25 + $0x10] sm:$0xc]  ;;  %v5942_v32 = vld [vmem:[%s5323_s25 + $0x48] sm:$0xff]  }
  0xa0   : > { %v3108_v21 = vsel %vm512_vm0, %v3052_v56, 0  ;;  %v3421_v56 = vsel %vm512_vm0, %v5764_v39, 0 }
  0xa1   : > { %v1806_v3 = vor.u32 %v1805_v30, %v1802_v8  ;;  %v2563_v30 = vrot.slane %v5806_v11, 2 }
  0xa3   : > { %4819 = vmatmul.mubr.msk.bf16.gmra.mxu1 %vm457_vm2, %v1377_v61  ;;  %v1385_v61 = vsel %vm914_vm3, %v1382_v40, %v1384_v36  ;;  %v1807_v15 = vsel %vm1673_vm5, %v1797_v51, %v1806_v3  ;;  %v1820_v40 = vrot.slane %v1818_v4, 1  ;;  %v1816_v28 = vsel %vm1673_vm5, %v1806_v3, %v1815_v6  ;;  %v5926_v4 = vld [vmem:[%s5323_s25 + $0x38] sm:$0xff]  }
  0xa4   : > { %4853 = vmatmul.mubr.msk.bf16.gmra.mxu0 %vm457_vm2, %v1753_v5  ;;  %4822 = vmatprep.mubr.msk.bf16.mxu1 %vm457_vm2, %v1379_v26  ;;  %v1789_v5 = vsel %vm1673_vm5, %v1779_v1, %v1788_v52  ;;  %v1387_v26 = vsel %vm914_vm3, %v1384_v36, %v1386_v2  ;;  %v1830_v1 = vshll.u32 %v5746_v13, 16  ;;  %v1836_v13 = vshrl.u32 %v5756_v23, 16 }
  0xa5   : > { %4856 = vmatprep.mubr.msk.bf16.mxu0 %vm457_vm2, %v1762_v17  ;;  %v1798_v17 = vsel %vm1673_vm5, %v1788_v52, %v1797_v51  ;;  %v5892_v2 = vcombine.low %v2431_v60, %v5801_v54 }
  0xa6   : > { %v1838_v58 = vrot.slane %v1836_v13, 1 }
  0xa7   : > { %v2562_v8 = vrot.slane %v5892_v2, 2 }
  0xab   : > { %4823 = vmatmul.mubr.msk.bf16.gmra.mxu1 %vm457_vm2, %v1381_v57  ;;  %v1391_v57 = vsel %vm914_vm3, %v1388_v35, %v1390_v31 }
  0xac   : > { %4857 = vmatmul.mubr.msk.bf16.gmra.mxu0 %vm457_vm2, %v1771_v20  ;;  %4826 = vmatprep.mubr.msk.bf16.mxu1 %vm457_vm2, %v1383_v44  ;;  %v1823_v20 = vrot.slane %v1821_v37, 2  ;;  %v1839_v44 = vshll.u32 %v5756_v23, 16  ;;  %v5938_v37 = vld [vmem:[%s5323_s25 + $0x40] sm:$0xff]  }
  0xad   : > { %4860 = vmatprep.mubr.msk.bf16.mxu0 %vm457_vm2, %v1780_v38  ;;  %v1832_v38 = vrot.slane %v1830_v1, 2 }
  0xae   : > { %v1824_v49 = vor.u32 %v1823_v20, %v1820_v40  ;;  %v1841_v59 = vrot.slane %v1839_v44, 2 }
  0xaf   : > { %v1833_v52 = vor.u32 %v1832_v38, %v1829_v16 }
  0xb0   : > { %v1825_v51 = vsel %vm1673_vm5, %v1815_v6, %v1824_v49  ;;  %v1842_v23 = vor.u32 %v1841_v59, %v1838_v58 }
  0xb1   : > { %v1834_v36 = vsel %vm1673_vm5, %v1824_v49, %v1833_v52 }
  0xb2   : > { %v1843_v54 = vsel %vm1673_vm5, %v1833_v52, %v1842_v23 }
  0xb3   : > { %4827 = vmatmul.mubr.msk.bf16.gmra.mxu1 %vm457_vm2, %v1385_v61  ;;  %v2565_v61 = vrot.slane %v5811_v33, 2 }
  0xb4   : > { %4861 = vmatmul.mubr.msk.bf16.gmra.mxu0 %vm457_vm2, %v1789_v5  ;;  %4830 = vmatprep.mubr.msk.bf16.mxu1 %vm457_vm2, %v1387_v26  ;;  %v1393_v5 = vsel %vm914_vm3, %v1390_v31, %v1392_v43  ;;  %v2575_v31 = vrot.slane %v5942_v32, 2 }
  0xb5   : > { %4864 = vmatprep.mubr.msk.bf16.mxu0 %vm457_vm2, %v1798_v17  ;;  %v2564_v17 = vsel %vm2119_vm4, %v2562_v8, %v2563_v30  ;;  %v2566_v26 = vsel %vm2119_vm4, %v2563_v30, %v2565_v61 }
  0xbb   : > { %4831 = vmatmul.mubr.msk.bf16.gmra.mxu1 %vm457_vm2, %v1389_v53  ;;  %v5972_v53 = vld [vmem:[%s5323_s25 + $0x58] sm:$0xff]  }
  0xbc   : > { %4865 = vmatmul.mubr.msk.bf16.gmra.mxu0 %vm457_vm2, %v1807_v15  ;;  %4834 = vmatprep.mubr.msk.bf16.mxu1 %vm457_vm2, %v1391_v57  ;;  %v2579_v44 = vrot.slane %v5972_v53, 2 }
  0xbd   : > { %4868 = vmatprep.mubr.msk.bf16.mxu0 %vm457_vm2, %v1816_v28  ;;  %v5964_v28 = vld [vmem:[%s5323_s25 + $0x50] sm:$0xff]  }
  0xbe   : > { %v2577_v57 = vrot.slane %v5964_v28, 2 }
  0xc0   : > { %v2578_v60 = vsel %vm2119_vm4, %v2575_v31, %v2577_v57 }
  0xc3   : > { %4835 = vmatmul.mubr.msk.bf16.gmra.mxu1 %vm457_vm2, %v1393_v5 }
  0xc4   : > { %4869 = vmatmul.mubr.msk.bf16.gmra.mxu0 %vm457_vm2, %v1825_v51  ;;  %4878 = vmatprep.mubr.msk.bf16.mxu1 %vm457_vm2, %v5570_v62  ;;  %v2567_v62 = vrot.slane %v5905_v45, 2  ;;  %v5996_v51 = vld [vmem:[%s5323_s25 + $0x60] sm:$0xff]  }
  0xc5   : > { %4872 = vmatprep.mubr.msk.bf16.mxu0 %vm457_vm2, %v1834_v36  ;;  %v6004_v36 = vld [vmem:[%s5323_s25 + $0x68] sm:$0xff]   ;;  %v2581_v23 = vrot.slane %v5996_v51, 2 }
  0xc6   : > { %v2568_v3 = vsel %vm2119_vm4, %v2565_v61, %v2567_v62 }
  0xc7   : > { %v2582_v61 = vsel %vm2119_vm4, %v2579_v44, %v2581_v23 }
  0xcb   : > { %4879 = vmatmul.mubr.msk.bf16.vlgmr.msra.gmra.mxu1 %vm457_vm2, %v5576_v0  ;;  %v2569_v0 = vrot.slane %v5920_v46, 2 }
  0xcc   : > { %4873 = vmatmul.mubr.msk.bf16.gmra.mxu0 %vm457_vm2, %v1843_v54  ;;  %4953 = vmatpush3.bf16.msra.mxu1 %v3108_v21  ;;  %v2583_v54 = vrot.slane %v6004_v36, 2 }
  0xcd   : > { %4916 = vmatprep.mubr.msk.bf16.mxu0 %vm457_vm2, %v2564_v17  ;;  %4882 = vmatprep.mubr.msk.bf16.mxu1 %vm457_vm2, %v5589_v7  ;;  %v2571_v7 = vrot.slane %v5926_v4, 2  ;;  %v2570_v39 = vsel %vm2119_vm4, %v2567_v62, %v2569_v0  ;;  %v6028_v62 = vld [vmem:[%s5323_s25 + $0x70] sm:$0xff]  }
  0xcf   : > { %v2572_v6 = vsel %vm2119_vm4, %v2569_v0, %v2571_v7 }
  0xd3   : > { %4883 = vmatmul.mubr.msk.bf16.gmra.mxu1 %vm457_vm2, %v5596_v12  ;;  %v2573_v12 = vrot.slane %v5938_v37, 2 }
  0xd4   : > { %4917 = vmatmul.mubr.msk.bf16.vlgmr.msra.gmra.mxu0 %vm457_vm2, %v2566_v26  ;;  %4886 = vmatprep.mubr.msk.bf16.mxu1 %vm457_vm2, %v5605_v22 }
  0xd5   : > { %4991 = vmatpush3.bf16.msra.mxu0 %v3421_v56  ;;  %4920 = vmatprep.mubr.msk.bf16.mxu0 %vm457_vm2, %v2568_v3  ;;  %v2574_v20 = vsel %vm2119_vm4, %v2571_v7, %v2573_v12  ;;  %v6036_v3 = vld [vmem:[%s5323_s25 + $0x78] sm:$0xff]   ;;  %v2585_v7 = vrot.slane %v6028_v62, 2 }
  0xdb   : > { %v5949_v35 = vpop.f32.mrf.mxu1  ;;  %4887 = vmatmul.mubr.msk.bf16.gmra.mxu1 %vm457_vm2, %v5610_v25  ;;  %v2576_v25 = vsel %vm2119_vm4, %v2573_v12, %v2575_v31  ;;  %v2587_v12 = vrot.slane %v6036_v3, 2 }
  0xdc   : > { %v5944_v1 = vpop.f32.mrf.mxu0  ;;  %4921 = vmatmul.mubr.msk.bf16.gmra.mxu0 %vm457_vm2, %v2570_v39  ;;  %4890 = vmatprep.mubr.msk.bf16.mxu1 %vm457_vm2, %v5616_v34 }
  0xdd   : > { %4924 = vmatprep.mubr.msk.bf16.mxu0 %vm457_vm2, %v2572_v6  ;;  %v5958_v15 = vpop.f32.mrf.mxu1 }
  0xde   : > { %v5953_v22 = vpop.f32.mrf.mxu0 }
  0xdf   : > { %v5966_v16 = vpop.f32.mrf.mxu1 }
  0xe0   : > { %v5960_v40 = vpop.f32.mrf.mxu0 }
  0xe1   : > { %v5974_v50 = vpop.f32.mrf.mxu1 }
  0xe2   : > { %v5968_v38 = vpop.f32.mrf.mxu0 }
  0xe3   : > { %v5981_v49 = vpop.f32.mrf.mxu1  ;;  %4891 = vmatmul.mubr.msk.bf16.gmra.mxu1 %vm457_vm2, %v5622_v10  ;;  %v2580_v10 = vsel %vm2119_vm4, %v2577_v57, %v2579_v44  ;;  %v6060_v57 = vld [vmem:[%s5323_s25 + $0x80] sm:$0xff]  }
  0xe4   : > { %v5976_v34 = vpop.f32.mrf.mxu0  ;;  %4925 = vmatmul.mubr.msk.bf16.gmra.mxu0 %vm457_vm2, %v2574_v20  ;;  %4894 = vmatprep.mubr.msk.bf16.mxu1 %vm457_vm2, %v5638_v19  ;;  %6901 = vst [vmem:[#allocation10_spill] sm:$0xff] %v6060_v57 }
  0xe5   : > { %4928 = vmatprep.mubr.msk.bf16.mxu0 %vm457_vm2, %v2576_v25  ;;  %v5990_v52 = vpop.f32.mrf.mxu1  ;;  %v2586_v25 = vsel %vm2119_vm4, %v2583_v54, %v2585_v7 }
  0xe6   : > { %v5985_v13 = vpop.f32.mrf.mxu0 }
  0xe7   : > { %v5998_v58 = vpop.f32.mrf.mxu1 }
  0xe8   : > { %v5992_v43 = vpop.f32.mrf.mxu0  ;;  %6893 = vst [vmem:[#allocation2_spill] sm:$0xff] %v5998_v58 }
  0xe9   : > { %v6006_v5 = vpop.f32.mrf.mxu1 }
  0xea   : > { %v6000_v59 = vpop.f32.mrf.mxu0  ;;  %6894 = vst [vmem:[#allocation3_spill] sm:$0xff] %v6006_v5 }
  0xeb   : > { %v6013_v8 = vpop.f32.mrf.mxu1  ;;  %4895 = vmatmul.mubr.msk.bf16.gmra.mxu1 %vm457_vm2, %v5643_v42  ;;  %v2584_v42 = vsel %vm2119_vm4, %v2581_v23, %v2583_v54 }
  0xec   : > { %v6008_v19 = vpop.f32.mrf.mxu0  ;;  %4929 = vmatmul.mubr.msk.bf16.gmra.mxu0 %vm457_vm2, %v2578_v60  ;;  %6895 = vst [vmem:[#allocation4_spill] sm:$0xff] %v6013_v8  ;;  %4898 = vmatprep.mubr.msk.bf16.mxu1 %vm457_vm2, %v5664_v48 }
  0xed   : > { %4932 = vmatprep.mubr.msk.bf16.mxu0 %vm457_vm2, %v2580_v10  ;;  %v6022_v17 = vpop.f32.mrf.mxu1  ;;  %v6068_v10 = vld [vmem:[%s5323_s25 + $0x88] sm:$0xff]  }
  0xee   : > { %v6017_v30 = vpop.f32.mrf.mxu0  ;;  %6896 = vst [vmem:[#allocation5_spill] sm:$0xff] %v6022_v17  ;;  %6903 = vst [vmem:[#allocation12_spill] sm:$0xff] %v6068_v10  ;;  %v6100_v17 = vld [vmem:[%s5323_s25 + $0x98] sm:$0xff]  }
  0xef   : > { %v6030_v26 = vpop.f32.mrf.mxu1  ;;  %6905 = vst [vmem:[#allocation14_spill] sm:$0xff] %v6100_v17 }
  0xf0   : > { %v6024_v21 = vpop.f32.mrf.mxu0  ;;  %6897 = vst [vmem:[#allocation6_spill] sm:$0xff] %v6030_v26  ;;  %v6094_v26 = vld [vmem:[%s5323_s25 + $0x90] sm:$0xff]  }
  0xf1   : > { %v6038_v0 = vpop.f32.mrf.mxu1 }
  0xf2   : > { %v6032_v56 = vpop.f32.mrf.mxu0  ;;  %6898 = vst [vmem:[#allocation7_spill] sm:$0xff] %v6038_v0 }
  0xf3   : > { %v6045_v39 = vpop.f32.mrf.mxu1  ;;  %4899 = vmatmul.mubr.msk.bf16.gmra.mxu1 %vm457_vm2, %v5669_v55  ;;  %v2588_v55 = vsel %vm2119_vm4, %v2585_v7, %v2587_v12  ;;  %v2591_v7 = vrot.slane %v6068_v10, 2 }
  0xf4   : > { %v6040_v48 = vpop.f32.mrf.mxu0  ;;  %4933 = vmatmul.mubr.msk.bf16.gmra.mxu0 %vm457_vm2, %v2582_v61  ;;  %6899 = vst [vmem:[#allocation8_spill] sm:$0xff] %v6045_v39  ;;  %4902 = vmatprep.mubr.msk.bf16.mxu1 %vm457_vm2, %v5693_v24  ;;  %v2589_v24 = vrot.slane %v6060_v57, 2 }
  0xf5   : > { %4936 = vmatprep.mubr.msk.bf16.mxu0 %vm457_vm2, %v2584_v42  ;;  %v6054_v31 = vpop.f32.mrf.mxu1 }
  0xf6   : > { %v6049_v6 = vpop.f32.mrf.mxu0  ;;  %6900 = vst [vmem:[#allocation9_spill] sm:$0xff] %v6054_v31  ;;  %v2888_v31 = vshrl.u32 %v5806_v11, 16  ;;  %v2590_v0 = vsel %vm2119_vm4, %v2587_v12, %v2589_v24 }
  0xf7   : > { %v6062_v44 = vpop.f32.mrf.mxu1 }
  0xf8   : > { %v6056_v20 = vpop.f32.mrf.mxu0  ;;  %6902 = vst [vmem:[#allocation11_spill] sm:$0xff] %v6062_v44  ;;  %v2883_v44 = vshll.u32 %v5892_v2, 16 }
  0xf9   : > { %v6070_v23 = vpop.f32.mrf.mxu1 }
  0xfa   : > { %v6064_v60 = vpop.f32.mrf.mxu0  ;;  %6904 = vst [vmem:[#allocation13_spill] sm:$0xff] %v6070_v23  ;;  %v2885_v10 = vrot.slane %v2883_v44, 3 }
  0xfb   : > { %v4728_v54 = vpop.f32.mrf.mxu1  ;;  %4903 = vmatmul.mubr.msk.bf16.gmra.mxu1 %vm457_vm2, %v5699_v27  ;;  %v2891_v27 = vshll.u32 %v5806_v11, 16 }
  0xfc   : > { %v6072_v61 = vpop.f32.mrf.mxu0  ;;  %4937 = vmatmul.mubr.msk.bf16.gmra.mxu0 %vm457_vm2, %v2586_v25  ;;  %v775_v41 = vadd.f32 %v4728_v54, %v5944_v1  ;;  %4906 = vmatprep.mubr.msk.bf16.mxu1 %vm457_vm2, %v5731_v29  ;;  %v2592_v29 = vsel %vm2119_vm4, %v2589_v24, %v2591_v7  ;;  %v2593_v24 = vrot.slane %v6094_v26, 2 }
  0xfd   : > { %4940 = vmatprep.mubr.msk.bf16.mxu0 %vm457_vm2, %v2588_v55  ;;  %v766_v25 = vpop.f32.mrf.mxu1  ;;  %v2880_v55 = vshrl.u32 %v5892_v2, 16 }
  0xfe   : > { %v6079_v42 = vpop.f32.mrf.mxu0  ;;  %v767_v39 = vadd.f32 %v766_v25, %v5953_v22  ;;  %v2890_v22 = vrot.slane %v2888_v31, 2  ;;  %v2893_v25 = vrot.slane %v2891_v27, 3 }
  0xff   : > { %v4729_v1 = vpop.f32.mrf.mxu1  ;;  %v2882_v11 = vrot.slane %v2880_v55, 2 }
 0x100   : > { %v6085_v23 = vpop.f32.mrf.mxu0  ;;  %v778_v8 = vadd.f32 %v4729_v1, %v5960_v40  ;;  %v2595_v1 = vrot.slane %v6100_v17, 2  ;;  %v2894_v27 = vor.u32 %v2893_v25, %v2890_v22 }
 0x101   : > { %v769_v2 = vpop.f32.mrf.mxu1  ;;  %v2886_v55 = vor.u32 %v2885_v10, %v2882_v11 }
 0x102   : > { %v6096_v54 = vpop.f32.mrf.mxu0  ;;  %v770_v12 = vadd.f32 %v769_v2, %v5968_v38  ;;  %v2900_v38 = vshll.u32 %v5811_v33, 16 }
 0x103   : > { %v4732_v58 = vpop.f32.mrf.mxu1  ;;  %4907 = vmatmul.mubr.msk.bf16.gmra.mxu1 %vm457_vm2, %v5737_v9  ;;  %v2906_v9 = vshrl.u32 %v5905_v45, 16 }
 0x104   : > { %v4766_v5 = vpop.f32.mrf.mxu0  ;;  %4941 = vmatmul.mubr.msk.bf16.gmra.mxu0 %vm457_vm2, %v2590_v0  ;;  %v791_v0 = vadd.f32 %v4732_v58, %v5976_v34  ;;  %4910 = vmatprep.mubr.msk.bf16.mxu1 %vm457_vm2, %v5770_v18  ;;  %v2594_v58 = vsel %vm2119_vm4, %v2591_v7, %v2593_v24  ;;  %v5115_v18 = vld [vmem:[%s5323_s25 + $0xa0] ss:$0 sps:$4 sm:$0x33]   ;;  %v2902_v22 = vrot.slane %v2900_v38, 3  ;;  %v2918_v38 = vshll.u32 %v5920_v46, 16 }
 0x105   : > { %v6105_v57 = vadd.f32 %v4766_v5, %v775_v41  ;;  %4944 = vmatprep.mubr.msk.bf16.mxu0 %vm457_vm2, %v2592_v29  ;;  %v2897_v41 = vshrl.u32 %v5811_v33, 16  ;;  %v782_v5 = vpop.f32.mrf.mxu1  ;;  %v2909_v29 = vshll.u32 %v5905_v45, 16 }
 0x106   : > { %v1047_v40 = vpop.f32.mrf.mxu0  ;;  %v783_v2 = vadd.f32 %v782_v5, %v5985_v13  ;;  %v2895_v13 = vsel %vm2878_vm7, %v2886_v55, %v2894_v27 }
 0x107   : > { %6906 = vst [vmem:[#allocation15_spill] sm:$0xff] %v6105_v57  ;;  %v6113_v31 = vadd.f32 %v1047_v40, %v767_v39  ;;  %v4733_v39 = vpop.f32.mrf.mxu1  ;;  %v2899_v11 = vrot.slane %v2897_v41, 2  ;;  %v2911_v7 = vrot.slane %v2909_v29, 3  ;;  %v2915_v41 = vshrl.u32 %v5920_v46, 16 }
 0x108   : > { %v4767_v44 = vpop.f32.mrf.mxu0  ;;  %v794_v57 = vadd.f32 %v4733_v39, %v5992_v43  ;;  %v2924_v29 = vshrl.u32 %v5926_v4, 16 }
 0x109   : > { %6907 = vst [vmem:[#allocation16_spill] sm:$0xff] %v6113_v31  ;;  %v6122_v34 = vadd.f32 %v4767_v44, %v778_v8  ;;  %v2596_v31 = vsel %vm2119_vm4, %v2593_v24, %v2595_v1  ;;  %v785_v25 = vpop.f32.mrf.mxu1  ;;  %v2908_v8 = vrot.slane %v2906_v9, 2  ;;  %v2597_v24 = vrot.slane %v5115_v18, 2 }
 0x10a   : > { %v1050_v40 = vpop.f32.mrf.mxu0  ;;  %v786_v5 = vadd.f32 %v785_v25, %v6000_v59  ;;  %v2903_v59 = vor.u32 %v2902_v22, %v2899_v11  ;;  %v2920_v25 = vrot.slane %v2918_v38, 3 }
 0x10b   : > { %v6128_v10 = vadd.f32 %v1050_v40, %v770_v12  ;;  %v4736_v43 = vpop.f32.mrf.mxu1  ;;  %4911 = vmatmul.mubr.msk.bf16.gmra.mxu1 %vm457_vm2, %v5776_v47  ;;  %v2598_v39 = vsel %vm2119_vm4, %v2595_v1, %v2597_v24 }
 0x10c   : > { %v4770_v17 = vpop.f32.mrf.mxu0  ;;  %4945 = vmatmul.mubr.msk.bf16.gmra.mxu0 %vm457_vm2, %v2594_v58  ;;  %v807_v55 = vadd.f32 %v4736_v43, %v6008_v19  ;;  %4954 = vmatprep.mubr.msk.bf16.mxu1 %vm457_vm2, %v2895_v13  ;;  %v2927_v58 = vshll.u32 %v5926_v4, 16  ;;  %v2904_v22 = vsel %vm2878_vm7, %v2894_v27, %v2903_v59 }
 0x10d   : > { %v6133_v44 = vadd.f32 %v4770_v17, %v791_v0  ;;  %4948 = vmatprep.mubr.msk.bf16.mxu0 %vm457_vm2, %v2596_v31  ;;  %v798_v17 = vpop.f32.mrf.mxu1  ;;  %v2912_v31 = vor.u32 %v2911_v7, %v2908_v8 }
 0x10e   : > { %v1063_v12 = vpop.f32.mrf.mxu0  ;;  %v799_v47 = vadd.f32 %v798_v17, %v6017_v30  ;;  %v2929_v43 = vrot.slane %v2927_v58, 3 }
 0x10f   : > { %v6141_v9 = vadd.f32 %v1063_v12, %v783_v2  ;;  %v4737_v40 = vpop.f32.mrf.mxu1  ;;  %v2917_v2 = vrot.slane %v2915_v41, 2  ;;  %v2913_v30 = vsel %vm2878_vm7, %v2903_v59, %v2912_v31  ;;  %v3334_v12 = vrot.slane %v5905_v45, 3 }
 0x110   : > { %v4771_v0 = vpop.f32.mrf.mxu0  ;;  %v810_v13 = vadd.f32 %v4737_v40, %v6024_v21  ;;  %v6908_v40 = vrot.slane %v5811_v33, 3 }
 0x111   : > { %v6147_v18 = vadd.f32 %v4771_v0, %v794_v57  ;;  %v801_v8 = vpop.f32.mrf.mxu1  ;;  %v2926_v57 = vrot.slane %v2924_v29, 2  ;;  %v2921_v27 = vor.u32 %v2920_v25, %v2917_v2  ;;  %v2942_v0 = vshrl.u32 %v5942_v32, 16 }
 0x112   : > { %v1066_v19 = vpop.f32.mrf.mxu0  ;;  %v802_v1 = vadd.f32 %v801_v8, %v6032_v56  ;;  %v2933_v56 = vshrl.u32 %v5938_v37, 16  ;;  %v2945_v29 = vshll.u32 %v5942_v32, 16 }
 0x113   : > { %v6151_v11 = vadd.f32 %v1066_v19, %v786_v5  ;;  %v4740_v21 = vpop.f32.mrf.mxu1  ;;  %4955 = vmatmul.mubr.msk.bf16.vlgmr.msra.gmra.mxu1 %vm457_vm2, %v2904_v22  ;;  %v3335_v19 = vsel %vm3328_vm6, %v6908_v40, %v3334_v12 }
 0x114   : > { %v4774_v7 = vpop.f32.mrf.mxu0  ;;  %4949 = vmatmul.mubr.msk.bf16.gmra.mxu0 %vm457_vm2, %v2598_v39  ;;  %v823_v41 = vadd.f32 %v4740_v21, %v6040_v48  ;;  %4958 = vmatprep.mubr.msk.bf16.mxu1 %vm457_vm2, %v2913_v30  ;;  %v2922_v39 = vsel %vm2878_vm7, %v2912_v31, %v2921_v27  ;;  %v2935_v22 = vrot.slane %v2933_v56, 2  ;;  %v3338_v21 = vrot.slane %v5926_v4, 3 }
 0x115   : > { %v6157_v24 = vadd.f32 %v4774_v7, %v807_v55  ;;  %4992 = vmatprep.mubr.msk.bf16.mxu0 %vm457_vm2, %v5822_v14  ;;  %v2936_v55 = vshll.u32 %v5938_v37, 16  ;;  %v814_v59 = vpop.f32.mrf.mxu1  ;;  %v2930_v14 = vor.u32 %v2929_v43, %v2926_v57  ;;  %v2947_v57 = vrot.slane %v2945_v29, 3 }
 0x116   : > { %v1079_v5 = vpop.f32.mrf.mxu0  ;;  %v815_v58 = vadd.f32 %v814_v59, %v6049_v6  ;;  %v2960_v59 = vshrl.u32 %v5972_v53, 16 }
 0x117   : > { %v6164_v38 = vadd.f32 %v1079_v5, %v799_v47  ;;  %v4741_v48 = vpop.f32.mrf.mxu1  ;;  %v2938_v8 = vrot.slane %v2936_v55, 3  ;;  %v2931_v6 = vsel %vm2878_vm7, %v2921_v27, %v2930_v14  ;;  %v2954_v5 = vshll.u32 %v5964_v28, 16 }
 0x118   : > { %v4775_v17 = vpop.f32.mrf.mxu0  ;;  %v826_v2 = vadd.f32 %v4741_v48, %v6056_v20  ;;  %v3336_v20 = vrot.slane %v5920_v46, 3 }
 0x119   : > { %v6172_v45 = vadd.f32 %v4775_v17, %v810_v13  ;;  %v817_v7 = vpop.f32.mrf.mxu1  ;;  %v2944_v13 = vrot.slane %v2942_v0, 2  ;;  %v2963_v17 = vshll.u32 %v5972_v53, 16 }
 0x11a   : > { %v1082_v47 = vpop.f32.mrf.mxu0  ;;  %v818_v31 = vadd.f32 %v817_v7, %v6064_v60  ;;  %v2939_v60 = vor.u32 %v2938_v8, %v2935_v22  ;;  %v3337_v29 = vsel %vm3328_vm6, %v3334_v12, %v3336_v20 }
 0x11b   : > { %v6179_v25 = vadd.f32 %v1082_v47, %v802_v1  ;;  %v4744_v43 = vpop.f32.mrf.mxu1  ;;  %4959 = vmatmul.mubr.msk.bf16.gmra.mxu1 %vm457_vm2, %v2922_v39  ;;  %v2948_v46 = vor.u32 %v2947_v57, %v2944_v13  ;;  %v2956_v39 = vrot.slane %v2954_v5, 3  ;;  %v2965_v12 = vrot.slane %v2963_v17, 3 }
 0x11c   : > { %v4778_v30 = vpop.f32.mrf.mxu0  ;;  %4993 = vmatmul.mubr.msk.bf16.vlgmr.msra.gmra.mxu0 %vm457_vm2, %v5830_v63  ;;  %v2951_v63 = vshrl.u32 %v5964_v28, 16  ;;  %v839_v27 = vadd.f32 %v4744_v43, %v6072_v61  ;;  %4962 = vmatprep.mubr.msk.bf16.mxu1 %vm457_vm2, %v2931_v6  ;;  %v2940_v22 = vsel %vm2878_vm7, %v2930_v14, %v2939_v60  ;;  %v2969_v43 = vshrl.u32 %v5996_v51, 16 }
 0x11d   : > { %v6185_v33 = vadd.f32 %v4778_v30, %v823_v41  ;;  %4996 = vmatprep.mubr.msk.bf16.mxu0 %vm457_vm2, %v3335_v19  ;;  %v830_v41 = vpop.f32.mrf.mxu1 }
 0x11e   : > { %v1095_v1 = vpop.f32.mrf.mxu0  ;;  %v831_v4 = vadd.f32 %v830_v41, %v6079_v42  ;;  %v2953_v47 = vrot.slane %v2951_v63, 2  ;;  %v2949_v42 = vsel %vm2878_vm7, %v2939_v60, %v2948_v46 }
 0x11f   : > { %v6194_v56 = vadd.f32 %v1095_v1, %v815_v58  ;;  %v4745_v48 = vpop.f32.mrf.mxu1  ;;  %v3339_v58 = vsel %vm3328_vm6, %v3336_v20, %v3338_v21 }
 0x120   : > { %v4779_v55 = vpop.f32.mrf.mxu0  ;;  %v842_v40 = vadd.f32 %v4745_v48, %v6085_v23  ;;  %v3340_v23 = vrot.slane %v5938_v37, 3  ;;  %v2957_v57 = vor.u32 %v2956_v39, %v2953_v47  ;;  %v2978_v37 = vshrl.u32 %v6004_v36, 16 }
 0x121   : > { %v6200_v0 = vadd.f32 %v4779_v55, %v826_v2  ;;  %v833_v8 = vpop.f32.mrf.mxu1  ;;  %v2962_v2 = vrot.slane %v2960_v59, 2  ;;  %v2971_v48 = vrot.slane %v2969_v43, 2  ;;  %v2999_v43 = vshll.u32 %v6036_v3, 16 }
 0x122   : > { %v1098_v61 = vpop.f32.mrf.mxu0  ;;  %v834_v30 = vadd.f32 %v833_v8, %v6096_v54  ;;  %v2972_v54 = vshll.u32 %v5996_v51, 16  ;;  %v3341_v41 = vsel %vm3328_vm6, %v3338_v21, %v3340_v23  ;;  %v2958_v59 = vsel %vm2878_vm7, %v2948_v46, %v2957_v57 }
 0x123   : > { %v6205_v19 = vadd.f32 %v1098_v61, %v818_v31  ;;  %v4748_v13 = vpop.f32.mrf.mxu1  ;;  %4963 = vmatmul.mubr.msk.bf16.gmra.mxu1 %vm457_vm2, %v2940_v22  ;;  %v3342_v31 = vrot.slane %v5942_v32, 3  ;;  %v2966_v5 = vor.u32 %v2965_v12, %v2962_v2  ;;  %v2987_v2 = vshrl.u32 %v6028_v62, 16 }
 0x124   : > { %v4782_v7 = vpop.f32.mrf.mxu0  ;;  %4997 = vmatmul.mubr.msk.bf16.gmra.mxu0 %vm457_vm2, %v3337_v29  ;;  %4966 = vmatprep.mubr.msk.bf16.mxu1 %vm457_vm2, %v2949_v42  ;;  %v2974_v61 = vrot.slane %v2972_v54, 3  ;;  %v3346_v42 = vrot.slane %v5972_v53, 3  ;;  %v2990_v12 = vshll.u32 %v6028_v62, 16 }
 0x125   : > { %v6211_v6 = vadd.f32 %v4782_v7, %v839_v27  ;;  %5000 = vmatprep.mubr.msk.bf16.mxu0 %vm457_vm2, %v3339_v58  ;;  %v846_v1 = vpop.f32.mrf.mxu1  ;;  %v2981_v27 = vshll.u32 %v6004_v36, 16  ;;  %v3343_v17 = vsel %vm3328_vm6, %v3340_v23, %v3342_v31  ;;  %v2967_v39 = vsel %vm2878_vm7, %v2957_v57, %v2966_v5 }
 0x126   : > { %v1111_v14 = vpop.f32.mrf.mxu0  ;;  %v847_v22 = vadd.f32 %v846_v1, %v5958_v15  ;;  %v2975_v15 = vor.u32 %v2974_v61, %v2971_v48  ;;  %v2996_v57 = vshrl.u32 %v6036_v3, 16 }
 0x127   : > { %v6217_v20 = vadd.f32 %v1111_v14, %v831_v4  ;;  %v4749_v32 = vpop.f32.mrf.mxu1  ;;  %v855_v4 = vadd.f32 %v4748_v13, %v5949_v35  ;;  %v2983_v21 = vrot.slane %v2981_v27, 3  ;;  %v3344_v35 = vrot.slane %v5964_v28, 3 }
 0x128   : > { %v4783_v63 = vpop.f32.mrf.mxu0  ;;  %v2989_v27 = vrot.slane %v2987_v2, 2  ;;  %v2998_v48 = vrot.slane %v2996_v57, 2 }
 0x129   : > { %v6224_v60 = vadd.f32 %v4783_v63, %v842_v40  ;;  %v849_v58 = vpop.f32.mrf.mxu1  ;;  %v2980_v40 = vrot.slane %v2978_v37, 2  ;;  %v3345_v1 = vsel %vm3328_vm6, %v3342_v31, %v3344_v35  ;;  %v3347_v37 = vsel %vm3328_vm6, %v3344_v35, %v3346_v42 }
 0x12a   : > { %v1114_v55 = vpop.f32.mrf.mxu0  ;;  %v850_v53 = vadd.f32 %v849_v58, %v5974_v50  ;;  %v3001_v31 = vrot.slane %v2999_v43, 3 }
 0x12b   : > { %v6230_v29 = vadd.f32 %v1114_v55, %v834_v30  ;;  %v4752_v46 = vpop.f32.mrf.mxu1  ;;  %4967 = vmatmul.mubr.msk.bf16.gmra.mxu1 %vm457_vm2, %v2958_v59  ;;  %v858_v30 = vadd.f32 %v4749_v32, %v5966_v16  ;;  %v2984_v28 = vor.u32 %v2983_v21, %v2980_v40  ;;  %v2976_v59 = vsel %vm2878_vm7, %v2966_v5, %v2975_v15  ;;  %v6909_v21 = vld [vmem:[#allocation2_spill] sm:$0xff] }
 0x12c   : > { %v4786_v47 = vpop.f32.mrf.mxu0  ;;  %5001 = vmatmul.mubr.msk.bf16.gmra.mxu0 %vm457_vm2, %v3341_v41  ;;  %4970 = vmatprep.mubr.msk.bf16.mxu1 %vm457_vm2, %v2967_v39  ;;  %v2992_v41 = vrot.slane %v2990_v12, 3  ;;  %v871_v32 = vadd.f32 %v4752_v46, %v5981_v49  ;;  %v3348_v49 = vrot.slane %v5996_v51, 3  ;;  %v3350_v40 = vrot.slane %v6004_v36, 3 }
 0x12d   : > { %v6235_v8 = vadd.f32 %v4786_v47, %v855_v4  ;;  %5004 = vmatprep.mubr.msk.bf16.mxu0 %vm457_vm2, %v3343_v17  ;;  %v862_v13 = vpop.f32.mrf.mxu1  ;;  %v2985_v50 = vsel %vm2878_vm7, %v2975_v15, %v2984_v28  ;;  %v3002_v51 = vor.u32 %v3001_v31, %v2998_v48  ;;  %v6914_v31 = vld [vmem:[#allocation5_spill] sm:$0xff] }
 0x12e   : > { %v1127_v7 = vpop.f32.mrf.mxu0  ;;  %v863_v61 = vadd.f32 %v862_v13, %v5990_v52  ;;  %v2993_v39 = vor.u32 %v2992_v41, %v2989_v27  ;;  %v6910_v52 = vld [vmem:[#allocation10_spill] sm:$0xff]  ;;  %v3349_v43 = vsel %vm3328_vm6, %v3346_v42, %v3348_v49 }
 0x12f   : > { %v6244_v23 = vadd.f32 %v1127_v7, %v847_v22  ;;  %v4753_v63 = vpop.f32.mrf.mxu1  ;;  %v3005_v46 = vshrl.u32 %v6910_v52, 16  ;;  %v3008_v7 = vshll.u32 %v6910_v52, 16 }
 0x130   : > { %v4787_v14 = vpop.f32.mrf.mxu0  ;;  %v874_v22 = vadd.f32 %v4753_v63, %v6909_v21  ;;  %v2994_v63 = vsel %vm2878_vm7, %v2984_v28, %v2993_v39  ;;  %v3352_v28 = vrot.slane %v6028_v62, 3  ;;  %v3354_v21 = vrot.slane %v6036_v3, 3  ;;  %v6917_v3 = vld [vmem:[#allocation7_spill] sm:$0xff] }
 0x131   : > { %v6250_v54 = vadd.f32 %v4787_v14, %v858_v30  ;;  %v865_v17 = vpop.f32.mrf.mxu1  ;;  %v6911_v30 = vld [vmem:[#allocation12_spill] sm:$0xff]  ;;  %v6912_v14 = vld [vmem:[#allocation3_spill] sm:$0xff] }
 0x132   : > { %v1130_v16 = vpop.f32.mrf.mxu0  ;;  %v3014_v15 = vshrl.u32 %v6911_v30, 16  ;;  %v3017_v13 = vshll.u32 %v6911_v30, 16  ;;  %v866_v57 = vadd.f32 %v865_v17, %v6912_v14  ;;  %v3003_v17 = vsel %vm2878_vm7, %v2993_v39, %v3002_v51  ;;  %v6916_v14 = vld [vmem:[#allocation14_spill] sm:$0xff] }
 0x133   : > { %v6255_v55 = vadd.f32 %v1130_v16, %v850_v53  ;;  %v4756_v47 = vpop.f32.mrf.mxu1  ;;  %4971 = vmatmul.mubr.msk.bf16.gmra.mxu1 %vm457_vm2, %v2976_v59  ;;  %v3351_v16 = vsel %vm3328_vm6, %v3348_v49, %v3350_v40  ;;  %v3010_v59 = vrot.slane %v3008_v7, 3  ;;  %v3026_v39 = vshll.u32 %v6094_v26, 16 }
 0x134   : > { %v4790_v4 = vpop.f32.mrf.mxu0  ;;  %5005 = vmatmul.mubr.msk.bf16.gmra.mxu0 %vm457_vm2, %v3345_v1  ;;  %4974 = vmatprep.mubr.msk.bf16.mxu1 %vm457_vm2, %v2985_v50  ;;  %v3016_v48 = vrot.slane %v3014_v15, 2  ;;  %v3019_v42 = vrot.slane %v3017_v13, 3 }
 0x135   : > { %v6261_v58 = vadd.f32 %v4790_v4, %v871_v32  ;;  %5008 = vmatprep.mubr.msk.bf16.mxu0 %vm457_vm2, %v3347_v37  ;;  %v878_v2 = vpop.f32.mrf.mxu1  ;;  %v6913_v37 = vld [vmem:[#allocation4_spill] sm:$0xff]  ;;  %v3007_v32 = vrot.slane %v3005_v46, 2  ;;  %v6915_v46 = vld [vmem:[#allocation6_spill] sm:$0xff] }
 0x136   : > { %v1143_v5 = vpop.f32.mrf.mxu0  ;;  %v887_v27 = vadd.f32 %v4756_v47, %v6913_v37  ;;  %v3020_v13 = vor.u32 %v3019_v42, %v3016_v48 }
 0x137   : > { %v6268_v35 = vadd.f32 %v1143_v5, %v863_v61  ;;  %v4757_v53 = vpop.f32.mrf.mxu1  ;;  %v879_v61 = vadd.f32 %v878_v2, %v6914_v31  ;;  %v3011_v2 = vor.u32 %v3010_v59, %v3007_v32  ;;  %v6307_v32 = vld [vmem:[%s5323_s25 + $0xa0] ss:$0 sps:$4 sm:$0x77]   ;;  %v6918_v59 = vld [vmem:[#allocation8_spill] sm:$0xff] }
 0x138   : > { %v4791_v12 = vpop.f32.mrf.mxu0  ;;  %v890_v7 = vadd.f32 %v4757_v53, %v6915_v46 }
 0x139   : > { %v6276_v36 = vadd.f32 %v4791_v12, %v874_v22  ;;  %v881_v4 = vpop.f32.mrf.mxu1  ;;  %v3023_v22 = vshrl.u32 %v6094_v26, 16  ;;  %v3012_v31 = vsel %vm2878_vm7, %v3002_v51, %v3011_v2 }
 0x13a   : > { %v1146_v1 = vpop.f32.mrf.mxu0 }
 0x13b   : > { %v6282_v41 = vadd.f32 %v1146_v1, %v866_v57  ;;  %v4760_v49 = vpop.f32.mrf.mxu1  ;;  %4975 = vmatmul.mubr.msk.bf16.gmra.mxu1 %vm457_vm2, %v2994_v63  ;;  %v3032_v57 = vshrl.u32 %v6916_v14, 16  ;;  %v882_v1 = vadd.f32 %v881_v4, %v6917_v3  ;;  %v3358_v3 = vrot.slane %v6911_v30, 3 }
 0x13c   : > { %v4794_v50 = vpop.f32.mrf.mxu0  ;;  %5009 = vmatmul.mubr.msk.bf16.gmra.mxu0 %vm457_vm2, %v3349_v43  ;;  %4978 = vmatprep.mubr.msk.bf16.mxu1 %vm457_vm2, %v3003_v17  ;;  %v3035_v43 = vshll.u32 %v6916_v14, 16  ;;  %v3028_v17 = vrot.slane %v3026_v39, 3  ;;  %v903_v48 = vadd.f32 %v4760_v49, %v6918_v59  ;;  %v3356_v49 = vrot.slane %v6910_v52, 3 }
 0x13d   : > { %v6287_v5 = vadd.f32 %v4794_v50, %v887_v27  ;;  %5012 = vmatprep.mubr.msk.bf16.mxu0 %vm457_vm2, %v3351_v16  ;;  %v894_v15 = vpop.f32.mrf.mxu1  ;;  %v3353_v16 = vsel %vm3328_vm6, %v3350_v40, %v3352_v28  ;;  %v3355_v27 = vsel %vm3328_vm6, %v3352_v28, %v3354_v21  ;;  %v3025_v50 = vrot.slane %v3023_v22, 2 }
 0x13e   : > { %v1159_v47 = vpop.f32.mrf.mxu0  ;;  %v3021_v40 = vsel %vm2878_vm7, %v3011_v2, %v3020_v13  ;;  %v3037_v46 = vrot.slane %v3035_v43, 3  ;;  %v6920_v2 = vld [vmem:[#allocation11_spill] sm:$0xff] }
 0x13f   : > { %v6296_v12 = vadd.f32 %v1159_v47, %v879_v61  ;;  %v4761_v53 = vpop.f32.mrf.mxu1  ;;  %v3034_v47 = vrot.slane %v3032_v57, 2  ;;  %v6921_v43 = vld [vmem:[#allocation15_spill] sm:$0xff] }
 0x140   : > { %v4795_v62 = vpop.f32.mrf.mxu0  ;;  %v906_v57 = vadd.f32 %v4761_v53, %v6920_v2 }
 0x141   : > { %v6302_v63 = vadd.f32 %v4795_v62, %v890_v7  ;;  %v897_v61 = vpop.f32.mrf.mxu1  ;;  %v6919_v7 = vld [vmem:[#allocation9_spill] sm:$0xff]  ;;  %v3029_v62 = vor.u32 %v3028_v17, %v3025_v50  ;;  %v3038_v59 = vor.u32 %v3037_v46, %v3034_v47  ;;  %v6923_v50 = vld [vmem:[#allocation16_spill] sm:$0xff] }
 0x142   : > { %v1162_v37 = vpop.f32.mrf.mxu0  ;;  %v895_v28 = vadd.f32 %v894_v15, %v6919_v7 }
 0x143   : > { %v6310_v42 = vadd.f32 %v1162_v37, %v882_v1  ;;  %v4804_v39 = vpop.f32.mrf.mxu1  ;;  %4979 = vmatmul.mubr.msk.bf16.gmra.mxu1 %vm457_vm2, %v3012_v31  ;;  %v3041_v1 = vshrl.u32 %v6307_v32, 16  ;;  %v3044_v37 = vshll.u32 %v6307_v32, 16 }
 0x144   : > { %v4798_v4 = vpop.f32.mrf.mxu0  ;;  %5013 = vmatmul.mubr.msk.bf16.gmra.mxu0 %vm457_vm2, %v3353_v16  ;;  %v1634_v16 = vadd.f32 %v4804_v39, %v6921_v43  ;;  %4982 = vmatprep.mubr.msk.bf16.mxu1 %vm457_vm2, %v3021_v40  ;;  %v3359_v39 = vsel %vm3328_vm6, %v3356_v49, %v3358_v3 }
 0x145   : > { %v6316_v22 = vadd.f32 %v4798_v4, %v903_v48  ;;  %5016 = vmatprep.mubr.msk.bf16.mxu0 %vm457_vm2, %v3355_v27  ;;  %v1489_v52 = vpop.f32.mrf.mxu1  ;;  %v6922_v48 = vld [vmem:[#allocation13_spill] sm:$0xff]  ;;  %v3357_v4 = vsel %vm3328_vm6, %v3354_v21, %v3356_v49  ;;  %v3043_v2 = vrot.slane %v3041_v1, 2  ;;  %v3046_v47 = vrot.slane %v3044_v37, 3 }
 0x146   : > { %v1175_v51 = vpop.f32.mrf.mxu0  ;;  %v898_v31 = vadd.f32 %v897_v61, %v6922_v48  ;;  %v1632_v17 = vadd.f32 %v1489_v52, %v6923_v50  ;;  %v3362_v1 = vrot.slane %v6916_v14, 3 }
 0x147   : > { %v6325_v15 = vadd.f32 %v1175_v51, %v895_v28  ;;  %v4805_v53 = vpop.f32.mrf.mxu1  ;;  %v3030_v28 = vsel %vm2878_vm7, %v3020_v13, %v3029_v62  ;;  %v3360_v13 = vrot.slane %v6094_v26, 3 }
 0x148   : > { %v4799_v27 = vpop.f32.mrf.mxu0  ;;  %v1635_v40 = vadd.f32 %v4805_v53, %v6122_v34 }
 0x149   : > { %v6331_v30 = vadd.f32 %v4799_v27, %v906_v57  ;;  %v1492_v46 = vpop.f32.mrf.mxu1  ;;  %v3039_v57 = vsel %vm2878_vm7, %v3029_v62, %v3038_v59  ;;  %v3047_v62 = vor.u32 %v3046_v47, %v3043_v2  ;;  %v3361_v26 = vsel %vm3328_vm6, %v3358_v3, %v3360_v13 }
 0x14a   : > { %v1178_v7 = vpop.f32.mrf.mxu0  ;;  %v1633_v21 = vadd.f32 %v1492_v46, %v6128_v10  ;;  %v3364_v3 = vrot.slane %v6307_v32, 3 }
 0x14b   : > { %v6337_v51 = vadd.f32 %v1178_v7, %v898_v31  ;;  %v4808_v49 = vpop.f32.mrf.mxu1  ;;  %4983 = vmatmul.mubr.msk.bf16.gmra.mxu1 %vm457_vm2, %v3030_v28 }
 0x14c   : > { %v4842_v61 = vpop.f32.mrf.mxu0  ;;  %5017 = vmatmul.mubr.msk.bf16.gmra.mxu0 %vm457_vm2, %v3357_v4  ;;  %v1638_v37 = vadd.f32 %v4808_v49, %v6133_v44  ;;  %4986 = vmatprep.mubr.msk.bf16.mxu1 %vm457_vm2, %v3039_v57  ;;  %v3363_v4 = vsel %vm3328_vm6, %v3360_v13, %v3362_v1 }
 0x14d   : > { %v6342_v43 = vadd.f32 %v4842_v61, %v1634_v16  ;;  %5020 = vmatprep.mubr.msk.bf16.mxu0 %vm457_vm2, %v3359_v39  ;;  %v1505_v10 = vpop.f32.mrf.mxu1 }
 0x14e   : > { %v1935_v34 = vpop.f32.mrf.mxu0  ;;  %v1636_v27 = vadd.f32 %v1505_v10, %v6141_v9 }
 0x14f   : > { %v6349_v52 = vadd.f32 %v1935_v34, %v1632_v17  ;;  %v4809_v31 = vpop.f32.mrf.mxu1  ;;  %v3048_v17 = vsel %vm2878_vm7, %v3038_v59, %v3047_v62 }
 0x150   : > { %v4843_v16 = vpop.f32.mrf.mxu0  ;;  %v1639_v14 = vadd.f32 %v4809_v31, %v6147_v18 }
 0x151   : > { %v6353_v48 = vadd.f32 %v4843_v16, %v1635_v40  ;;  %v1508_v53 = vpop.f32.mrf.mxu1 }
 0x152   : > { %v1938_v50 = vpop.f32.mrf.mxu0  ;;  %v1637_v9 = vadd.f32 %v1508_v53, %v6151_v11  ;;  %v3365_v11 = vsel %vm3328_vm6, %v3362_v1, %v3364_v3 }
 0x153   : > { %v6358_v44 = vadd.f32 %v1938_v50, %v1633_v21  ;;  %v4812_v39 = vpop.f32.mrf.mxu1  ;;  %4987 = vmatmul.mubr.msk.bf16.gmra.mxu1 %vm457_vm2, %v3048_v17 }
 0x154   : > { %v4846_v7 = vpop.f32.mrf.mxu0  ;;  %5021 = vmatmul.mubr.msk.bf16.gmra.mxu0 %vm457_vm2, %v3361_v26  ;;  %v1642_v40 = vadd.f32 %v4812_v39, %v6157_v24 }
 0x155   : > { %v6363_v28 = vadd.f32 %v4846_v7, %v1638_v37  ;;  %5024 = vmatprep.mubr.msk.bf16.mxu0 %vm457_vm2, %v3363_v4  ;;  %v1521_v59 = vpop.f32.mrf.mxu1 }
 0x156   : > { %v1951_v18 = vpop.f32.mrf.mxu0  ;;  %v1640_v46 = vadd.f32 %v1521_v59, %v6164_v38 }
 0x157   : > { %v6369_v2 = vadd.f32 %v1951_v18, %v1636_v27  ;;  %v4813_v57 = vpop.f32.mrf.mxu1 }
 0x158   : > { %v4847_v47 = vpop.f32.mrf.mxu0  ;;  %v1643_v32 = vadd.f32 %v4813_v57, %v6172_v45 }
 0x159   : > { %v6372_v61 = vadd.f32 %v4847_v47, %v1639_v14  ;;  %v1524_v49 = vpop.f32.mrf.mxu1 }
 0x15a   : > { %v1954_v21 = vpop.f32.mrf.mxu0  ;;  %v1641_v24 = vadd.f32 %v1524_v49, %v6179_v25 }
 0x15b   : > { %v6376_v13 = vadd.f32 %v1954_v21, %v1637_v9  ;;  %v4816_v62 = vpop.f32.mrf.mxu1 }
 0x15c   : > { %v4850_v34 = vpop.f32.mrf.mxu0  ;;  %5025 = vmatmul.mubr.msk.bf16.gmra.mxu0 %vm457_vm2, %v3365_v11  ;;  %v1646_v10 = vadd.f32 %v4816_v62, %v6185_v33 }
 0x15d   : > { %v6380_v37 = vadd.f32 %v4850_v34, %v1642_v40  ;;  %v1537_v1 = vpop.f32.mrf.mxu1 }
 0x15e   : > { %v1967_v38 = vpop.f32.mrf.mxu0  ;;  %v1644_v45 = vadd.f32 %v1537_v1, %v6194_v56 }
 0x15f   : > { %v6383_v16 = vadd.f32 %v1967_v38, %v1640_v46  ;;  %v4817_v31 = vpop.f32.mrf.mxu1 }
 0x160   : > { %v4851_v27 = vpop.f32.mrf.mxu0  ;;  %v1647_v4 = vadd.f32 %v4817_v31, %v6200_v0 }
 0x161   : > { %v6386_v26 = vadd.f32 %v4851_v27, %v1643_v32  ;;  %v1540_v25 = vpop.f32.mrf.mxu1 }
 0x162   : > { %v1970_v50 = vpop.f32.mrf.mxu0  ;;  %v1645_v53 = vadd.f32 %v1540_v25, %v6205_v19 }
 0x163   : > { %v6389_v14 = vadd.f32 %v1970_v50, %v1641_v24  ;;  %v4820_v33 = vpop.f32.mrf.mxu1 }
 0x164   : > { %v4854_v17 = vpop.f32.mrf.mxu0  ;;  %v1650_v3 = vadd.f32 %v4820_v33, %v6211_v6 }
 0x165   : > { %v6392_v7 = vadd.f32 %v4854_v17, %v1646_v10  ;;  %v1553_v56 = vpop.f32.mrf.mxu1 }
 0x166   : > { %v1983_v9 = vpop.f32.mrf.mxu0  ;;  %v1648_v40 = vadd.f32 %v1553_v56, %v6217_v20 }
 0x167   : > { %v6395_v39 = vadd.f32 %v1983_v9, %v1644_v45  ;;  %v4821_v0 = vpop.f32.mrf.mxu1 }
 0x168   : > { %v4855_v18 = vpop.f32.mrf.mxu0  ;;  %v1651_v46 = vadd.f32 %v4821_v0, %v6224_v60 }
 0x169   : > { %v6398_v59 = vadd.f32 %v4855_v18, %v1647_v4  ;;  %v1556_v19 = vpop.f32.mrf.mxu1 }
 0x16a   : > { %v1986_v47 = vpop.f32.mrf.mxu0  ;;  %v1649_v21 = vadd.f32 %v1556_v19, %v6230_v29 }
 0x16b   : > { %v6401_v11 = vadd.f32 %v1986_v47, %v1645_v53  ;;  %v4824_v6 = vpop.f32.mrf.mxu1 }
 0x16c   : > { %v4858_v57 = vpop.f32.mrf.mxu0  ;;  %v1654_v34 = vadd.f32 %v4824_v6, %v6235_v8 }
 0x16d   : > { %v6404_v32 = vadd.f32 %v4858_v57, %v1650_v3  ;;  %v1569_v20 = vpop.f32.mrf.mxu1 }
 0x16e   : > { %v1999_v49 = vpop.f32.mrf.mxu0  ;;  %v1652_v38 = vadd.f32 %v1569_v20, %v6244_v23 }
 0x16f   : > { %v6407_v24 = vadd.f32 %v1999_v49, %v1648_v40  ;;  %v4825_v60 = vpop.f32.mrf.mxu1 }
 0x170   : > { %v4859_v62 = vpop.f32.mrf.mxu0  ;;  %v1655_v27 = vadd.f32 %v4825_v60, %v6250_v54 }
 0x171   : > { %v6410_v10 = vadd.f32 %v4859_v62, %v1651_v46  ;;  %v1572_v29 = vpop.f32.mrf.mxu1 }
 0x172   : > { %v2002_v1 = vpop.f32.mrf.mxu0  ;;  %v1653_v50 = vadd.f32 %v1572_v29, %v6255_v55 }
 0x173   : > { %v6413_v45 = vadd.f32 %v2002_v1, %v1649_v21  ;;  %v4828_v8 = vpop.f32.mrf.mxu1 }
 0x174   : > { %v4862_v31 = vpop.f32.mrf.mxu0  ;;  %v1658_v17 = vadd.f32 %v4828_v8, %v6261_v58 }
 0x175   : > { %v6416_v4 = vadd.f32 %v4862_v31, %v1654_v34  ;;  %v1585_v23 = vpop.f32.mrf.mxu1 }
 0x176   : > { %v2015_v25 = vpop.f32.mrf.mxu0  ;;  %v1656_v9 = vadd.f32 %v1585_v23, %v6268_v35 }
 0x177   : > { %v6419_v53 = vadd.f32 %v2015_v25, %v1652_v38  ;;  %v4829_v54 = vpop.f32.mrf.mxu1 }
 0x178   : > { %v4863_v33 = vpop.f32.mrf.mxu0  ;;  %v1659_v18 = vadd.f32 %v4829_v54, %v6276_v36 }
 0x179   : > { %v6422_v3 = vadd.f32 %v4863_v33, %v1655_v27  ;;  %v1588_v55 = vpop.f32.mrf.mxu1 }
 0x17a   : > { %v2018_v56 = vpop.f32.mrf.mxu0  ;;  %v1657_v47 = vadd.f32 %v1588_v55, %v6282_v41 }
 0x17b   : > { %v6425_v40 = vadd.f32 %v2018_v56, %v1653_v50  ;;  %v4832_v58 = vpop.f32.mrf.mxu1 }
 0x17c   : > { %v4866_v0 = vpop.f32.mrf.mxu0  ;;  %v1662_v57 = vadd.f32 %v4832_v58, %v6287_v5 }
 0x17d   : > { %v6428_v46 = vadd.f32 %v4866_v0, %v1658_v17  ;;  %v1601_v35 = vpop.f32.mrf.mxu1 }
 0x17e   : > { %v2031_v19 = vpop.f32.mrf.mxu0  ;;  %v1660_v49 = vadd.f32 %v1601_v35, %v6296_v12 }
 0x17f   : > { %v6431_v21 = vadd.f32 %v2031_v19, %v1656_v9  ;;  %v4833_v36 = vpop.f32.mrf.mxu1 }
 0x180   : > { %v4867_v6 = vpop.f32.mrf.mxu0  ;;  %v1663_v62 = vadd.f32 %v4833_v36, %v6302_v63 }
 0x181   : > { %v6434_v34 = vadd.f32 %v4867_v6, %v1659_v18  ;;  %v1604_v41 = vpop.f32.mrf.mxu1 }
 0x182   : > { %v2034_v20 = vpop.f32.mrf.mxu0  ;;  %v1661_v1 = vadd.f32 %v1604_v41, %v6310_v42 }
 0x183   : > { %v6437_v38 = vadd.f32 %v2034_v20, %v1657_v47  ;;  %v4836_v5 = vpop.f32.mrf.mxu1 }
 0x184   : > { %v4870_v60 = vpop.f32.mrf.mxu0  ;;  %v1666_v31 = vadd.f32 %v4836_v5, %v6316_v22 }
 0x185   : > { %v6440_v27 = vadd.f32 %v4870_v60, %v1662_v57  ;;  %v1617_v12 = vpop.f32.mrf.mxu1 }
 0x186   : > { %v2047_v29 = vpop.f32.mrf.mxu0  ;;  %v1664_v25 = vadd.f32 %v1617_v12, %v6325_v15 }
 0x187   : > { %v6443_v50 = vadd.f32 %v2047_v29, %v1660_v49  ;;  %v4837_v63 = vpop.f32.mrf.mxu1 }
 0x188   : > { %v4871_v8 = vpop.f32.mrf.mxu0  ;;  %v1667_v33 = vadd.f32 %v4837_v63, %v6331_v30 }
 0x189   : > { %v6446_v17 = vadd.f32 %v4871_v8, %v1663_v62  ;;  %v1620_v42 = vpop.f32.mrf.mxu1 }
 0x18a   : > { %v2050_v23 = vpop.f32.mrf.mxu0  ;;  %v1665_v56 = vadd.f32 %v1620_v42, %v6337_v51 }
 0x18b   : > { %v6449_v9 = vadd.f32 %v2050_v23, %v1661_v1  ;;  %v4880_v22 = vpop.f32.mrf.mxu1 }
 0x18c   : > { %v4874_v54 = vpop.f32.mrf.mxu0  ;;  %v2397_v0 = vadd.f32 %v4880_v22, %v6342_v43 }
 0x18d   : > { %v6452_v18 = vadd.f32 %v4874_v54, %v1666_v31  ;;  %v2252_v15 = vpop.f32.mrf.mxu1 }
 0x18e   : > { %v2063_v55 = vpop.f32.mrf.mxu0  ;;  %v2395_v19 = vadd.f32 %v2252_v15, %v6349_v52 }
 0x18f   : > { %v6455_v47 = vadd.f32 %v2063_v55, %v1664_v25  ;;  %v4881_v30 = vpop.f32.mrf.mxu1 }
 0x190   : > { %v4875_v58 = vpop.f32.mrf.mxu0  ;;  %v2398_v6 = vadd.f32 %v4881_v30, %v6353_v48 }
 0x191   : > { %v6458_v57 = vadd.f32 %v4875_v58, %v1667_v33  ;;  %v2255_v51 = vpop.f32.mrf.mxu1 }
 0x192   : > { %v2066_v35 = vpop.f32.mrf.mxu0  ;;  %v2396_v20 = vadd.f32 %v2255_v51, %v6358_v44 }
 0x193   : > { %v6461_v49 = vadd.f32 %v2066_v35, %v1665_v56  ;;  %v4884_v43 = vpop.f32.mrf.mxu1 }
 0x194   : > { %v4918_v36 = vpop.f32.mrf.mxu0  ;;  %v2401_v60 = vadd.f32 %v4884_v43, %v6363_v28 }
 0x195   : > { %v6464_v62 = vadd.f32 %v4918_v36, %v2397_v0  ;;  %v2268_v52 = vpop.f32.mrf.mxu1 }
 0x196   : > { %v2694_v41 = vpop.f32.mrf.mxu0  ;;  %v2399_v29 = vadd.f32 %v2268_v52, %v6369_v2 }
 0x197   : > { %v6467_v1 = vadd.f32 %v2694_v41, %v2395_v19  ;;  %v4885_v48 = vpop.f32.mrf.mxu1 }
 0x198   : > { %v4919_v5 = vpop.f32.mrf.mxu0  ;;  %v2402_v8 = vadd.f32 %v4885_v48, %v6372_v61 }
 0x199   : > { %v6470_v31 = vadd.f32 %v4919_v5, %v2398_v6  ;;  %v2271_v44 = vpop.f32.mrf.mxu1 }
 0x19a   : > { %v2697_v12 = vpop.f32.mrf.mxu0  ;;  %v2400_v23 = vadd.f32 %v2271_v44, %v6376_v13 }
 0x19b   : > { %v6473_v25 = vadd.f32 %v2697_v12, %v2396_v20  ;;  %v4888_v28 = vpop.f32.mrf.mxu1 }
 0x19c   : > { %v4922_v63 = vpop.f32.mrf.mxu0  ;;  %v2405_v54 = vadd.f32 %v4888_v28, %v6380_v37 }
 0x19d   : > { %v6476_v33 = vadd.f32 %v4922_v63, %v2401_v60  ;;  %v2284_v2 = vpop.f32.mrf.mxu1 }
 0x19e   : > { %v2710_v42 = vpop.f32.mrf.mxu0  ;;  %v2403_v55 = vadd.f32 %v2284_v2, %v6383_v16 }
 0x19f   : > { %v6479_v56 = vadd.f32 %v2710_v42, %v2399_v29  ;;  %v4889_v61 = vpop.f32.mrf.mxu1 }
 0x1a0   : > { %v4923_v22 = vpop.f32.mrf.mxu0  ;;  %v2406_v58 = vadd.f32 %v4889_v61, %v6386_v26 }
 0x1a1   : > { %v6482_v0 = vadd.f32 %v4923_v22, %v2402_v8  ;;  %v2287_v13 = vpop.f32.mrf.mxu1 }
 0x1a2   : > { %v2713_v15 = vpop.f32.mrf.mxu0  ;;  %v2404_v35 = vadd.f32 %v2287_v13, %v6389_v14 }
 0x1a3   : > { %v6485_v19 = vadd.f32 %v2713_v15, %v2400_v23  ;;  %v4892_v37 = vpop.f32.mrf.mxu1 }
 0x1a4   : > { %v4926_v30 = vpop.f32.mrf.mxu0  ;;  %v2409_v36 = vadd.f32 %v4892_v37, %v6392_v7 }
 0x1a5   : > { %v6488_v6 = vadd.f32 %v4926_v30, %v2405_v54  ;;  %v2300_v16 = vpop.f32.mrf.mxu1 }
 0x1a6   : > { %v2726_v51 = vpop.f32.mrf.mxu0  ;;  %v2407_v41 = vadd.f32 %v2300_v16, %v6395_v39 }
 0x1a7   : > { %v6491_v20 = vadd.f32 %v2726_v51, %v2403_v55  ;;  %v4893_v26 = vpop.f32.mrf.mxu1 }
 0x1a8   : > { %v4927_v43 = vpop.f32.mrf.mxu0  ;;  %v2410_v5 = vadd.f32 %v4893_v26, %v6398_v59 }
 0x1a9   : > { %v6494_v60 = vadd.f32 %v4927_v43, %v2406_v58  ;;  %v2303_v14 = vpop.f32.mrf.mxu1 }
 0x1aa   : > { %v2729_v52 = vpop.f32.mrf.mxu0  ;;  %v2408_v12 = vadd.f32 %v2303_v14, %v6401_v11 }
 0x1ab   : > { %v6497_v29 = vadd.f32 %v2729_v52, %v2404_v35  ;;  %v4896_v7 = vpop.f32.mrf.mxu1 }
 0x1ac   : > { %v4930_v48 = vpop.f32.mrf.mxu0  ;;  %v2413_v63 = vadd.f32 %v4896_v7, %v6404_v32 }
 0x1ad   : > { %v6500_v8 = vadd.f32 %v4930_v48, %v2409_v36  ;;  %v2316_v39 = vpop.f32.mrf.mxu1 }
 0x1ae   : > { %v2742_v44 = vpop.f32.mrf.mxu0  ;;  %v2411_v42 = vadd.f32 %v2316_v39, %v6407_v24 }
 0x1af   : > { %v6503_v23 = vadd.f32 %v2742_v44, %v2407_v41  ;;  %v4897_v59 = vpop.f32.mrf.mxu1 }
 0x1b0   : > { %v4931_v28 = vpop.f32.mrf.mxu0  ;;  %v2414_v22 = vadd.f32 %v4897_v59, %v6410_v10 }
 0x1b1   : > { %v6506_v54 = vadd.f32 %v4931_v28, %v2410_v5  ;;  %v2319_v11 = vpop.f32.mrf.mxu1 }
 0x1b2   : > { %v2745_v2 = vpop.f32.mrf.mxu0  ;;  %v2412_v15 = vadd.f32 %v2319_v11, %v6413_v45 }
 0x1b3   : > { %v6509_v55 = vadd.f32 %v2745_v2, %v2408_v12  ;;  %v4900_v32 = vpop.f32.mrf.mxu1 }
 0x1b4   : > { %v4934_v61 = vpop.f32.mrf.mxu0  ;;  %v2417_v30 = vadd.f32 %v4900_v32, %v6416_v4 }
 0x1b5   : > { %v6512_v58 = vadd.f32 %v4934_v61, %v2413_v63  ;;  %v2332_v24 = vpop.f32.mrf.mxu1 }
 0x1b6   : > { %v2758_v13 = vpop.f32.mrf.mxu0  ;;  %v2415_v51 = vadd.f32 %v2332_v24, %v6419_v53 }
 0x1b7   : > { %v6515_v35 = vadd.f32 %v2758_v13, %v2411_v42  ;;  %v4901_v10 = vpop.f32.mrf.mxu1 }
 0x1b8   : > { %v4935_v37 = vpop.f32.mrf.mxu0  ;;  %v2418_v43 = vadd.f32 %v4901_v10, %v6422_v3 }
 0x1b9   : > { %v6518_v36 = vadd.f32 %v4935_v37, %v2414_v22  ;;  %v2335_v45 = vpop.f32.mrf.mxu1 }
 0x1ba   : > { %v2761_v16 = vpop.f32.mrf.mxu0  ;;  %v2416_v52 = vadd.f32 %v2335_v45, %v6425_v40 }
 0x1bb   : > { %v6521_v41 = vadd.f32 %v2761_v16, %v2412_v15  ;;  %v4904_v4 = vpop.f32.mrf.mxu1 }
 0x1bc   : > { %v4938_v26 = vpop.f32.mrf.mxu0  ;;  %v2421_v48 = vadd.f32 %v4904_v4, %v6428_v46 }
 0x1bd   : > { %v6524_v5 = vadd.f32 %v4938_v26, %v2417_v30  ;;  %v2348_v53 = vpop.f32.mrf.mxu1 }
 0x1be   : > { %v2774_v14 = vpop.f32.mrf.mxu0  ;;  %v2419_v44 = vadd.f32 %v2348_v53, %v6431_v21 }
 0x1bf   : > { %v6527_v12 = vadd.f32 %v2774_v14, %v2415_v51  ;;  %v4905_v3 = vpop.f32.mrf.mxu1 }
 0x1c0   : > { %v4939_v7 = vpop.f32.mrf.mxu0  ;;  %v2422_v28 = vadd.f32 %v4905_v3, %v6434_v34 }
 0x1c1   : > { %v6530_v63 = vadd.f32 %v4939_v7, %v2418_v43  ;;  %v2351_v40 = vpop.f32.mrf.mxu1 }
 0x1c2   : > { %v2777_v39 = vpop.f32.mrf.mxu0  ;;  %v2420_v2 = vadd.f32 %v2351_v40, %v6437_v38 }
 0x1c3   : > { %v6533_v42 = vadd.f32 %v2777_v39, %v2416_v52  ;;  %v4908_v46 = vpop.f32.mrf.mxu1 }
 0x1c4   : > { %v4942_v59 = vpop.f32.mrf.mxu0  ;;  %v2425_v61 = vadd.f32 %v4908_v46, %v6440_v27 }
 0x1c5   : > { %v6536_v22 = vadd.f32 %v4942_v59, %v2421_v48  ;;  %v2364_v21 = vpop.f32.mrf.mxu1 }
 0x1c6   : > { %v2790_v11 = vpop.f32.mrf.mxu0  ;;  %v2423_v13 = vadd.f32 %v2364_v21, %v6443_v50 }
 0x1c7   : > { %v6539_v15 = vadd.f32 %v2790_v11, %v2419_v44  ;;  %v4909_v34 = vpop.f32.mrf.mxu1 }
 0x1c8   : > { %v4943_v32 = vpop.f32.mrf.mxu0  ;;  %v2426_v37 = vadd.f32 %v4909_v34, %v6446_v17 }
 0x1c9   : > { %v6542_v30 = vadd.f32 %v4943_v32, %v2422_v28  ;;  %v2367_v38 = vpop.f32.mrf.mxu1 }
 0x1ca   : > { %v2793_v24 = vpop.f32.mrf.mxu0  ;;  %v2424_v16 = vadd.f32 %v2367_v38, %v6449_v9 }
 0x1cb   : > { %v6545_v51 = vadd.f32 %v2793_v24, %v2420_v2  ;;  %v4912_v27 = vpop.f32.mrf.mxu1 }
 0x1cc   : > { %v4946_v10 = vpop.f32.mrf.mxu0  ;;  %v2429_v26 = vadd.f32 %v4912_v27, %v6452_v18 }
 0x1cd   : > { %v6548_v43 = vadd.f32 %v4946_v10, %v2425_v61  ;;  %v2380_v50 = vpop.f32.mrf.mxu1 }
 0x1ce   : > { %v2806_v45 = vpop.f32.mrf.mxu0  ;;  %v2427_v14 = vadd.f32 %v2380_v50, %v6455_v47 }
 0x1cf   : > { %v6551_v52 = vadd.f32 %v2806_v45, %v2423_v13  ;;  %v4913_v17 = vpop.f32.mrf.mxu1 }
 0x1d0   : > { %v4947_v4 = vpop.f32.mrf.mxu0  ;;  %v2430_v7 = vadd.f32 %v4913_v17, %v6458_v57 }
 0x1d1   : > { %v6554_v48 = vadd.f32 %v4947_v4, %v2426_v37  ;;  %v2383_v9 = vpop.f32.mrf.mxu1 }
 0x1d2   : > { %v2809_v53 = vpop.f32.mrf.mxu0  ;;  %v2428_v39 = vadd.f32 %v2383_v9, %v6461_v49  ;;  %v6572_v49 = vld [vmem:[%s6884_s2] ss:$0 sm:$0xff] }
 0x1d3   : > { %v6557_v44 = vadd.f32 %v2809_v53, %v2424_v16  ;;  %v4956_v18 = vpop.f32.mrf.mxu1 }
 0x1d4   : > { %v4950_v3 = vpop.f32.mrf.mxu0  ;;  %v3289_v57 = vadd.f32 %v4956_v18, %v6464_v62 }
 0x1d5   : > { %v6560_v28 = vadd.f32 %v4950_v3, %v2429_v26  ;;  %v3144_v2 = vpop.f32.mrf.mxu1 }
 0x1d6   : > { %v2822_v40 = vpop.f32.mrf.mxu0  ;;  %v3287_v34 = vadd.f32 %v3144_v2, %v6467_v1 }
 0x1d7   : > { %v6562_v59 = vadd.f32 %v2822_v40, %v2427_v14  ;;  %v4957_v11 = vpop.f32.mrf.mxu1 }
 0x1d8   : > { %v4951_v47 = vpop.f32.mrf.mxu0  ;;  %v3290_v10 = vadd.f32 %v4957_v11, %v6470_v31 }
 0x1d9   : > { %v6564_v46 = vadd.f32 %v4951_v47, %v2430_v7  ;;  %v3147_v32 = vpop.f32.mrf.mxu1 }
 0x1da   : > { %v2825_v61 = vpop.f32.mrf.mxu0  ;;  %v3288_v14 = vadd.f32 %v3147_v32, %v6473_v25 }
 0x1db   : > { %v6567_v21 = vadd.f32 %v2825_v61, %v2428_v39  ;;  %v4960_v37 = vpop.f32.mrf.mxu1 }
 0x1dc   : > { %v4994_v13 = vpop.f32.mrf.mxu0  ;;  %v3293_v53 = vadd.f32 %v4960_v37, %v6476_v33 }
 0x1dd   : > { %v3602_v24 = vadd.f32 %v4994_v13, %v3289_v57  ;;  %v3160_v27 = vpop.f32.mrf.mxu1 }
 0x1de   : > { %v3457_v38 = vpop.f32.mrf.mxu0  ;;  %v3291_v18 = vadd.f32 %v3160_v27, %v6479_v56 }
 0x1df   : > { %v6577_v16 = vadd.f32 %v6572_v49, %v3602_v24  ;;  %v3600_v62 = vadd.f32 %v3457_v38, %v3287_v34  ;;  %v4961_v1 = vpop.f32.mrf.mxu1 }
 0x1e0   : > { %v4995_v45 = vpop.f32.mrf.mxu0  ;;  %v3294_v11 = vadd.f32 %v4961_v1, %v6482_v0 }
 0x1e1   : > { %v4407_v26 = vmul.f32 -1.442695, %v6577_v16  ;;  %v6581_v50 = vadd.f32 %v6572_v49, %v3600_v62  ;;  %v3603_v4 = vadd.f32 %v4995_v45, %v3290_v10  ;;  %v3163_v9 = vpop.f32.mrf.mxu1 }
 0x1e2   : > { %v3460_v17 = vpop.f32.mrf.mxu0  ;;  %v3292_v38 = vadd.f32 %v3163_v9, %v6485_v19 }
 0x1e3   : > { %5118 = vpow2.f32 %v4407_v26  ;;  %v4405_v31 = vmul.f32 -1.442695, %v6581_v50  ;;  %v6587_v7 = vadd.f32 %v6572_v49, %v3603_v4  ;;  %v3601_v3 = vadd.f32 %v3460_v17, %v3288_v14  ;;  %v4964_v47 = vpop.f32.mrf.mxu1 }
 0x1e4   : > { %v4998_v39 = vpop.f32.mrf.mxu0  ;;  %v3297_v62 = vadd.f32 %v4964_v47, %v6488_v6 }
 0x1e5   : > { %5120 = vpow2.f32 %v4405_v31  ;;  %v4408_v40 = vmul.f32 -1.442695, %v6587_v7  ;;  %v3606_v2 = vadd.f32 %v4998_v39, %v3293_v53  ;;  %v6592_v25 = vadd.f32 %v6572_v49, %v3601_v3  ;;  %v3176_v13 = vpop.f32.mrf.mxu1 }
 0x1e6   : > { %v3473_v33 = vpop.f32.mrf.mxu0  ;;  %v3295_v1 = vadd.f32 %v3176_v13, %v6491_v20 }
 0x1e7   : > { %5122 = vpow2.f32 %v4408_v40  ;;  %v6596_v61 = vadd.f32 %v6572_v49, %v3606_v2  ;;  %v3604_v57 = vadd.f32 %v3473_v33, %v3291_v18  ;;  %v4406_v32 = vmul.f32 -1.442695, %v6592_v25  ;;  %v4965_v10 = vpop.f32.mrf.mxu1 }
 0x1e8   : > { %v4999_v56 = vpop.f32.mrf.mxu0  ;;  %v3298_v18 = vadd.f32 %v4965_v10, %v6494_v60 }
 0x1e9   : > { %v4411_v34 = vmul.f32 -1.442695, %v6596_v61  ;;  %v6601_v24 = vadd.f32 %v6572_v49, %v3604_v57  ;;  %v3607_v37 = vadd.f32 %v4999_v56, %v3294_v11  ;;  %5124 = vpow2.f32 %v4406_v32  ;;  %v3179_v26 = vpop.f32.mrf.mxu1 }
 0x1ea   : > { %v3476_v0 = vpop.f32.mrf.mxu0  ;;  %v3296_v32 = vadd.f32 %v3179_v26, %v6497_v29 }
 0x1eb   : > { %5126 = vpow2.f32 %v4411_v34  ;;  %v4409_v27 = vmul.f32 -1.442695, %v6601_v24  ;;  %v6607_v45 = vadd.f32 %v6572_v49, %v3607_v37  ;;  %v3605_v4 = vadd.f32 %v3476_v0, %v3292_v38  ;;  %v4968_v31 = vpop.f32.mrf.mxu1 }
 0x1ec   : > { %v5002_v14 = vpop.f32.mrf.mxu0  ;;  %v3301_v60 = vadd.f32 %v4968_v31, %v6500_v8 }
 0x1ed   : > { %5128 = vpow2.f32 %v4409_v27  ;;  %v4412_v17 = vmul.f32 -1.442695, %v6607_v45  ;;  %v3610_v19 = vadd.f32 %v5002_v14, %v3297_v62  ;;  %v6612_v53 = vadd.f32 %v6572_v49, %v3605_v4  ;;  %v3192_v20 = vpop.f32.mrf.mxu1 }
 0x1ee   : > { %v3489_v6 = vpop.f32.mrf.mxu0  ;;  %v3299_v26 = vadd.f32 %v3192_v20, %v6503_v23 }
 0x1ef   : > { %5130 = vpow2.f32 %v4412_v17  ;;  %v6615_v9 = vadd.f32 %v6572_v49, %v3610_v19  ;;  %v3608_v3 = vadd.f32 %v3489_v6, %v3295_v1  ;;  %v4410_v40 = vmul.f32 -1.442695, %v6612_v53  ;;  %v4969_v13 = vpop.f32.mrf.mxu1 }
 0x1f0   : > { %v5119_v39 = vpop.eup %5118  ;;  %v5003_v2 = vpop.f32.mrf.mxu0 }
 0x1f1   : > { %v3789_v47 = vadd.f32 1.0, %v5119_v39  ;;  %v4415_v33 = vmul.f32 -1.442695, %v6615_v9  ;;  %v6621_v11 = vadd.f32 %v6572_v49, %v3608_v3  ;;  %5132 = vpow2.f32 %v4410_v40  ;;  %v3195_v62 = vpop.f32.mrf.mxu1 }
 0x1f2   : > { %v5121_v57 = vpop.eup %5120  ;;  %v3611_v56 = vadd.f32 %v5003_v2, %v3298_v18  ;;  %v3492_v34 = vpop.f32.mrf.mxu0  ;;  %v3302_v40 = vadd.f32 %v4969_v13, %v6506_v54 }
 0x1f3   : > { %5134 = vrcp.f32 %v3789_v47  ;;  %v3787_v37 = vadd.f32 1.0, %v5121_v57  ;;  %v4413_v38 = vmul.f32 -1.442695, %v6621_v11  ;;  %v3609_v27 = vadd.f32 %v3492_v34, %v3296_v32  ;;  %v4972_v17 = vpop.f32.mrf.mxu1 }
 0x1f4   : > { %v5123_v10 = vpop.eup %5122  ;;  %5136 = vpow2.f32 %v4415_v33  ;;  %v6627_v0 = vadd.f32 %v6572_v49, %v3611_v56  ;;  %v5006_v4 = vpop.f32.mrf.mxu0  ;;  %v3300_v32 = vadd.f32 %v3195_v62, %v6509_v55  ;;  %v3305_v13 = vadd.f32 %v4972_v17, %v6512_v58 }
 0x1f5   : > { %5138 = vrcp.f32 %v3787_v37  ;;  %v3790_v29 = vadd.f32 1.0, %v5123_v10  ;;  %v3614_v14 = vadd.f32 %v5006_v4, %v3301_v60  ;;  %v6632_v8 = vadd.f32 %v6572_v49, %v3609_v27  ;;  %v3208_v20 = vpop.f32.mrf.mxu1 }
 0x1f6   : > { %5140 = vpow2.f32 %v4413_v38  ;;  %v4416_v1 = vmul.f32 -1.442695, %v6627_v0  ;;  %v3505_v19 = vpop.f32.mrf.mxu0  ;;  %v5125_v31 = vpop.eup %5124 }
 0x1f7   : > { %5142 = vrcp.f32 %v3790_v29  ;;  %v6635_v6 = vadd.f32 %v6572_v49, %v3614_v14  ;;  %v3612_v3 = vadd.f32 %v3505_v19, %v3299_v26  ;;  %v3788_v18 = vadd.f32 1.0, %v5125_v31  ;;  %v4973_v34 = vpop.f32.mrf.mxu1 }
 0x1f8   : > { %v5127_v39 = vpop.eup %5126  ;;  %5144 = vpow2.f32 %v4416_v1  ;;  %v4414_v23 = vmul.f32 -1.442695, %v6632_v8  ;;  %v5007_v2 = vpop.f32.mrf.mxu0  ;;  %v3303_v26 = vadd.f32 %v3208_v20, %v6515_v35  ;;  %v3306_v1 = vadd.f32 %v4973_v34, %v6518_v36 }
 0x1f9   : > { %v3793_v47 = vadd.f32 1.0, %v5127_v39  ;;  %v6640_v33 = vadd.f32 %v6572_v49, %v3612_v3  ;;  %5146 = vrcp.f32 %v3788_v18  ;;  %v4419_v56 = vmul.f32 -1.442695, %v6635_v6  ;;  %v3211_v4 = vpop.f32.mrf.mxu1 }
 0x1fa   : > { %v5129_v57 = vpop.eup %5128  ;;  %v3615_v37 = vadd.f32 %v5007_v2, %v3302_v40  ;;  %v3508_v60 = vpop.f32.mrf.mxu0  ;;  %v3304_v39 = vadd.f32 %v3211_v4, %v6521_v41 }
 0x1fb   : > { %5148 = vrcp.f32 %v3793_v47  ;;  %v3791_v54 = vadd.f32 1.0, %v5129_v57  ;;  %v4417_v10 = vmul.f32 -1.442695, %v6640_v33  ;;  %v3613_v55 = vadd.f32 %v3508_v60, %v3300_v32  ;;  %v4976_v19 = vpop.f32.mrf.mxu1 }
 0x1fc   : > { %v5131_v38 = vpop.eup %5130  ;;  %5150 = vpow2.f32 %v4414_v23  ;;  %v6647_v27 = vadd.f32 %v6572_v49, %v3615_v37  ;;  %v5010_v62 = vpop.f32.mrf.mxu0  ;;  %v3309_v20 = vadd.f32 %v4976_v19, %v6524_v5 }
 0x1fd   : > { %5152 = vrcp.f32 %v3791_v54  ;;  %v3794_v29 = vadd.f32 1.0, %v5131_v38  ;;  %v3618_v14 = vadd.f32 %v5010_v62, %v3305_v13  ;;  %v6654_v17 = vadd.f32 %v6572_v49, %v3613_v55  ;;  %v3224_v2 = vpop.f32.mrf.mxu1 }
 0x1fe   : > { %5154 = vpow2.f32 %v4419_v56  ;;  %v4420_v58 = vmul.f32 -1.442695, %v6647_v27  ;;  %v3521_v31 = vpop.f32.mrf.mxu0  ;;  %v5133_v3 = vpop.eup %5132  ;;  %v3307_v41 = vadd.f32 %v3224_v2, %v6527_v12 }
 0x1ff   : > { %5156 = vrcp.f32 %v3794_v29  ;;  %v6658_v18 = vadd.f32 %v6572_v49, %v3618_v14  ;;  %v3616_v35 = vadd.f32 %v3521_v31, %v3303_v26  ;;  %v3792_v23 = vadd.f32 1.0, %v5133_v3  ;;  %v4977_v60 = vpop.f32.mrf.mxu1 }
 0x200   : > { %v5135_v40 = vpop.eup %5134  ;;  %5158 = vpow2.f32 %v4417_v10  ;;  %v4418_v36 = vmul.f32 -1.442695, %v6654_v17  ;;  %v5011_v47 = vpop.f32.mrf.mxu0  ;;  %v3310_v12 = vadd.f32 %v4977_v60, %v6530_v63 }
 0x201   : > { %v5137_v57 = vpop.eup %5136  ;;  %v3897_v32 = vmul.f32 %v5135_v40, %v6577_v16  ;;  %5160 = vpow2.f32 %v4420_v58  ;;  %v4423_v56 = vmul.f32 -1.442695, %v6658_v18  ;;  %v6671_v5 = vadd.f32 %v6572_v49, %v3616_v35  ;;  %v3227_v26 = vpop.f32.mrf.mxu1 }
 0x202   : > { %v5139_v34 = vpop.eup %5138  ;;  %5162 = vrcp.f32 %v3792_v23  ;;  %v3797_v37 = vadd.f32 1.0, %v5137_v57  ;;  %v3619_v54 = vadd.f32 %v5011_v47, %v3306_v1  ;;  %v3524_v16 = vpop.f32.mrf.mxu0  ;;  %v3308_v63 = vadd.f32 %v3227_v26, %v6533_v42 }
 0x203   : > { %v5141_v13 = vpop.eup %5140  ;;  %v4481_v38 = vpack.c.bf16 %v3897_v32, %v3897_v32  ;;  %v3895_v10 = vmul.f32 %v5139_v34, %v6581_v50  ;;  %5164 = vpow2.f32 %v4418_v36  ;;  %v4421_v62 = vmul.f32 -1.442695, %v6671_v5  ;;  %v4980_v35 = vpop.f32.mrf.mxu1 }
 0x204   : > { %v5143_v4 = vpop.eup %5142  ;;  %5166 = vrcp.f32 %v3797_v37  ;;  %v3795_v55 = vadd.f32 1.0, %v5141_v13  ;;  %v6677_v29 = vadd.f32 %v6572_v49, %v3619_v54  ;;  %v5014_v14 = vpop.f32.mrf.mxu0  ;;  %v3617_v3 = vadd.f32 %v3524_v16, %v3304_v39 }
 0x205   : > { %v5145_v1 = vpop.eup %5144  ;;  %4078 = vst.msk [vmem:[%s6668_s15 + $0x8] sm:$0xf] %vm4075_vm8, %v4481_v38  ;;  %v4479_v58 = vpack.c.bf16 %v3895_v10, %v3895_v10  ;;  %v3898_v50 = vmul.f32 %v5143_v4, %v6587_v7  ;;  %5168 = vpow2.f32 %v4423_v56  ;;  %v6687_v2 = vadd.f32 %v4980_v35, %v6536_v22  ;;  %v3240_v39 = vpop.f32.mrf.mxu1 }
 0x206   : > { %5170 = vrcp.f32 %v3795_v55  ;;  %v3798_v19 = vadd.f32 1.0, %v5145_v1  ;;  %v4424_v31 = vmul.f32 -1.442695, %v6677_v29  ;;  %v3537_v40 = vpop.f32.mrf.mxu0  ;;  %v5147_v23 = vpop.eup %5146  ;;  %v3622_v7 = vadd.f32 %v5014_v14, %v3309_v20 }
 0x207   : > { %4076 = vst.msk [vmem:[%s6668_s15] sm:$0xf] %vm4075_vm8, %v4479_v58  ;;  %v4482_v36 = vpack.c.bf16 %v3898_v50, %v3898_v50  ;;  %5172 = vpow2.f32 %v4421_v62  ;;  %v3896_v42 = vmul.f32 %v5147_v23, %v6592_v25  ;;  %v6691_v57 = vadd.f32 %v6572_v49, %v3617_v3  ;;  %v4981_v13 = vpop.f32.mrf.mxu1 }
 0x208   : > { %v5149_v47 = vpop.eup %5148  ;;  %5174 = vrcp.f32 %v3798_v19  ;;  %v3620_v32 = vadd.f32 %v3537_v40, %v3307_v41  ;;  %v5015_v56 = vpop.f32.mrf.mxu0  ;;  %v6697_v22 = vadd.f32 %v6572_v49, %v3622_v7  ;;  %v6700_v20 = vadd.f32 %v3240_v39, %v6539_v15 }
 0x209   : > { %v5151_v34 = vpop.eup %5150  ;;  %4079 = vst.msk [vmem:[%s6668_s15 + $0xc] sm:$0xf] %vm4075_vm8, %v4482_v36  ;;  %v3901_v37 = vmul.f32 %v5149_v47, %v6596_v61  ;;  %5176 = vpow2.f32 %v4424_v31  ;;  %v4480_v60 = vpack.c.bf16 %v3896_v42, %v3896_v42  ;;  %v4422_v16 = vmul.f32 -1.442695, %v6691_v57  ;;  %v3243_v58 = vpop.f32.mrf.mxu1 }
 0x20a   : > { %v5153_v25 = vpop.eup %5152  ;;  %v3796_v54 = vadd.f32 1.0, %v5151_v34  ;;  %v6704_v41 = vadd.f32 %v6572_v49, %v3620_v32  ;;  %v3540_v38 = vpop.f32.mrf.mxu0  ;;  %v4427_v55 = vmul.f32 -1.442695, %v6697_v22  ;;  %v6709_v15 = vadd.f32 %v4981_v13, %v6542_v30 }
 0x20b   : > { %v5155_v61 = vpop.eup %5154  ;;  %v4485_v10 = vpack.c.bf16 %v3901_v37, %v3901_v37  ;;  %v3899_v4 = vmul.f32 %v5153_v25, %v6601_v24  ;;  %4077 = vst.msk [vmem:[%s6668_s15 + $0x4] sm:$0xf] %vm4075_vm8, %v4480_v60  ;;  %v3623_v1 = vadd.f32 %v5015_v56, %v3310_v12  ;;  %v6718_v30 = vadd.f32 %v3243_v58, %v6545_v51  ;;  %v4984_v23 = vpop.f32.mrf.mxu1 }
 0x20c   : > { %v5157_v62 = vpop.eup %5156  ;;  %5178 = vrcp.f32 %v3796_v54  ;;  %v3801_v26 = vadd.f32 1.0, %v5155_v61  ;;  %v4425_v14 = vmul.f32 -1.442695, %v6704_v41  ;;  %v5018_v50 = vpop.f32.mrf.mxu0  ;;  %v3621_v12 = vadd.f32 %v3540_v38, %v3308_v63 }
 0x20d   : > { %v5159_v19 = vpop.eup %5158  ;;  %4082 = vst.msk [vmem:[%s6668_s15 + $0x18] sm:$0xf] %vm4075_vm8, %v4485_v10  ;;  %v4483_v24 = vpack.c.bf16 %v3899_v4, %v3899_v4  ;;  %v3902_v31 = vmul.f32 %v5157_v62, %v6607_v45  ;;  %5180 = vpow2.f32 %v4422_v16  ;;  %v6721_v40 = vadd.f32 %v6572_v49, %v3623_v1  ;;  %v3256_v63 = vpop.f32.mrf.mxu1 }
 0x20e   : > { %v5161_v3 = vpop.eup %5160  ;;  %5182 = vrcp.f32 %v3801_v26  ;;  %v3799_v35 = vadd.f32 1.0, %v5159_v19  ;;  %v3553_v36 = vpop.f32.mrf.mxu0  ;;  %v3317_v45 = vadd.f32 %v4984_v23, %v6548_v43  ;;  %v6729_v56 = vadd.f32 %v6572_v49, %v3621_v12 }
 0x20f   : > { %v5163_v7 = vpop.eup %5162  ;;  %4080 = vst.msk [vmem:[%s6668_s15 + $0x10] sm:$0xf] %vm4075_vm8, %v4483_v24  ;;  %v4486_v47 = vpack.c.bf16 %v3902_v31, %v3902_v31  ;;  %v3802_v42 = vadd.f32 1.0, %v5161_v3  ;;  %5184 = vpow2.f32 %v4427_v55  ;;  %v4428_v32 = vmul.f32 -1.442695, %v6721_v40  ;;  %v4985_v38 = vpop.f32.mrf.mxu1 }
 0x210   : > { %v5165_v51 = vpop.eup %5164  ;;  %v3900_v39 = vmul.f32 %v5163_v7, %v6612_v53  ;;  %5186 = vrcp.f32 %v3799_v35  ;;  %v5019_v34 = vpop.f32.mrf.mxu0  ;;  %v3626_v60 = vadd.f32 %v5018_v50, %v6687_v2  ;;  %v3315_v43 = vadd.f32 %v3256_v63, %v6551_v52 }
 0x211   : > { %v5167_v37 = vpop.eup %5166  ;;  %4083 = vst.msk [vmem:[%s6668_s15 + $0x1c] sm:$0xf] %vm4075_vm8, %v4486_v47  ;;  %5188 = vrcp.f32 %v3802_v42  ;;  %v3800_v25 = vadd.f32 1.0, %v5165_v51  ;;  %v4426_v13 = vmul.f32 -1.442695, %v6729_v56  ;;  %v3624_v2 = vadd.f32 %v3553_v36, %v6700_v20 }
 0x212   : > { %v5169_v54 = vpop.eup %5168  ;;  %v4484_v53 = vpack.c.bf16 %v3900_v39, %v3900_v39  ;;  %v3905_v16 = vmul.f32 %v5167_v37, %v6615_v9  ;;  %5190 = vpow2.f32 %v4425_v14  ;;  %v3556_v61 = vpop.f32.mrf.mxu0  ;;  %v6738_v55 = vadd.f32 %v6572_v49, %v3626_v60 }
 0x213   : > { %v5171_v10 = vpop.eup %5170  ;;  %5192 = vrcp.f32 %v3800_v25  ;;  %v3805_v4 = vadd.f32 1.0, %v5169_v54  ;;  %v3318_v26 = vadd.f32 %v4985_v38, %v6554_v48  ;;  %v3259_v14 = vpop.f32.mrf.mxu1  ;;  %v6747_v24 = vadd.f32 %v6572_v49, %v3624_v2 }
 0x214   : > { %v5173_v62 = vpop.eup %5172  ;;  %4081 = vst.msk [vmem:[%s6668_s15 + $0x14] sm:$0xf] %vm4075_vm8, %v4484_v53  ;;  %v4489_v52 = vpack.c.bf16 %v3905_v16, %v3905_v16  ;;  %v3903_v9 = vmul.f32 %v5171_v10, %v6621_v11  ;;  %5194 = vpow2.f32 %v4428_v32  ;;  %v5022_v1 = vpop.f32.mrf.mxu0  ;;  %v4431_v19 = vmul.f32 -1.442695, %v6738_v55 }
 0x215   : > { %v5175_v58 = vpop.eup %5174  ;;  %5196 = vrcp.f32 %v3805_v4  ;;  %v3803_v50 = vadd.f32 1.0, %v5173_v62  ;;  %v3627_v48 = vadd.f32 %v5019_v34, %v6709_v15  ;;  %v4988_v3 = vpop.f32.mrf.mxu1  ;;  %v4429_v23 = vmul.f32 -1.442695, %v6747_v24 }
 0x216   : > { %v5177_v20 = vpop.eup %5176  ;;  %4086 = vst.msk [vmem:[%s6668_s15 + $0x28] sm:$0xf] %vm4075_vm8, %v4489_v52  ;;  %v4487_v31 = vpack.c.bf16 %v3903_v9, %v3903_v9  ;;  %v3906_v11 = vmul.f32 %v5175_v58, %v6627_v0  ;;  %5198 = vpow2.f32 %v4426_v13  ;;  %v3569_v35 = vpop.f32.mrf.mxu0  ;;  %v3316_v36 = vadd.f32 %v3259_v14, %v6557_v44 }
 0x217   : > { %5200 = vrcp.f32 %v3803_v50  ;;  %v3806_v12 = vadd.f32 1.0, %v5177_v20  ;;  %v6758_v47 = vadd.f32 %v6572_v49, %v3627_v48  ;;  %v3625_v0 = vadd.f32 %v3556_v61, %v6718_v30  ;;  %v3272_v42 = vpop.f32.mrf.mxu1 }
 0x218   : > { %4084 = vst.msk [vmem:[%s6668_s15 + $0x20] sm:$0xf] %vm4075_vm8, %v4487_v31  ;;  %v4490_v7 = vpack.c.bf16 %v3906_v11, %v3906_v11  ;;  %5202 = vpow2.f32 %v4431_v19  ;;  %v5023_v15 = vpop.f32.mrf.mxu0  ;;  %v3321_v39 = vadd.f32 %v4988_v3, %v6560_v28  ;;  %v3630_v32 = vadd.f32 %v5022_v1, %v3317_v45 }
 0x219   : > { %v5179_v51 = vpop.eup %5178  ;;  %5204 = vrcp.f32 %v3806_v12  ;;  %v3319_v63 = vadd.f32 %v3272_v42, %v6562_v59  ;;  %v4432_v37 = vmul.f32 -1.442695, %v6758_v47  ;;  %v6768_v25 = vadd.f32 %v6572_v49, %v3625_v0  ;;  %v4989_v30 = vpop.f32.mrf.mxu1 }
 0x21a   : > { %v5181_v34 = vpop.eup %5180  ;;  %4087 = vst.msk [vmem:[%s6668_s15 + $0x2c] sm:$0xf] %vm4075_vm8, %v4490_v7  ;;  %v3904_v44 = vmul.f32 %v5179_v51, %v6632_v8  ;;  %5206 = vpow2.f32 %v4429_v23  ;;  %v3572_v60 = vpop.f32.mrf.mxu0  ;;  %v6771_v28 = vadd.f32 %v6572_v49, %v3630_v32  ;;  %v3628_v59 = vadd.f32 %v3569_v35, %v3315_v43 }
 0x21b   : > { %v5183_v54 = vpop.eup %5182  ;;  %v3804_v53 = vadd.f32 1.0, %v5181_v34  ;;  %v3322_v45 = vadd.f32 %v4989_v30, %v6564_v46  ;;  %5208 = vpow2.f32 %v4432_v37  ;;  %v4430_v38 = vmul.f32 -1.442695, %v6768_v25  ;;  %v3275_v61 = vpop.f32.mrf.mxu1 }
 0x21c   : > { %v5185_v16 = vpop.eup %5184  ;;  %v4488_v13 = vpack.c.bf16 %v3904_v44, %v3904_v44  ;;  %v3909_v8 = vmul.f32 %v5183_v54, %v6635_v6  ;;  %v5026_v10 = vpop.f32.mrf.mxu0  ;;  %v4435_v62 = vmul.f32 -1.442695, %v6771_v28  ;;  %v6778_v52 = vadd.f32 %v6572_v49, %v3628_v59 }
 0x21d   : > { %v5187_v4 = vpop.eup %5186  ;;  %5210 = vrcp.f32 %v3804_v53  ;;  %v3809_v2 = vadd.f32 1.0, %v5185_v16  ;;  %v3631_v9 = vadd.f32 %v5023_v15, %v3318_v26  ;;  %v3320_v19 = vadd.f32 %v3275_v61, %v6567_v21 }
 0x21e   : > { %v5189_v43 = vpop.eup %5188  ;;  %4085 = vst.msk [vmem:[%s6668_s15 + $0x24] sm:$0xf] %vm4075_vm8, %v4488_v13  ;;  %v4493_v46 = vpack.c.bf16 %v3909_v8, %v3909_v8  ;;  %v3907_v6 = vmul.f32 %v5187_v4, %v6640_v33  ;;  %5212 = vpow2.f32 %v4430_v38  ;;  %v3585_v14 = vpop.f32.mrf.mxu0  ;;  %v4433_v50 = vmul.f32 -1.442695, %v6778_v52 }
 0x21f   : > { %v5191_v1 = vpop.eup %5190  ;;  %v3910_v58 = vmul.f32 %v5189_v43, %v6647_v27  ;;  %5214 = vrcp.f32 %v3809_v2  ;;  %v6789_v33 = vadd.f32 %v6572_v49, %v3631_v9  ;;  %v3629_v3 = vadd.f32 %v3572_v60, %v3316_v36 }
 0x220   : > { %v5193_v20 = vpop.eup %5192  ;;  %4090 = vst.msk [vmem:[%s6668_s15 + $0x38] sm:$0xf] %vm4075_vm8, %v4493_v46  ;;  %v4491_v31 = vpack.c.bf16 %v3907_v6, %v3907_v6  ;;  %v3807_v11 = vadd.f32 1.0, %v5191_v1  ;;  %5216 = vpow2.f32 %v4435_v62  ;;  %v5027_v35 = vpop.f32.mrf.mxu0  ;;  %v3634_v7 = vadd.f32 %v5026_v10, %v3321_v39 }
 0x221   : > { %v5195_v26 = vpop.eup %5194  ;;  %v4494_v48 = vpack.c.bf16 %v3910_v58, %v3910_v58  ;;  %v3908_v27 = vmul.f32 %v5193_v20, %v6654_v17  ;;  %5218 = vpow2.f32 %v4433_v50  ;;  %v4436_v23 = vmul.f32 -1.442695, %v6789_v33 }
 0x222   : > { %v5197_v12 = vpop.eup %5196  ;;  %4088 = vst.msk [vmem:[%s6668_s15 + $0x30] sm:$0xf] %vm4075_vm8, %v4491_v31  ;;  %5220 = vrcp.f32 %v3807_v11  ;;  %v3810_v21 = vadd.f32 1.0, %v5195_v26  ;;  %v6799_v17 = vadd.f32 %v6572_v49, %v3629_v3  ;;  %v3632_v36 = vadd.f32 %v3585_v14, %v3319_v63  ;;  %v3588_v60 = vpop.f32.mrf.mxu0 }
 0x223   : > { %v5199_v0 = vpop.eup %5198  ;;  %4091 = vst.msk [vmem:[%s6668_s15 + $0x3c] sm:$0xf] %vm4075_vm8, %v4494_v48  ;;  %v4492_v42 = vpack.c.bf16 %v3908_v27, %v3908_v27  ;;  %v3913_v15 = vmul.f32 %v5197_v12, %v6658_v18  ;;  %v6802_v34 = vadd.f32 %v6572_v49, %v3634_v7  ;;  %v3635_v44 = vadd.f32 %v5027_v35, %v3322_v45 }
 0x224   : > { %v5201_v51 = vpop.eup %5200  ;;  %5222 = vrcp.f32 %v3810_v21  ;;  %v3808_v32 = vadd.f32 1.0, %v5199_v0  ;;  %v4434_v18 = vmul.f32 -1.442695, %v6799_v17  ;;  %v6810_v59 = vadd.f32 %v6572_v49, %v3632_v36 }
 0x225   : > { %v5203_v37 = vpop.eup %5202  ;;  %4089 = vst.msk [vmem:[%s6668_s15 + $0x34] sm:$0xf] %vm4075_vm8, %v4492_v42  ;;  %v4497_v39 = vpack.c.bf16 %v3913_v15, %v3913_v15  ;;  %v3911_v30 = vmul.f32 %v5201_v51, %v6671_v5  ;;  %5224 = vpow2.f32 %v4436_v23  ;;  %v4439_v53 = vmul.f32 -1.442695, %v6802_v34 }
 0x226   : > { %v5205_v54 = vpop.eup %5204  ;;  %5226 = vrcp.f32 %v3808_v32  ;;  %v3813_v63 = vadd.f32 1.0, %v5203_v37  ;;  %v6816_v5 = vadd.f32 %v6572_v49, %v3635_v44  ;;  %v4437_v38 = vmul.f32 -1.442695, %v6810_v59 }
 0x227   : > { %v5207_v45 = vpop.eup %5206  ;;  %4094 = vst.msk [vmem:[%s6668_s15 + $0x48] sm:$0xf] %vm4075_vm8, %v4497_v39  ;;  %v4495_v16 = vpack.c.bf16 %v3911_v30, %v3911_v30  ;;  %v3914_v13 = vmul.f32 %v5205_v54, %v6677_v29  ;;  %5228 = vpow2.f32 %v4434_v18  ;;  %v3633_v61 = vadd.f32 %v3588_v60, %v3320_v19 }
 0x228   : > { %5230 = vrcp.f32 %v3813_v63  ;;  %v3811_v8 = vadd.f32 1.0, %v5207_v45  ;;  %v5209_v10 = vpop.eup %5208  ;;  %v4440_v2 = vmul.f32 -1.442695, %v6816_v5 }
 0x229   : > { %4092 = vst.msk [vmem:[%s6668_s15 + $0x40] sm:$0xf] %vm4075_vm8, %v4495_v16  ;;  %v4498_v4 = vpack.c.bf16 %v3914_v13, %v3914_v13  ;;  %5232 = vpow2.f32 %v4439_v53  ;;  %v3814_v29 = vadd.f32 1.0, %v5209_v10  ;;  %v6823_v43 = vadd.f32 %v6572_v49, %v3633_v61 }
 0x22a   : > { %v5211_v62 = vpop.eup %5210  ;;  %5234 = vrcp.f32 %v3811_v8 }
 0x22b   : > { %v5213_v46 = vpop.eup %5212  ;;  %4095 = vst.msk [vmem:[%s6668_s15 + $0x4c] sm:$0xf] %vm4075_vm8, %v4498_v4  ;;  %v3912_v6 = vmul.f32 %v5211_v62, %v6691_v57  ;;  %5236 = vpow2.f32 %v4437_v38  ;;  %v4438_v1 = vmul.f32 -1.442695, %v6823_v43 }
 0x22c   : > { %v5215_v9 = vpop.eup %5214  ;;  %5238 = vrcp.f32 %v3814_v29  ;;  %v3812_v14 = vadd.f32 1.0, %v5213_v46 }
 0x22d   : > { %v5217_v58 = vpop.eup %5216  ;;  %v4496_v50 = vpack.c.bf16 %v3912_v6, %v3912_v6  ;;  %v3917_v19 = vmul.f32 %v5215_v9, %v6697_v22  ;;  %5240 = vpow2.f32 %v4440_v2 }
 0x22e   : > { %v5219_v49 = vpop.eup %5218  ;;  %5242 = vrcp.f32 %v3812_v14  ;;  %v3817_v20 = vadd.f32 1.0, %v5217_v58 }
 0x22f   : > { %v5221_v31 = vpop.eup %5220  ;;  %4093 = vst.msk [vmem:[%s6668_s15 + $0x44] sm:$0xf] %vm4075_vm8, %v4496_v50  ;;  %v4501_v57 = vpack.c.bf16 %v3917_v19, %v3917_v19  ;;  %v3815_v11 = vadd.f32 1.0, %v5219_v49  ;;  %5244 = vpow2.f32 %v4438_v1 }
 0x230   : > { %v3915_v26 = vmul.f32 %v5221_v31, %v6704_v41  ;;  %5246 = vrcp.f32 %v3817_v20 }
 0x231   : > { %v5223_v48 = vpop.eup %5222  ;;  %4098 = vst.msk [vmem:[%s6668_s15 + $0x58] sm:$0xf] %vm4075_vm8, %v4501_v57  ;;  %5248 = vrcp.f32 %v3815_v11 }
 0x232   : > { %v5225_v22 = vpop.eup %5224  ;;  %v4499_v27 = vpack.c.bf16 %v3915_v26, %v3915_v26  ;;  %v3918_v3 = vmul.f32 %v5223_v48, %v6721_v40 }
 0x233   : > { %v5227_v35 = vpop.eup %5226  ;;  %v3818_v12 = vadd.f32 1.0, %v5225_v22 }
 0x234   : > { %v5229_v21 = vpop.eup %5228  ;;  %4096 = vst.msk [vmem:[%s6668_s15 + $0x50] sm:$0xf] %vm4075_vm8, %v4499_v27  ;;  %v4502_v23 = vpack.c.bf16 %v3918_v3, %v3918_v3  ;;  %v3916_v7 = vmul.f32 %v5227_v35, %v6729_v56 }
 0x235   : > { %v5231_v41 = vpop.eup %5230  ;;  %5250 = vrcp.f32 %v3818_v12  ;;  %v3816_v0 = vadd.f32 1.0, %v5229_v21 }
 0x236   : > { %v5233_v42 = vpop.eup %5232  ;;  %4099 = vst.msk [vmem:[%s6668_s15 + $0x5c] sm:$0xf] %vm4075_vm8, %v4502_v23  ;;  %v4500_v15 = vpack.c.bf16 %v3916_v7, %v3916_v7  ;;  %v3921_v36 = vmul.f32 %v5231_v41, %v6738_v55 }
 0x237   : > { %v5235_v40 = vpop.eup %5234  ;;  %5252 = vrcp.f32 %v3816_v0  ;;  %v3821_v51 = vadd.f32 1.0, %v5233_v42 }
 0x238   : > { %v5237_v32 = vpop.eup %5236  ;;  %4097 = vst.msk [vmem:[%s6668_s15 + $0x54] sm:$0xf] %vm4075_vm8, %v4500_v15  ;;  %v4505_v44 = vpack.c.bf16 %v3921_v36, %v3921_v36  ;;  %v3919_v56 = vmul.f32 %v5235_v40, %v6747_v24 }
 0x239   : > { %v5239_v37 = vpop.eup %5238  ;;  %5254 = vrcp.f32 %v3821_v51  ;;  %v3819_v39 = vadd.f32 1.0, %v5237_v32 }
 0x23a   : > { %v5241_v30 = vpop.eup %5240  ;;  %4102 = vst.msk [vmem:[%s6668_s15 + $0x68] sm:$0xf] %vm4075_vm8, %v4505_v44  ;;  %v4503_v18 = vpack.c.bf16 %v3919_v56, %v3919_v56  ;;  %v3922_v55 = vmul.f32 %v5239_v37, %v6758_v47 }
 0x23b   : > { %v5243_v60 = vpop.eup %5242  ;;  %5256 = vrcp.f32 %v3819_v39  ;;  %v3822_v54 = vadd.f32 1.0, %v5241_v30 }
 0x23c   : > { %v5245_v63 = vpop.eup %5244  ;;  %4100 = vst.msk [vmem:[%s6668_s15 + $0x60] sm:$0xf] %vm4075_vm8, %v4503_v18  ;;  %v4506_v53 = vpack.c.bf16 %v3922_v55, %v3922_v55  ;;  %v3920_v24 = vmul.f32 %v5243_v60, %v6768_v25 }
 0x23d   : > { %v5247_v45 = vpop.eup %5246  ;;  %5258 = vrcp.f32 %v3822_v54  ;;  %v3820_v16 = vadd.f32 1.0, %v5245_v63 }
 0x23e   : > { %v5249_v13 = vpop.eup %5248  ;;  %4103 = vst.msk [vmem:[%s6668_s15 + $0x6c] sm:$0xf] %vm4075_vm8, %v4506_v53  ;;  %v4504_v47 = vpack.c.bf16 %v3920_v24, %v3920_v24  ;;  %v3925_v8 = vmul.f32 %v5247_v45, %v6771_v28 }
 0x23f   : > { %v3923_v38 = vmul.f32 %v5249_v13, %v6778_v52  ;;  %5260 = vrcp.f32 %v3820_v16 }
 0x240   : > { %4101 = vst.msk [vmem:[%s6668_s15 + $0x64] sm:$0xf] %vm4075_vm8, %v4504_v47  ;;  %v4509_v61 = vpack.c.bf16 %v3925_v8, %v3925_v8 }
 0x241   : > { %v4507_v10 = vpack.c.bf16 %v3923_v38, %v3923_v38 }
 0x242   : > { %v5251_v4 = vpop.eup %5250  ;;  %4106 = vst.msk [vmem:[%s6668_s15 + $0x78] sm:$0xf] %vm4075_vm8, %v4509_v61 }
 0x243   : > { %4104 = vst.msk [vmem:[%s6668_s15 + $0x70] sm:$0xf] %vm4075_vm8, %v4507_v10  ;;  %v3926_v25 = vmul.f32 %v5251_v4, %v6789_v33 }
 0x244   : > { %v5253_v2 = vpop.eup %5252 }
 0x245   : > { %v4510_v62 = vpack.c.bf16 %v3926_v25, %v3926_v25  ;;  %v3924_v28 = vmul.f32 %v5253_v2, %v6799_v17 }
 0x246   : > { %v5255_v52 = vpop.eup %5254 }
 0x247   : > { %4107 = vst.msk [vmem:[%s6668_s15 + $0x7c] sm:$0xf] %vm4075_vm8, %v4510_v62  ;;  %v4508_v29 = vpack.c.bf16 %v3924_v28, %v3924_v28  ;;  %v3929_v46 = vmul.f32 %v5255_v52, %v6802_v34 }
 0x248   : > { %v5257_v6 = vpop.eup %5256 }
 0x249   : > { %4105 = vst.msk [vmem:[%s6668_s15 + $0x74] sm:$0xf] %vm4075_vm8, %v4508_v29  ;;  %v4513_v9 = vpack.c.bf16 %v3929_v46, %v3929_v46  ;;  %v3927_v14 = vmul.f32 %v5257_v6, %v6810_v59 }
 0x24a   : > { %v5259_v33 = vpop.eup %5258 }
 0x24b   : > { %4110 = vst.msk [vmem:[%s6668_s15 + $0x88] sm:$0xf] %vm4075_vm8, %v4513_v9  ;;  %v4511_v1 = vpack.c.bf16 %v3927_v14, %v3927_v14  ;;  %v3930_v17 = vmul.f32 %v5259_v33, %v6816_v5 }
 0x24c   : > { %v5261_v58 = vpop.eup %5260 }
 0x24d   : > { %4108 = vst.msk [vmem:[%s6668_s15 + $0x80] sm:$0xf] %vm4075_vm8, %v4511_v1  ;;  %v4514_v50 = vpack.c.bf16 %v3930_v17, %v3930_v17  ;;  %v3928_v19 = vmul.f32 %v5261_v58, %v6823_v43 }
 0x24f   : > { %4111 = vst.msk [vmem:[%s6668_s15 + $0x8c] sm:$0xf] %vm4075_vm8, %v4514_v50  ;;  %v4512_v34 = vpack.c.bf16 %v3928_v19, %v3928_v19 }
 0x251   : > { %4109 = vst.msk [vmem:[%s6668_s15 + $0x84] sm:$0xf] %vm4075_vm8, %v4512_v34 }
 0x252 PF: > { %s13_s12 = sadd.s32 1, %s5268_s12  }
 0x253   : > { %p10_p4 = scmp.ge.s32.totalorder %s13_s12, 4  }
 0x255   :  { %12 = sbr.rel (!%p10_p4) target bundleno = 1 (0x1), region = 62 }

</bundles_post_ra>
